<compile_context>
chip_gen: v5e
topology: v5e:2x2
jax: 0.10.0
libtpu: 0.0.40
codegen_flags: <defaults>
</compile_context>

<pallas_src>
import jax
import jax.numpy as jnp
from jax.experimental import pallas as pl
from jax.experimental.pallas import tpu as pltpu

BN_EPS = 1e-5
LANE = 128


def _round_up(x, m):
    return (x + m - 1) // m * m


def _pad_channels(c):
    # Lane-dense (128) only when it does not blow up HBM / MXU-K work.
    return _round_up(c, LANE) if c >= 64 else _round_up(c, 8)


def _vmem_limit_bytes():
    # Generation-aware scoped-VMEM budget: ~75% of physical, capped at 100 MiB
    # (v5e/v6e: 128 MiB -> ~96-100 MiB; v7x: 64 MiB/TC -> 48 MiB).
    phys = 64 * 1024 * 1024  # conservative default (v7x per-TC)
    try:
        phys = int(pltpu.get_tpu_info().vmem_capacity_bytes)
    except Exception:
        pass
    return int(min(phys * 3 // 4, 100 * 1024 * 1024))


def _pick_row_tile(oh, bytes_per_row, budget=4 * 1024 * 1024):
    """Largest divisor of `oh` whose per-tile working set fits `budget`."""
    max_tr = max(1, budget // max(1, bytes_per_row))
    tr = min(oh, max_tr)
    while oh % tr:
        tr -= 1
    return tr


# ----------------------------------------------------------------------------
# Conv1: 3x3 stride-2 conv as one stacked-K matmul per (image, row-tile), plus
# per-tile BN partial sums.  Input is space-to-depth packed so every tap is a
# plain contiguous slice.
# ----------------------------------------------------------------------------
def _make_conv_s2d_kernel(taps, cin, tr, ow, kstack, coutp):
    k9 = 9 * cin

    def kernel(x_ref, w_ref, y_ref, stats_ref, lhs_ref):
        r = pl.program_id(1)
        r0 = r * tr
        # In-VMEM im2col: 9 contiguous tap slices -> (tr, ow, 9*cin) scratch.
        for t, (dh, dw, ch) in enumerate(taps):
            lhs_ref[:, :, t * cin:(t + 1) * cin] = (
                x_ref[0, pl.ds(r0 + dh, tr), dw:dw + ow, ch:ch + cin])
        if kstack > k9:  # zero the K-padding tail (weights there are zero too)
            lhs_ref[:, :, k9:] = jnp.zeros((tr, ow, kstack - k9), lhs_ref.dtype)
        lhs = lhs_ref[...].reshape(tr * ow, kstack)
        acc = jnp.dot(lhs, w_ref[...], preferred_element_type=jnp.float32)
        y_ref[...] = acc.reshape(1, tr, ow, coutp)
        ssum = jnp.sum(acc, axis=0, keepdims=True)
        ssq = jnp.sum(acc * acc, axis=0, keepdims=True)
        stats_ref[...] = jnp.concatenate([ssum, ssq], axis=0).reshape(1, 1, 2, coutp)

    return kernel


def conv_s2d_call(xs, w1, taps, cin, oh, ow, kstack, coutp, tr, vmem_limit):
    n, xh, xw, xc = xs.shape
    rt = oh // tr
    kernel = _make_conv_s2d_kernel(taps, cin, tr, ow, kstack, coutp)
    flops = 2 * n * oh * ow * kstack * coutp
    bytes_accessed = int(xs.size * 2 + w1.size * 2
                         + 4 * n * oh * ow * coutp + 4 * n * rt * 2 * coutp)
    return pl.pallas_call(
        kernel,
        out_shape=(jax.ShapeDtypeStruct((n, oh, ow, coutp), jnp.float32),
                   jax.ShapeDtypeStruct((n, rt, 2, coutp), jnp.float32)),
        grid_spec=pltpu.PrefetchScalarGridSpec(
            num_scalar_prefetch=0,
            grid=(n, rt),
            in_specs=[
                pl.BlockSpec((1, xh, xw, xc), lambda i, r: (i, 0, 0, 0)),
                pl.BlockSpec((kstack, coutp), lambda i, r: (0, 0)),   # resident
            ],
            out_specs=[
                pl.BlockSpec((1, tr, ow, coutp), lambda i, r: (i, r, 0, 0)),
                pl.BlockSpec((1, 1, 2, coutp), lambda i, r: (i, r, 0, 0)),
            ],
            scratch_shapes=[pltpu.VMEM((tr, ow, kstack), jnp.bfloat16)]),
        compiler_params=pltpu.CompilerParams(
            dimension_semantics=("parallel", "parallel"),
            vmem_limit_bytes=vmem_limit),
        cost_estimate=pl.CostEstimate(flops=flops, transcendentals=0,
                                      bytes_accessed=bytes_accessed),
    )(xs, w1)


# ----------------------------------------------------------------------------
# Conv2: fused [BN1-apply + ReLU + zero-pad] -> 3x3 stride-1 conv (stacked-K
# matmul) -> per-tile BN2 partial sums.  The padded bf16 activation for the
# whole image is built once (r == 0) in a VMEM scratch and reused by every
# row tile (hence the row axis is "arbitrary", not "parallel").
# ----------------------------------------------------------------------------
def _make_conv_s1_fused_kernel(oh, ow, c1p, tr, kstack, coutp):
    k9 = 9 * c1p
    tap_list = [(kh, kw) for kh in range(3) for kw in range(3)]

    def kernel(y1_ref, s_ref, t_ref, w_ref, y2_ref, stats_ref, pad_ref, lhs_ref):
        r = pl.program_id(1)

        @pl.when(r == 0)
        def _():
            pad_ref[...] = jnp.zeros_like(pad_ref)
            act = jnp.maximum(
                y1_ref[0] * s_ref[...].reshape(1, 1, c1p)
                + t_ref[...].reshape(1, 1, c1p), 0.0)
            pad_ref[1:oh + 1, 1:ow + 1, :] = act.astype(pad_ref.dtype)

        r0 = r * tr
        for t, (kh, kw) in enumerate(tap_list):
            lhs_ref[:, :, t * c1p:(t + 1) * c1p] = (
                pad_ref[pl.ds(r0 + kh, tr), kw:kw + ow, :])
        if kstack > k9:
            lhs_ref[:, :, k9:] = jnp.zeros((tr, ow, kstack - k9), lhs_ref.dtype)
        lhs = lhs_ref[...].reshape(tr * ow, kstack)
        acc = jnp.dot(lhs, w_ref[...], preferred_element_type=jnp.float32)
        y2_ref[...] = acc.reshape(1, tr, ow, coutp)
        ssum = jnp.sum(acc, axis=0, keepdims=True)
        ssq = jnp.sum(acc * acc, axis=0, keepdims=True)
        stats_ref[...] = jnp.concatenate([ssum, ssq], axis=0).reshape(1, 1, 2, coutp)

    return kernel


def conv_s1_fused_call(y1_raw, scale1, shift1, w2, oh, ow, c1p, kstack, coutp,
                       tr, vmem_limit):
    n = y1_raw.shape[0]
    rt = oh // tr
    kernel = _make_conv_s1_fused_kernel(oh, ow, c1p, tr, kstack, coutp)
    flops = 2 * n * oh * ow * kstack * coutp
    bytes_accessed = int(4 * y1_raw.size + w2.size * 2
                         + 4 * n * oh * ow * coutp + 4 * n * rt * 2 * coutp)
    return pl.pallas_call(
        kernel,
        out_shape=(jax.ShapeDtypeStruct((n, oh, ow, coutp), jnp.float32),
                   jax.ShapeDtypeStruct((n, rt, 2, coutp), jnp.float32)),
        grid_spec=pltpu.PrefetchScalarGridSpec(
            num_scalar_prefetch=0,
            grid=(n, rt),
            in_specs=[
                pl.BlockSpec((1, oh, ow, c1p), lambda i, r: (i, 0, 0, 0)),
                pl.BlockSpec((1, c1p), lambda i, r: (0, 0)),
                pl.BlockSpec((1, c1p), lambda i, r: (0, 0)),
                pl.BlockSpec((kstack, coutp), lambda i, r: (0, 0)),
            ],
            out_specs=[
                pl.BlockSpec((1, tr, ow, coutp), lambda i, r: (i, r, 0, 0)),
                pl.BlockSpec((1, 1, 2, coutp), lambda i, r: (i, r, 0, 0)),
            ],
            scratch_shapes=[
                pltpu.VMEM((oh + 2, ow + 2, c1p), jnp.bfloat16),  # padded act
                pltpu.VMEM((tr, ow, kstack), jnp.bfloat16),       # im2col LHS
            ]),
        compiler_params=pltpu.CompilerParams(
            dimension_semantics=("parallel", "arbitrary"),
            vmem_limit_bytes=vmem_limit),
        cost_estimate=pl.CostEstimate(flops=flops, transcendentals=0,
                                      bytes_accessed=bytes_accessed),
    )(y1_raw, scale1.reshape(1, c1p), shift1.reshape(1, c1p), w2)


# ----------------------------------------------------------------------------
# Final pass: y = relu(scale * y_raw + shift) for layer 2, row-tiled.
# ----------------------------------------------------------------------------
def _apply_bn_relu_kernel(y_ref, s_ref, t_ref, o_ref):
    o_ref[...] = jnp.maximum(y_ref[...] * s_ref[...] + t_ref[...], 0.0)


def apply_bn_relu(y2d, scale, shift, vmem_limit):
    m, cp = y2d.shape
    # ~2 MiB per f32 block, 8-aligned, capped; pad the tail instead of
    # falling back to one giant block.
    tm = max(8, min(1024, ((2 * 1024 * 1024) // (4 * cp)) // 8 * 8))
    tm = min(tm, _round_up(m, 8))
    mp = _round_up(m, tm)
    if mp != m:
        y2d = jnp.pad(y2d, ((0, mp - m), (0, 0)))
    out = pl.pallas_call(
        _apply_bn_relu_kernel,
        out_shape=jax.ShapeDtypeStruct((mp, cp), jnp.float32),
        grid_spec=pltpu.PrefetchScalarGridSpec(
            num_scalar_prefetch=0,
            grid=(mp // tm,),
            in_specs=[
                pl.BlockSpec((tm, cp), lambda i: (i, 0)),
                pl.BlockSpec((1, cp), lambda i: (0, 0)),
                pl.BlockSpec((1, cp), lambda i: (0, 0)),
            ],
            out_specs=pl.BlockSpec((tm, cp), lambda i: (i, 0))),
        compiler_params=pltpu.CompilerParams(
            dimension_semantics=("parallel",),
            vmem_limit_bytes=vmem_limit),
    )(y2d, scale.reshape(1, cp), shift.reshape(1, cp))
    return out[:m]


# ----------------------------------------------------------------------------
# Wrapper-side layout prep (cheap, one-time XLA ops; no HBM im2col).
# ----------------------------------------------------------------------------
def _prep_stride2(x_nhwc):
    """Pad (3x3, pad=1) + space-to-depth so every stride-2 tap is contiguous."""
    n, h, w, c = x_nhwc.shape
    oh = (h - 1) // 2 + 1
    ow = (w - 1) // 2 + 1
    hp = h + 2 + ((h + 2) % 2)   # padded height, made even
    wp = w + 2 + ((w + 2) % 2)
    xp = jnp.pad(x_nhwc, ((0, 0), (1, hp - h - 1), (1, wp - w - 1), (0, 0)))
    xs = xp.reshape(n, hp // 2, 2, wp // 2, 2, c)
    xs = xs.transpose(0, 1, 3, 2, 4, 5).reshape(n, hp // 2, wp // 2, 4 * c)
    taps = []
    for kh in range(3):
        for kw in range(3):
            dh, p = kh // 2, kh % 2
            dw, q = kw // 2, kw % 2
            taps.append((dh, dw, (p * 2 + q) * c))
    return xs, taps, (oh, ow), c


def _prep_weight(w_oihw, cin_p, kstack, coutp):
    # PyTorch (Cout, Cin, 3, 3) -> bf16 (kstack, Cout_p), tap-major (kh, kw)
    # with per-tap Cin padded to cin_p so it matches the im2col LHS layout.
    cout, cin = int(w_oihw.shape[0]), int(w_oihw.shape[1])
    w = jnp.transpose(w_oihw, (2, 3, 1, 0))                      # (3,3,cin,cout)
    w = jnp.pad(w, ((0, 0), (0, 0), (0, cin_p - cin), (0, coutp - cout)))
    w = w.reshape(9 * cin_p, coutp)
    w = jnp.pad(w, ((0, kstack - 9 * cin_p), (0, 0)))
    return w.astype(jnp.bfloat16)


def _fold_bn(stats, gamma_p, beta_p, count):
    # Per-tile partial sums (N, R, 2, C) -> per-channel scale/shift.
    ssum = jnp.sum(stats[:, :, 0, :], axis=(0, 1))
    ssq = jnp.sum(stats[:, :, 1, :], axis=(0, 1))
    mean = ssum / count
    # NOTE: E[x^2]-E[x]^2 in f32 (clamped at 0).  Fine for conv outputs near
    # zero mean; a shifted/Welford accumulation would be safer for |mean|>>std.
    var = jnp.maximum(ssq / count - mean * mean, 0.0)
    scale = gamma_p * jax.lax.rsqrt(var + BN_EPS)
    shift = beta_p - mean * scale
    return scale, shift


def encoder_block(x_nchw, params):
    vmem_limit = _vmem_limit_bytes()
    x = jnp.transpose(x_nchw, (0, 2, 3, 1)).astype(jnp.float32)   # NCHW -> NHWC
    n = x.shape[0]

    cout1 = int(params["w1"].shape[0])
    cout2 = int(params["w2"].shape[0])
    c1p = _pad_channels(cout1)
    c2p = _pad_channels(cout2)

    # ---- layer 1: conv3x3 s2 (raw, bf16 operands) + per-tile BN stats ------
    xs, taps, (oh, ow), cin = _prep_stride2(x)
    xs = xs.astype(jnp.bfloat16)                                  # halves DMA
    k1 = _round_up(9 * cin, 16)
    w1 = _prep_weight(params["w1"], cin, k1, c1p)
    tr1 = _pick_row_tile(oh, bytes_per_row=4 * ow * (c1p + k1))
    y1_raw, stats1 = conv_s2d_call(xs, w1, taps, cin, oh, ow, k1, c1p, tr1,
                                   vmem_limit)

    g1 = jnp.pad(params["g1"].reshape(-1), (0, c1p - cout1))
    b1 = jnp.pad(params["be1"].reshape(-1), (0, c1p - cout1))
    scale1, shift1 = _fold_bn(stats1, g1, b1, n * oh * ow)

    # ---- layer 2: fused BN1+ReLU+pad -> conv3x3 s1 (raw) + BN2 stats --------
    # Conv bias is not used in the kernel path: BN mean subtraction cancels it.
    k2 = _round_up(9 * c1p, 16)
    w2 = _prep_weight(params["w2"], c1p, k2, c2p)
    tr2 = _pick_row_tile(oh, bytes_per_row=4 * ow * (c2p + k2))
    y2_raw, stats2 = conv_s1_fused_call(y1_raw, scale1, shift1, w2,
                                        oh, ow, c1p, k2, c2p, tr2, vmem_limit)

    g2 = jnp.pad(params["g2"].reshape(-1), (0, c2p - cout2))
    b2 = jnp.pad(params["be2"].reshape(-1), (0, c2p - cout2))
    scale2, shift2 = _fold_bn(stats2, g2, b2, n * oh * ow)

    # ---- BN2 apply + ReLU (tiled elementwise pass) --------------------------
    y2 = apply_bn_relu(y2_raw.reshape(n * oh * ow, c2p), scale2, shift2,
                       vmem_limit)
    y2 = y2.reshape(n, oh, ow, c2p)[..., :cout2]
    return jnp.transpose(y2, (0, 3, 1, 2))                        # back to NCHW


# ----------------------------------------------------------------------------
# Pure-JAX reference (full PyTorch semantics incl. conv bias, training-mode BN).
# ----------------------------------------------------------------------------
def ref_encoder_block(x_nchw, params):
    x = jnp.transpose(x_nchw, (0, 2, 3, 1))

    def conv(x, w, b, stride):
        w_hwio = jnp.transpose(w, (2, 3, 1, 0))
        y = jax.lax.conv_general_dilated(
            x, w_hwio, (stride, stride), ((1, 1), (1, 1)),
            dimension_numbers=("NHWC", "HWIO", "NHWC"),
            precision=jax.lax.Precision.HIGHEST)
        return y + b.reshape(1, 1, 1, -1)

    def bn_relu(y, g, be):
        mean = jnp.mean(y, axis=(0, 1, 2), keepdims=True)
        var = jnp.mean(jnp.square(y - mean), axis=(0, 1, 2), keepdims=True)
        yh = (y - mean) * jax.lax.rsqrt(var + BN_EPS)
        return jnp.maximum(yh * g.reshape(1, 1, 1, -1) + be.reshape(1, 1, 1, -1), 0.0)

    y = bn_relu(conv(x, params["w1"], params["b1"][0], 2), params["g1"][0], params["be1"][0])
    y = bn_relu(conv(y, params["w2"], params["b2"][0], 1), params["g2"][0], params["be2"][0])
    return jnp.transpose(y, (0, 3, 1, 2))


def make_params(key, in_channels, out_channels):
    ks = jax.random.split(key, 8)
    f32 = jnp.float32
    return {
        "w1": 0.1 * jax.random.normal(ks[0], (out_channels, in_channels, 3, 3), f32),
        "b1": 0.1 * jax.random.normal(ks[1], (1, out_channels), f32),
        "g1": 1.0 + 0.1 * jax.random.normal(ks[2], (1, out_channels), f32),
        "be1": 0.1 * jax.random.normal(ks[3], (1, out_channels), f32),
        "w2": 0.1 * jax.random.normal(ks[4], (out_channels, out_channels, 3, 3), f32),
        "b2": 0.1 * jax.random.normal(ks[5], (1, out_channels), f32),
        "g2": 1.0 + 0.1 * jax.random.normal(ks[6], (1, out_channels), f32),
        "be2": 0.1 * jax.random.normal(ks[7], (1, out_channels), f32),
    }


if __name__ == "__main__":
    key = jax.random.PRNGKey(0)
    k_x, k_p = jax.random.split(key)

    N, C_IN, C_OUT, H, W = 2, 4, 8, 16, 16
    x = jax.random.normal(k_x, (N, C_IN, H, W), jnp.float32)  # NCHW, like PyTorch
    params = make_params(k_p, C_IN, C_OUT)

    out = jax.block_until_ready(jax.jit(encoder_block)(x, params))
    assert out.shape == (N, C_OUT, H // 2, W // 2), out.shape

    ref = jax.block_until_ready(ref_encoder_block(x, params))
    # bf16 MXU operands (per perf feedback) vs. an f32 reference: tolerance is
    # intentionally relaxed from the previous 5e-4 to 5e-2 (expected ~1e-2).
    err = float(jnp.max(jnp.abs(out - ref)))
    assert jnp.allclose(out, ref, atol=5e-2, rtol=5e-2), f"max abs err {err}"

    print("KERNEL_OK")
</pallas_src>

<mosaic_0001>
module attributes {stable_mosaic.version = 11 : i64} {
  func.func @kernel(%arg0: i32, %arg1: i32, %arg2: memref<1x9x9x16xbf16, #tpu.memory_space<vmem>>, %arg3: memref<48x8xbf16, #tpu.memory_space<vmem>>, %arg4: memref<1x8x8x8xf32, #tpu.memory_space<vmem>>, %arg5: memref<1x1x2x8xf32, #tpu.memory_space<vmem>>, %arg6: memref<8x8x48xbf16, #tpu.memory_space<vmem>>) attributes {dimension_semantics = [#tpu.dimension_semantics<parallel>, #tpu.dimension_semantics<parallel>], iteration_bounds = array<i64: 2, 1>, scalar_prefetch = 0 : i64, scratch_operands = 1 : i64, tpu.core_type = #tpu.core_type<tc>, window_params = [{transform_indices = @transform_0, window_bounds = array<i64: 1, 9, 9, 16>}, {pipeline_mode = #tpu.pipeline_mode<synchronous>, transform_indices = @transform_1, window_bounds = array<i64: 48, 8>}, {transform_indices = @transform_2, window_bounds = array<i64: 1, 8, 8, 8>}, {transform_indices = @transform_3, window_bounds = array<i64: 1, 1, 2, 8>}]} {
    %c8_i32 = arith.constant 8 : i32
    %0 = arith.muli %arg1, %c8_i32 : i32
    %c0_i32 = arith.constant 0 : i32
    %1 = arith.addi %0, %c0_i32 : i32
    %c0 = arith.constant 0 : index
    %2 = arith.index_cast %1 : i32 to index
    %c0_0 = arith.constant 0 : index
    %c0_1 = arith.constant 0 : index
    %3 = vector.load %arg2[%c0, %2, %c0_0, %c0_1] : memref<1x9x9x16xbf16, #tpu.memory_space<vmem>>, vector<1x8x8x4xbf16>
    %4 = vector.shape_cast %3 : vector<1x8x8x4xbf16> to vector<8x8x4xbf16>
    %c0_2 = arith.constant 0 : index
    %c0_3 = arith.constant 0 : index
    %c0_4 = arith.constant 0 : index
    %5 = vector.load %arg6[%c0_2, %c0_3, %c0_4] : memref<8x8x48xbf16, #tpu.memory_space<vmem>>, vector<8x8x4xbf16>
    tpu.vector_store %arg6[%c0_2, %c0_3, %c0_4], %4 {strides = array<i32>} : memref<8x8x48xbf16, #tpu.memory_space<vmem>>, vector<8x8x4xbf16>,
    %c0_i32_5 = arith.constant 0 : i32
    %6 = arith.addi %0, %c0_i32_5 : i32
    %c0_6 = arith.constant 0 : index
    %7 = arith.index_cast %6 : i32 to index
    %c0_7 = arith.constant 0 : index
    %c4 = arith.constant 4 : index
    %8 = vector.load %arg2[%c0_6, %7, %c0_7, %c4] : memref<1x9x9x16xbf16, #tpu.memory_space<vmem>>, vector<1x8x8x4xbf16>
    %9 = vector.shape_cast %8 : vector<1x8x8x4xbf16> to vector<8x8x4xbf16>
    %c0_8 = arith.constant 0 : index
    %c0_9 = arith.constant 0 : index
    %c4_10 = arith.constant 4 : index
    %10 = vector.load %arg6[%c0_8, %c0_9, %c4_10] : memref<8x8x48xbf16, #tpu.memory_space<vmem>>, vector<8x8x4xbf16>
    tpu.vector_store %arg6[%c0_8, %c0_9, %c4_10], %9 {strides = array<i32>} : memref<8x8x48xbf16, #tpu.memory_space<vmem>>, vector<8x8x4xbf16>,
    %c0_i32_11 = arith.constant 0 : i32
    %11 = arith.addi %0, %c0_i32_11 : i32
    %c0_12 = arith.constant 0 : index
    %12 = arith.index_cast %11 : i32 to index
    %c1 = arith.constant 1 : index
    %c0_13 = arith.constant 0 : index
    %13 = vector.load %arg2[%c0_12, %12, %c1, %c0_13] : memref<1x9x9x16xbf16, #tpu.memory_space<vmem>>, vector<1x8x8x4xbf16>
    %14 = vector.shape_cast %13 : vector<1x8x8x4xbf16> to vector<8x8x4xbf16>
    %c0_14 = arith.constant 0 : index
    %c0_15 = arith.constant 0 : index
    %c8 = arith.constant 8 : index
    %15 = vector.load %arg6[%c0_14, %c0_15, %c8] : memref<8x8x48xbf16, #tpu.memory_space<vmem>>, vector<8x8x4xbf16>
    tpu.vector_store %arg6[%c0_14, %c0_15, %c8], %14 {strides = array<i32>} : memref<8x8x48xbf16, #tpu.memory_space<vmem>>, vector<8x8x4xbf16>,
    %c0_i32_16 = arith.constant 0 : i32
    %16 = arith.addi %0, %c0_i32_16 : i32
    %c0_17 = arith.constant 0 : index
    %17 = arith.index_cast %16 : i32 to index
    %c0_18 = arith.constant 0 : index
    %c8_19 = arith.constant 8 : index
    %18 = vector.load %arg2[%c0_17, %17, %c0_18, %c8_19] : memref<1x9x9x16xbf16, #tpu.memory_space<vmem>>, vector<1x8x8x4xbf16>
    %19 = vector.shape_cast %18 : vector<1x8x8x4xbf16> to vector<8x8x4xbf16>
    %c0_20 = arith.constant 0 : index
    %c0_21 = arith.constant 0 : index
    %c12 = arith.constant 12 : index
    %20 = vector.load %arg6[%c0_20, %c0_21, %c12] : memref<8x8x48xbf16, #tpu.memory_space<vmem>>, vector<8x8x4xbf16>
    tpu.vector_store %arg6[%c0_20, %c0_21, %c12], %19 {strides = array<i32>} : memref<8x8x48xbf16, #tpu.memory_space<vmem>>, vector<8x8x4xbf16>,
    %c0_i32_22 = arith.constant 0 : i32
    %21 = arith.addi %0, %c0_i32_22 : i32
    %c0_23 = arith.constant 0 : index
    %22 = arith.index_cast %21 : i32 to index
    %c0_24 = arith.constant 0 : index
    %c12_25 = arith.constant 12 : index
    %23 = vector.load %arg2[%c0_23, %22, %c0_24, %c12_25] : memref<1x9x9x16xbf16, #tpu.memory_space<vmem>>, vector<1x8x8x4xbf16>
    %24 = vector.shape_cast %23 : vector<1x8x8x4xbf16> to vector<8x8x4xbf16>
    %c0_26 = arith.constant 0 : index
    %c0_27 = arith.constant 0 : index
    %c16 = arith.constant 16 : index
    %25 = vector.load %arg6[%c0_26, %c0_27, %c16] : memref<8x8x48xbf16, #tpu.memory_space<vmem>>, vector<8x8x4xbf16>
    tpu.vector_store %arg6[%c0_26, %c0_27, %c16], %24 {strides = array<i32>} : memref<8x8x48xbf16, #tpu.memory_space<vmem>>, vector<8x8x4xbf16>,
    %c0_i32_28 = arith.constant 0 : i32
    %26 = arith.addi %0, %c0_i32_28 : i32
    %c0_29 = arith.constant 0 : index
    %27 = arith.index_cast %26 : i32 to index
    %c1_30 = arith.constant 1 : index
    %c8_31 = arith.constant 8 : index
    %28 = vector.load %arg2[%c0_29, %27, %c1_30, %c8_31] : memref<1x9x9x16xbf16, #tpu.memory_space<vmem>>, vector<1x8x8x4xbf16>
    %29 = vector.shape_cast %28 : vector<1x8x8x4xbf16> to vector<8x8x4xbf16>
    %c0_32 = arith.constant 0 : index
    %c0_33 = arith.constant 0 : index
    %c20 = arith.constant 20 : index
    %30 = vector.load %arg6[%c0_32, %c0_33, %c20] : memref<8x8x48xbf16, #tpu.memory_space<vmem>>, vector<8x8x4xbf16>
    tpu.vector_store %arg6[%c0_32, %c0_33, %c20], %29 {strides = array<i32>} : memref<8x8x48xbf16, #tpu.memory_space<vmem>>, vector<8x8x4xbf16>,
    %c1_i32 = arith.constant 1 : i32
    %31 = arith.addi %0, %c1_i32 : i32
    %c0_34 = arith.constant 0 : index
    %32 = arith.index_cast %31 : i32 to index
    %c0_35 = arith.constant 0 : index
    %c0_36 = arith.constant 0 : index
    %33 = vector.load %arg2[%c0_34, %32, %c0_35, %c0_36] : memref<1x9x9x16xbf16, #tpu.memory_space<vmem>>, vector<1x8x8x4xbf16>
    %34 = vector.shape_cast %33 : vector<1x8x8x4xbf16> to vector<8x8x4xbf16>
    %c0_37 = arith.constant 0 : index
    %c0_38 = arith.constant 0 : index
    %c24 = arith.constant 24 : index
    %35 = vector.load %arg6[%c0_37, %c0_38, %c24] : memref<8x8x48xbf16, #tpu.memory_space<vmem>>, vector<8x8x4xbf16>
    tpu.vector_store %arg6[%c0_37, %c0_38, %c24], %34 {strides = array<i32>} : memref<8x8x48xbf16, #tpu.memory_space<vmem>>, vector<8x8x4xbf16>,
    %c1_i32_39 = arith.constant 1 : i32
    %36 = arith.addi %0, %c1_i32_39 : i32
    %c0_40 = arith.constant 0 : index
    %37 = arith.index_cast %36 : i32 to index
    %c0_41 = arith.constant 0 : index
    %c4_42 = arith.constant 4 : index
    %38 = vector.load %arg2[%c0_40, %37, %c0_41, %c4_42] : memref<1x9x9x16xbf16, #tpu.memory_space<vmem>>, vector<1x8x8x4xbf16>
    %39 = vector.shape_cast %38 : vector<1x8x8x4xbf16> to vector<8x8x4xbf16>
    %c0_43 = arith.constant 0 : index
    %c0_44 = arith.constant 0 : index
    %c28 = arith.constant 28 : index
    %40 = vector.load %arg6[%c0_43, %c0_44, %c28] : memref<8x8x48xbf16, #tpu.memory_space<vmem>>, vector<8x8x4xbf16>
    tpu.vector_store %arg6[%c0_43, %c0_44, %c28], %39 {strides = array<i32>} : memref<8x8x48xbf16, #tpu.memory_space<vmem>>, vector<8x8x4xbf16>,
    %c1_i32_45 = arith.constant 1 : i32
    %41 = arith.addi %0, %c1_i32_45 : i32
    %c0_46 = arith.constant 0 : index
    %42 = arith.index_cast %41 : i32 to index
    %c1_47 = arith.constant 1 : index
    %c0_48 = arith.constant 0 : index
    %43 = vector.load %arg2[%c0_46, %42, %c1_47, %c0_48] : memref<1x9x9x16xbf16, #tpu.memory_space<vmem>>, vector<1x8x8x4xbf16>
    %44 = vector.shape_cast %43 : vector<1x8x8x4xbf16> to vector<8x8x4xbf16>
    %c0_49 = arith.constant 0 : index
    %c0_50 = arith.constant 0 : index
    %c32 = arith.constant 32 : index
    %45 = vector.load %arg6[%c0_49, %c0_50, %c32] : memref<8x8x48xbf16, #tpu.memory_space<vmem>>, vector<8x8x4xbf16>
    tpu.vector_store %arg6[%c0_49, %c0_50, %c32], %44 {strides = array<i32>} : memref<8x8x48xbf16, #tpu.memory_space<vmem>>, vector<8x8x4xbf16>,
    %cst = arith.constant 0.000000e+00 : bf16
    %46 = vector.broadcast %cst : bf16 to vector<8x8x12xbf16>
    %c0_51 = arith.constant 0 : index
    %c0_52 = arith.constant 0 : index
    %c36 = arith.constant 36 : index
    %47 = vector.load %arg6[%c0_51, %c0_52, %c36] : memref<8x8x48xbf16, #tpu.memory_space<vmem>>, vector<8x8x12xbf16>
    tpu.vector_store %arg6[%c0_51, %c0_52, %c36], %46 {strides = array<i32>} : memref<8x8x48xbf16, #tpu.memory_space<vmem>>, vector<8x8x12xbf16>,
    %c0_53 = arith.constant 0 : index
    %c0_54 = arith.constant 0 : index
    %c0_55 = arith.constant 0 : index
    %48 = vector.load %arg6[%c0_53, %c0_54, %c0_55] : memref<8x8x48xbf16, #tpu.memory_space<vmem>>, vector<8x8x48xbf16>
    %49 = vector.shape_cast %48 : vector<8x8x48xbf16> to vector<64x48xbf16>
    %c0_56 = arith.constant 0 : index
    %c0_57 = arith.constant 0 : index
    %50 = vector.load %arg3[%c0_56, %c0_57] : memref<48x8xbf16, #tpu.memory_space<vmem>>, vector<48x8xbf16>
    %cst_58 = arith.constant dense<0.000000e+00> : vector<64x8xf32>
    %51 = tpu.matmul %49, %50, %cst_58 {dimension_numbers = #tpu.dot_dimension_numbers<[1], [0], [0], [1], [0, 0, 1, 1], [], []>} : vector<64x48xbf16>, vector<48x8xbf16>, vector<64x8xf32> -> vector<64x8xf32>
    %52 = vector.shape_cast %51 : vector<64x8xf32> to vector<1x8x8x8xf32>
    %c0_59 = arith.constant 0 : index
    %c0_60 = arith.constant 0 : index
    %c0_61 = arith.constant 0 : index
    %c0_62 = arith.constant 0 : index
    %53 = vector.load %arg4[%c0_59, %c0_60, %c0_61, %c0_62] : memref<1x8x8x8xf32, #tpu.memory_space<vmem>>, vector<1x8x8x8xf32>
    tpu.vector_store %arg4[%c0_59, %c0_60, %c0_61, %c0_62], %52 {strides = array<i32>} : memref<1x8x8x8xf32, #tpu.memory_space<vmem>>, vector<1x8x8x8xf32>,
    %cst_63 = arith.constant dense<0.000000e+00> : vector<8xf32>
    %54 = vector.multi_reduction <add>, %51, %cst_63 [0] : vector<64x8xf32> to vector<8xf32>
    %55 = vector.shape_cast %54 : vector<8xf32> to vector<1x8xf32>
    %56 = arith.mulf %51, %51 : vector<64x8xf32>
    %cst_64 = arith.constant dense<0.000000e+00> : vector<8xf32>
    %57 = vector.multi_reduction <add>, %56, %cst_64 [0] : vector<64x8xf32> to vector<8xf32>
    %58 = vector.shape_cast %57 : vector<8xf32> to vector<1x8xf32>
    %59 = tpu.concatenate %55, %58 in 0 : vector<1x8xf32>, vector<1x8xf32> -> vector<2x8xf32>
    %60 = vector.shape_cast %59 : vector<2x8xf32> to vector<1x1x2x8xf32>
    %c0_65 = arith.constant 0 : index
    %c0_66 = arith.constant 0 : index
    %c0_67 = arith.constant 0 : index
    %c0_68 = arith.constant 0 : index
    %61 = vector.load %arg5[%c0_65, %c0_66, %c0_67, %c0_68] : memref<1x1x2x8xf32, #tpu.memory_space<vmem>>, vector<1x1x2x8xf32>
    tpu.vector_store %arg5[%c0_65, %c0_66, %c0_67, %c0_68], %60 {strides = array<i32>} : memref<1x1x2x8xf32, #tpu.memory_space<vmem>>, vector<1x1x2x8xf32>,
    return
  }
  func.func @transform_0(%arg0: i32, %arg1: i32) -> (i32, i32, i32, i32) {
    %c0_i32 = arith.constant 0 : i32
    %c0_i32_0 = arith.constant 0 : i32
    %c0_i32_1 = arith.constant 0 : i32
    %c0_i32_2 = arith.constant 0 : i32
    return %arg0, %c0_i32, %c0_i32_0, %c0_i32_1 : i32, i32, i32, i32
  }
  func.func @transform_1(%arg0: i32, %arg1: i32) -> (i32, i32) {
    %c0_i32 = arith.constant 0 : i32
    %c0_i32_0 = arith.constant 0 : i32
    %c0_i32_1 = arith.constant 0 : i32
    return %c0_i32, %c0_i32_0 : i32, i32
  }
  func.func @transform_2(%arg0: i32, %arg1: i32) -> (i32, i32, i32, i32) {
    %c0_i32 = arith.constant 0 : i32
    %c0_i32_0 = arith.constant 0 : i32
    %c0_i32_1 = arith.constant 0 : i32
    return %arg0, %arg1, %c0_i32, %c0_i32_0 : i32, i32, i32, i32
  }
  func.func @transform_3(%arg0: i32, %arg1: i32) -> (i32, i32, i32, i32) {
    %c0_i32 = arith.constant 0 : i32
    %c0_i32_0 = arith.constant 0 : i32
    %c0_i32_1 = arith.constant 0 : i32
    return %arg0, %arg1, %c0_i32, %c0_i32_0 : i32, i32, i32, i32
  }
}

module attributes {stable_mosaic.version = 11 : i64} {
  func.func @_apply_bn_relu_kernel(%arg0: i32, %arg1: memref<128x8xf32, #tpu.memory_space<vmem>>, %arg2: memref<1x8xf32, #tpu.memory_space<vmem>>, %arg3: memref<1x8xf32, #tpu.memory_space<vmem>>, %arg4: memref<128x8xf32, #tpu.memory_space<vmem>>) attributes {dimension_semantics = [#tpu.dimension_semantics<parallel>], iteration_bounds = array<i64: 1>, scalar_prefetch = 0 : i64, scratch_operands = 0 : i64, tpu.core_type = #tpu.core_type<tc>, window_params = [{transform_indices = @transform_0, window_bounds = array<i64: 128, 8>}, {pipeline_mode = #tpu.pipeline_mode<synchronous>, transform_indices = @transform_1, window_bounds = array<i64: 1, 8>}, {pipeline_mode = #tpu.pipeline_mode<synchronous>, transform_indices = @transform_2, window_bounds = array<i64: 1, 8>}, {transform_indices = @transform_3, window_bounds = array<i64: 128, 8>}]} {
    %c0 = arith.constant 0 : index
    %c0_0 = arith.constant 0 : index
    %0 = vector.load %arg1[%c0, %c0_0] : memref<128x8xf32, #tpu.memory_space<vmem>>, vector<128x8xf32>
    %c0_1 = arith.constant 0 : index
    %c0_2 = arith.constant 0 : index
    %1 = vector.load %arg2[%c0_1, %c0_2] : memref<1x8xf32, #tpu.memory_space<vmem>>, vector<1x8xf32>
    %2 = vector.broadcast %1 : vector<1x8xf32> to vector<128x8xf32>
    %3 = arith.mulf %0, %2 : vector<128x8xf32>
    %c0_3 = arith.constant 0 : index
    %c0_4 = arith.constant 0 : index
    %4 = vector.load %arg3[%c0_3, %c0_4] : memref<1x8xf32, #tpu.memory_space<vmem>>, vector<1x8xf32>
    %5 = vector.broadcast %4 : vector<1x8xf32> to vector<128x8xf32>
    %6 = arith.addf %3, %5 : vector<128x8xf32>
    %cst = arith.constant 0.000000e+00 : f32
    %7 = vector.broadcast %cst : f32 to vector<128x8xf32>
    %8 = arith.maximumf %6, %7 : vector<128x8xf32>
    %c0_5 = arith.constant 0 : index
    %c0_6 = arith.constant 0 : index
    %9 = vector.load %arg4[%c0_5, %c0_6] : memref<128x8xf32, #tpu.memory_space<vmem>>, vector<128x8xf32>
    tpu.vector_store %arg4[%c0_5, %c0_6], %8 {strides = array<i32>} : memref<128x8xf32, #tpu.memory_space<vmem>>, vector<128x8xf32>,
    return
  }
  func.func @transform_0(%arg0: i32) -> (i32, i32) {
    %c0_i32 = arith.constant 0 : i32
    %c0_i32_0 = arith.constant 0 : i32
    return %arg0, %c0_i32 : i32, i32
  }
  func.func @transform_1(%arg0: i32) -> (i32, i32) {
    %c0_i32 = arith.constant 0 : i32
    %c0_i32_0 = arith.constant 0 : i32
    %c0_i32_1 = arith.constant 0 : i32
    return %c0_i32, %c0_i32_0 : i32, i32
  }
  func.func @transform_2(%arg0: i32) -> (i32, i32) {
    %c0_i32 = arith.constant 0 : i32
    %c0_i32_0 = arith.constant 0 : i32
    %c0_i32_1 = arith.constant 0 : i32
    return %c0_i32, %c0_i32_0 : i32, i32
  }
  func.func @transform_3(%arg0: i32) -> (i32, i32) {
    %c0_i32 = arith.constant 0 : i32
    %c0_i32_0 = arith.constant 0 : i32
    return %arg0, %c0_i32 : i32, i32
  }
}

module attributes {stable_mosaic.version = 11 : i64} {
  func.func @kernel(%arg0: i32, %arg1: i32, %arg2: memref<1x8x8x8xf32, #tpu.memory_space<vmem>>, %arg3: memref<1x8xf32, #tpu.memory_space<vmem>>, %arg4: memref<1x8xf32, #tpu.memory_space<vmem>>, %arg5: memref<80x8xbf16, #tpu.memory_space<vmem>>, %arg6: memref<1x8x8x8xf32, #tpu.memory_space<vmem>>, %arg7: memref<1x1x2x8xf32, #tpu.memory_space<vmem>>, %arg8: memref<10x10x8xbf16, #tpu.memory_space<vmem>>, %arg9: memref<8x8x80xbf16, #tpu.memory_space<vmem>>) attributes {dimension_semantics = [#tpu.dimension_semantics<parallel>, #tpu.dimension_semantics<arbitrary>], iteration_bounds = array<i64: 2, 1>, scalar_prefetch = 0 : i64, scratch_operands = 2 : i64, tpu.core_type = #tpu.core_type<tc>, window_params = [{transform_indices = @transform_0, window_bounds = array<i64: 1, 8, 8, 8>}, {pipeline_mode = #tpu.pipeline_mode<synchronous>, transform_indices = @transform_1, window_bounds = array<i64: 1, 8>}, {pipeline_mode = #tpu.pipeline_mode<synchronous>, transform_indices = @transform_2, window_bounds = array<i64: 1, 8>}, {pipeline_mode = #tpu.pipeline_mode<synchronous>, transform_indices = @transform_3, window_bounds = array<i64: 80, 8>}, {transform_indices = @transform_4, window_bounds = array<i64: 1, 8, 8, 8>}, {transform_indices = @transform_5, window_bounds = array<i64: 1, 1, 2, 8>}]} {
    %c0_i32 = arith.constant 0 : i32
    %0 = arith.cmpi eq, %arg1, %c0_i32 : i32
    %1 = arith.extui %0 : i1 to i32
    %c0_i32_0 = arith.constant 0 : i32
    %2 = arith.cmpi ne, %1, %c0_i32_0 : i32
    scf.if %2 {
      %cst_60 = arith.constant 0.000000e+00 : bf16
      %56 = vector.broadcast %cst_60 : bf16 to vector<10x10x8xbf16>
      %c0_61 = arith.constant 0 : index
      %c0_62 = arith.constant 0 : index
      %c0_63 = arith.constant 0 : index
      %57 = vector.load %arg8[%c0_61, %c0_62, %c0_63] : memref<10x10x8xbf16, #tpu.memory_space<vmem>>, vector<10x10x8xbf16>
      tpu.vector_store %arg8[%c0_61, %c0_62, %c0_63], %56 {strides = array<i32>} : memref<10x10x8xbf16, #tpu.memory_space<vmem>>, vector<10x10x8xbf16>,
      %c0_64 = arith.constant 0 : index
      %c0_65 = arith.constant 0 : index
      %c0_66 = arith.constant 0 : index
      %c0_67 = arith.constant 0 : index
      %58 = vector.load %arg2[%c0_64, %c0_65, %c0_66, %c0_67] : memref<1x8x8x8xf32, #tpu.memory_space<vmem>>, vector<1x8x8x8xf32>
      %59 = vector.shape_cast %58 : vector<1x8x8x8xf32> to vector<8x8x8xf32>
      %c0_68 = arith.constant 0 : index
      %c0_69 = arith.constant 0 : index
      %60 = vector.load %arg3[%c0_68, %c0_69] : memref<1x8xf32, #tpu.memory_space<vmem>>, vector<1x8xf32>
      %61 = vector.shape_cast %60 : vector<1x8xf32> to vector<1x1x8xf32>
      %62 = vector.broadcast %61 : vector<1x1x8xf32> to vector<8x8x8xf32>
      %63 = arith.mulf %59, %62 : vector<8x8x8xf32>
      %c0_70 = arith.constant 0 : index
      %c0_71 = arith.constant 0 : index
      %64 = vector.load %arg4[%c0_70, %c0_71] : memref<1x8xf32, #tpu.memory_space<vmem>>, vector<1x8xf32>
      %65 = vector.shape_cast %64 : vector<1x8xf32> to vector<1x1x8xf32>
      %66 = vector.broadcast %65 : vector<1x1x8xf32> to vector<8x8x8xf32>
      %67 = arith.addf %63, %66 : vector<8x8x8xf32>
      %cst_72 = arith.constant 0.000000e+00 : f32
      %68 = vector.broadcast %cst_72 : f32 to vector<8x8x8xf32>
      %69 = arith.maximumf %67, %68 : vector<8x8x8xf32>
      %70 = arith.truncf %69 : vector<8x8x8xf32> to vector<8x8x8xbf16>
      %c1_73 = arith.constant 1 : index
      %c1_74 = arith.constant 1 : index
      %c0_75 = arith.constant 0 : index
      %71 = vector.load %arg8[%c1_73, %c1_74, %c0_75] : memref<10x10x8xbf16, #tpu.memory_space<vmem>>, vector<8x8x8xbf16>
      tpu.vector_store %arg8[%c1_73, %c1_74, %c0_75], %70 {strides = array<i32>} : memref<10x10x8xbf16, #tpu.memory_space<vmem>>, vector<8x8x8xbf16>,
    } else {
    }
    %c8_i32 = arith.constant 8 : i32
    %3 = arith.muli %arg1, %c8_i32 : i32
    %c0_i32_1 = arith.constant 0 : i32
    %4 = arith.addi %3, %c0_i32_1 : i32
    %5 = arith.index_cast %4 : i32 to index
    %c0 = arith.constant 0 : index
    %c0_2 = arith.constant 0 : index
    %6 = vector.load %arg8[%5, %c0, %c0_2] : memref<10x10x8xbf16, #tpu.memory_space<vmem>>, vector<8x8x8xbf16>
    %c0_3 = arith.constant 0 : index
    %c0_4 = arith.constant 0 : index
    %c0_5 = arith.constant 0 : index
    %7 = vector.load %arg9[%c0_3, %c0_4, %c0_5] : memref<8x8x80xbf16, #tpu.memory_space<vmem>>, vector<8x8x8xbf16>
    tpu.vector_store %arg9[%c0_3, %c0_4, %c0_5], %6 {strides = array<i32>} : memref<8x8x80xbf16, #tpu.memory_space<vmem>>, vector<8x8x8xbf16>,
    %c0_i32_6 = arith.constant 0 : i32
    %8 = arith.addi %3, %c0_i32_6 : i32
    %9 = arith.index_cast %8 : i32 to index
    %c1 = arith.constant 1 : index
    %c0_7 = arith.constant 0 : index
    %10 = vector.load %arg8[%9, %c1, %c0_7] : memref<10x10x8xbf16, #tpu.memory_space<vmem>>, vector<8x8x8xbf16>
    %c0_8 = arith.constant 0 : index
    %c0_9 = arith.constant 0 : index
    %c8 = arith.constant 8 : index
    %11 = vector.load %arg9[%c0_8, %c0_9, %c8] : memref<8x8x80xbf16, #tpu.memory_space<vmem>>, vector<8x8x8xbf16>
    tpu.vector_store %arg9[%c0_8, %c0_9, %c8], %10 {strides = array<i32>} : memref<8x8x80xbf16, #tpu.memory_space<vmem>>, vector<8x8x8xbf16>,
    %c0_i32_10 = arith.constant 0 : i32
    %12 = arith.addi %3, %c0_i32_10 : i32
    %13 = arith.index_cast %12 : i32 to index
    %c2 = arith.constant 2 : index
    %c0_11 = arith.constant 0 : index
    %14 = vector.load %arg8[%13, %c2, %c0_11] : memref<10x10x8xbf16, #tpu.memory_space<vmem>>, vector<8x8x8xbf16>
    %c0_12 = arith.constant 0 : index
    %c0_13 = arith.constant 0 : index
    %c16 = arith.constant 16 : index
    %15 = vector.load %arg9[%c0_12, %c0_13, %c16] : memref<8x8x80xbf16, #tpu.memory_space<vmem>>, vector<8x8x8xbf16>
    tpu.vector_store %arg9[%c0_12, %c0_13, %c16], %14 {strides = array<i32>} : memref<8x8x80xbf16, #tpu.memory_space<vmem>>, vector<8x8x8xbf16>,
    %c1_i32 = arith.constant 1 : i32
    %16 = arith.addi %3, %c1_i32 : i32
    %17 = arith.index_cast %16 : i32 to index
    %c0_14 = arith.constant 0 : index
    %c0_15 = arith.constant 0 : index
    %18 = vector.load %arg8[%17, %c0_14, %c0_15] : memref<10x10x8xbf16, #tpu.memory_space<vmem>>, vector<8x8x8xbf16>
    %c0_16 = arith.constant 0 : index
    %c0_17 = arith.constant 0 : index
    %c24 = arith.constant 24 : index
    %19 = vector.load %arg9[%c0_16, %c0_17, %c24] : memref<8x8x80xbf16, #tpu.memory_space<vmem>>, vector<8x8x8xbf16>
    tpu.vector_store %arg9[%c0_16, %c0_17, %c24], %18 {strides = array<i32>} : memref<8x8x80xbf16, #tpu.memory_space<vmem>>, vector<8x8x8xbf16>,
    %c1_i32_18 = arith.constant 1 : i32
    %20 = arith.addi %3, %c1_i32_18 : i32
    %21 = arith.index_cast %20 : i32 to index
    %c1_19 = arith.constant 1 : index
    %c0_20 = arith.constant 0 : index
    %22 = vector.load %arg8[%21, %c1_19, %c0_20] : memref<10x10x8xbf16, #tpu.memory_space<vmem>>, vector<8x8x8xbf16>
    %c0_21 = arith.constant 0 : index
    %c0_22 = arith.constant 0 : index
    %c32 = arith.constant 32 : index
    %23 = vector.load %arg9[%c0_21, %c0_22, %c32] : memref<8x8x80xbf16, #tpu.memory_space<vmem>>, vector<8x8x8xbf16>
    tpu.vector_store %arg9[%c0_21, %c0_22, %c32], %22 {strides = array<i32>} : memref<8x8x80xbf16, #tpu.memory_space<vmem>>, vector<8x8x8xbf16>,
    %c1_i32_23 = arith.constant 1 : i32
    %24 = arith.addi %3, %c1_i32_23 : i32
    %25 = arith.index_cast %24 : i32 to index
    %c2_24 = arith.constant 2 : index
    %c0_25 = arith.constant 0 : index
    %26 = vector.load %arg8[%25, %c2_24, %c0_25] : memref<10x10x8xbf16, #tpu.memory_space<vmem>>, vector<8x8x8xbf16>
    %c0_26 = arith.constant 0 : index
    %c0_27 = arith.constant 0 : index
    %c40 = arith.constant 40 : index
    %27 = vector.load %arg9[%c0_26, %c0_27, %c40] : memref<8x8x80xbf16, #tpu.memory_space<vmem>>, vector<8x8x8xbf16>
    tpu.vector_store %arg9[%c0_26, %c0_27, %c40], %26 {strides = array<i32>} : memref<8x8x80xbf16, #tpu.memory_space<vmem>>, vector<8x8x8xbf16>,
    %c2_i32 = arith.constant 2 : i32
    %28 = arith.addi %3, %c2_i32 : i32
    %29 = arith.index_cast %28 : i32 to index
    %c0_28 = arith.constant 0 : index
    %c0_29 = arith.constant 0 : index
    %30 = vector.load %arg8[%29, %c0_28, %c0_29] : memref<10x10x8xbf16, #tpu.memory_space<vmem>>, vector<8x8x8xbf16>
    %c0_30 = arith.constant 0 : index
    %c0_31 = arith.constant 0 : index
    %c48 = arith.constant 48 : index
    %31 = vector.load %arg9[%c0_30, %c0_31, %c48] : memref<8x8x80xbf16, #tpu.memory_space<vmem>>, vector<8x8x8xbf16>
    tpu.vector_store %arg9[%c0_30, %c0_31, %c48], %30 {strides = array<i32>} : memref<8x8x80xbf16, #tpu.memory_space<vmem>>, vector<8x8x8xbf16>,
    %c2_i32_32 = arith.constant 2 : i32
    %32 = arith.addi %3, %c2_i32_32 : i32
    %33 = arith.index_cast %32 : i32 to index
    %c1_33 = arith.constant 1 : index
    %c0_34 = arith.constant 0 : index
    %34 = vector.load %arg8[%33, %c1_33, %c0_34] : memref<10x10x8xbf16, #tpu.memory_space<vmem>>, vector<8x8x8xbf16>
    %c0_35 = arith.constant 0 : index
    %c0_36 = arith.constant 0 : index
    %c56 = arith.constant 56 : index
    %35 = vector.load %arg9[%c0_35, %c0_36, %c56] : memref<8x8x80xbf16, #tpu.memory_space<vmem>>, vector<8x8x8xbf16>
    tpu.vector_store %arg9[%c0_35, %c0_36, %c56], %34 {strides = array<i32>} : memref<8x8x80xbf16, #tpu.memory_space<vmem>>, vector<8x8x8xbf16>,
    %c2_i32_37 = arith.constant 2 : i32
    %36 = arith.addi %3, %c2_i32_37 : i32
    %37 = arith.index_cast %36 : i32 to index
    %c2_38 = arith.constant 2 : index
    %c0_39 = arith.constant 0 : index
    %38 = vector.load %arg8[%37, %c2_38, %c0_39] : memref<10x10x8xbf16, #tpu.memory_space<vmem>>, vector<8x8x8xbf16>
    %c0_40 = arith.constant 0 : index
    %c0_41 = arith.constant 0 : index
    %c64 = arith.constant 64 : index
    %39 = vector.load %arg9[%c0_40, %c0_41, %c64] : memref<8x8x80xbf16, #tpu.memory_space<vmem>>, vector<8x8x8xbf16>
    tpu.vector_store %arg9[%c0_40, %c0_41, %c64], %38 {strides = array<i32>} : memref<8x8x80xbf16, #tpu.memory_space<vmem>>, vector<8x8x8xbf16>,
    %cst = arith.constant 0.000000e+00 : bf16
    %40 = vector.broadcast %cst : bf16 to vector<8x8x8xbf16>
    %c0_42 = arith.constant 0 : index
    %c0_43 = arith.constant 0 : index
    %c72 = arith.constant 72 : index
    %41 = vector.load %arg9[%c0_42, %c0_43, %c72] : memref<8x8x80xbf16, #tpu.memory_space<vmem>>, vector<8x8x8xbf16>
    tpu.vector_store %arg9[%c0_42, %c0_43, %c72], %40 {strides = array<i32>} : memref<8x8x80xbf16, #tpu.memory_space<vmem>>, vector<8x8x8xbf16>,
    %c0_44 = arith.constant 0 : index
    %c0_45 = arith.constant 0 : index
    %c0_46 = arith.constant 0 : index
    %42 = vector.load %arg9[%c0_44, %c0_45, %c0_46] : memref<8x8x80xbf16, #tpu.memory_space<vmem>>, vector<8x8x80xbf16>
    %43 = vector.shape_cast %42 : vector<8x8x80xbf16> to vector<64x80xbf16>
    %c0_47 = arith.constant 0 : index
    %c0_48 = arith.constant 0 : index
    %44 = vector.load %arg5[%c0_47, %c0_48] : memref<80x8xbf16, #tpu.memory_space<vmem>>, vector<80x8xbf16>
    %cst_49 = arith.constant dense<0.000000e+00> : vector<64x8xf32>
    %45 = tpu.matmul %43, %44, %cst_49 {dimension_numbers = #tpu.dot_dimension_numbers<[1], [0], [0], [1], [0, 0, 1, 1], [], []>} : vector<64x80xbf16>, vector<80x8xbf16>, vector<64x8xf32> -> vector<64x8xf32>
    %46 = vector.shape_cast %45 : vector<64x8xf32> to vector<1x8x8x8xf32>
    %c0_50 = arith.constant 0 : index
    %c0_51 = arith.constant 0 : index
    %c0_52 = arith.constant 0 : index
    %c0_53 = arith.constant 0 : index
    %47 = vector.load %arg6[%c0_50, %c0_51, %c0_52, %c0_53] : memref<1x8x8x8xf32, #tpu.memory_space<vmem>>, vector<1x8x8x8xf32>
    tpu.vector_store %arg6[%c0_50, %c0_51, %c0_52, %c0_53], %46 {strides = array<i32>} : memref<1x8x8x8xf32, #tpu.memory_space<vmem>>, vector<1x8x8x8xf32>,
    %cst_54 = arith.constant dense<0.000000e+00> : vector<8xf32>
    %48 = vector.multi_reduction <add>, %45, %cst_54 [0] : vector<64x8xf32> to vector<8xf32>
    %49 = vector.shape_cast %48 : vector<8xf32> to vector<1x8xf32>
    %50 = arith.mulf %45, %45 : vector<64x8xf32>
    %cst_55 = arith.constant dense<0.000000e+00> : vector<8xf32>
    %51 = vector.multi_reduction <add>, %50, %cst_55 [0] : vector<64x8xf32> to vector<8xf32>
    %52 = vector.shape_cast %51 : vector<8xf32> to vector<1x8xf32>
    %53 = tpu.concatenate %49, %52 in 0 : vector<1x8xf32>, vector<1x8xf32> -> vector<2x8xf32>
    %54 = vector.shape_cast %53 : vector<2x8xf32> to vector<1x1x2x8xf32>
    %c0_56 = arith.constant 0 : index
    %c0_57 = arith.constant 0 : index
    %c0_58 = arith.constant 0 : index
    %c0_59 = arith.constant 0 : index
    %55 = vector.load %arg7[%c0_56, %c0_57, %c0_58, %c0_59] : memref<1x1x2x8xf32, #tpu.memory_space<vmem>>, vector<1x1x2x8xf32>
    tpu.vector_store %arg7[%c0_56, %c0_57, %c0_58, %c0_59], %54 {strides = array<i32>} : memref<1x1x2x8xf32, #tpu.memory_space<vmem>>, vector<1x1x2x8xf32>,
    return
  }
  func.func @transform_0(%arg0: i32, %arg1: i32) -> (i32, i32, i32, i32) {
    %c0_i32 = arith.constant 0 : i32
    %c0_i32_0 = arith.constant 0 : i32
    %c0_i32_1 = arith.constant 0 : i32
    %c0_i32_2 = arith.constant 0 : i32
    return %arg0, %c0_i32, %c0_i32_0, %c0_i32_1 : i32, i32, i32, i32
  }
  func.func @transform_1(%arg0: i32, %arg1: i32) -> (i32, i32) {
    %c0_i32 = arith.constant 0 : i32
    %c0_i32_0 = arith.constant 0 : i32
    %c0_i32_1 = arith.constant 0 : i32
    return %c0_i32, %c0_i32_0 : i32, i32
  }
  func.func @transform_2(%arg0: i32, %arg1: i32) -> (i32, i32) {
    %c0_i32 = arith.constant 0 : i32
    %c0_i32_0 = arith.constant 0 : i32
    %c0_i32_1 = arith.constant 0 : i32
    return %c0_i32, %c0_i32_0 : i32, i32
  }
  func.func @transform_3(%arg0: i32, %arg1: i32) -> (i32, i32) {
    %c0_i32 = arith.constant 0 : i32
    %c0_i32_0 = arith.constant 0 : i32
    %c0_i32_1 = arith.constant 0 : i32
    return %c0_i32, %c0_i32_0 : i32, i32
  }
  func.func @transform_4(%arg0: i32, %arg1: i32) -> (i32, i32, i32, i32) {
    %c0_i32 = arith.constant 0 : i32
    %c0_i32_0 = arith.constant 0 : i32
    %c0_i32_1 = arith.constant 0 : i32
    return %arg0, %arg1, %c0_i32, %c0_i32_0 : i32, i32, i32, i32
  }
  func.func @transform_5(%arg0: i32, %arg1: i32) -> (i32, i32, i32, i32) {
    %c0_i32 = arith.constant 0 : i32
    %c0_i32_0 = arith.constant 0 : i32
    %c0_i32_1 = arith.constant 0 : i32
    return %arg0, %arg1, %c0_i32, %c0_i32_0 : i32, i32, i32, i32
  }
}

</mosaic_0001>

<bundles_post_ra>
// kernel: encoder_block.5
= control target key start
LH: loop header
LB: loop body
LE: loop exit
PB: predicated region body
PF: predicated region fallthrough
CT: control target
= control target key end

     0   :  { %vm86_vm0 = vcmask 64512   ;;  %s265_s0 = inlined_call_operand.vmem [shape: f32[128,8], index: 0, kind: input, shape index: {}]   ;;  %s266_s1 = inlined_call_operand.vmem [shape: f32[1,8], index: 1, kind: input, shape index: {}]   ;;  %s267_s2 = inlined_call_operand.vmem [shape: f32[1,8], index: 2, kind: input, shape index: {}]   ;;  %s268_s3 = inlined_call_operand.vmem [shape: f32[128,8], index: 3, kind: output, shape index: {}]  }
   0x1   :  { %v14_v0 = vld [vmem:[%s265_s0] sm:$0xff]  ;;  %v15_v3 = vld [vmem:[%s265_s0 + $0x8] sm:$0xff]  ;;  %v16_v6 = vld [vmem:[%s265_s0 + $0x10] sm:$0xff] }
   0x2   :  { %v107_v1 = vld [vmem:[%s266_s1] ss:$0 sm:$0xff]  ;;  %v17_v7 = vld [vmem:[%s265_s0 + $0x18] sm:$0xff]  ;;  %v19_v12 = vld [vmem:[%s265_s0 + $0x28] sm:$0xff] }
   0x3   :  { %v138_v2 = vld [vmem:[%s267_s2] ss:$0 sm:$0xff]  ;;  %v34_v4 = vmul.f32 %v107_v1, %v14_v0  ;;  %v35_v5 = vmul.f32 %v107_v1, %v15_v3  ;;  %v36_v9 = vmul.f32 %v107_v1, %v16_v6  ;;  %v37_v10 = vmul.f32 %v107_v1, %v17_v7  ;;  %v20_v13 = vld [vmem:[%s265_s0 + $0x30] sm:$0xff]  ;;  %v21_v14 = vld [vmem:[%s265_s0 + $0x38] sm:$0xff] }
   0x4   :  { %v18_v8 = vld [vmem:[%s265_s0 + $0x20] sm:$0xff]  ;;  %v39_v17 = vmul.f32 %v107_v1, %v19_v12  ;;  %v40_v18 = vmul.f32 %v107_v1, %v20_v13  ;;  %v41_v22 = vmul.f32 %v107_v1, %v21_v14  ;;  %v23_v24 = vld [vmem:[%s265_s0 + $0x48] sm:$0xff]  ;;  %v24_v29 = vld [vmem:[%s265_s0 + $0x50] sm:$0xff] }
   0x5   :  { %v38_v11 = vmul.f32 %v107_v1, %v18_v8  ;;  %v54_v15 = vadd.f32 %v138_v2, %v34_v4  ;;  %v55_v16 = vadd.f32 %v138_v2, %v35_v5  ;;  %v56_v19 = vadd.f32 %v138_v2, %v36_v9  ;;  %v22_v23 = vld [vmem:[%s265_s0 + $0x40] sm:$0xff]  ;;  %v25_v30 = vld [vmem:[%s265_s0 + $0x58] sm:$0xff]  ;;  %v27_v35 = vld [vmem:[%s265_s0 + $0x68] sm:$0xff] }
   0x6   :  { %v57_v20 = vadd.f32 %v138_v2, %v37_v10  ;;  %v59_v27 = vadd.f32 %v138_v2, %v39_v17  ;;  %v60_v28 = vadd.f32 %v138_v2, %v40_v18  ;;  %v26_v31 = vld [vmem:[%s265_s0 + $0x60] sm:$0xff]  ;;  %v61_v34 = vadd.f32 %v138_v2, %v41_v22  ;;  %v28_v36 = vld [vmem:[%s265_s0 + $0x70] sm:$0xff]  ;;  %v29_v41 = vld [vmem:[%s265_s0 + $0x78] sm:$0xff] }
   0x7   :  { %v58_v21 = vadd.f32 %v138_v2, %v38_v11  ;;  %v70_v25 = vmax.f32 %v54_v15, 0.0  ;;  %v71_v26 = vmax.f32 %v55_v16, 0.0  ;;  %v72_v32 = vmax.f32 %v56_v19, 0.0 }
   0x8   :  { %v73_v33 = vmax.f32 %v57_v20, 0.0  ;;  %v75_v38 = vmax.f32 %v59_v27, 0.0  ;;  %v42_v39 = vmul.f32 %v107_v1, %v22_v23  ;;  %v43_v40 = vmul.f32 %v107_v1, %v23_v24 }
   0x9   :  { %87 = vst.msk [vmem:[%s268_s3] sm:$0xff] %vm86_vm0, %v70_v25  ;;  %v74_v37 = vmax.f32 %v58_v21, 0.0  ;;  %v76_v42 = vmax.f32 %v60_v28, 0.0  ;;  %v44_v43 = vmul.f32 %v107_v1, %v24_v29  ;;  %v45_v44 = vmul.f32 %v107_v1, %v25_v30 }
   0xa   :  { %88 = vst.msk [vmem:[%s268_s3 + $0x8] sm:$0xff] %vm86_vm0, %v71_v26  ;;  %v46_v45 = vmul.f32 %v107_v1, %v26_v31  ;;  %v62_v46 = vadd.f32 %v138_v2, %v42_v39  ;;  %v63_v47 = vadd.f32 %v138_v2, %v43_v40  ;;  %v47_v48 = vmul.f32 %v107_v1, %v27_v35 }
   0xb   :  { %89 = vst.msk [vmem:[%s268_s3 + $0x10] sm:$0xff] %vm86_vm0, %v72_v32  ;;  %v48_v49 = vmul.f32 %v107_v1, %v28_v36  ;;  %v77_v50 = vmax.f32 %v61_v34, 0.0  ;;  %v64_v51 = vadd.f32 %v138_v2, %v44_v43  ;;  %v65_v52 = vadd.f32 %v138_v2, %v45_v44 }
   0xc   :  { %90 = vst.msk [vmem:[%s268_s3 + $0x18] sm:$0xff] %vm86_vm0, %v73_v33  ;;  %v49_v53 = vmul.f32 %v107_v1, %v29_v41  ;;  %v78_v54 = vmax.f32 %v62_v46, 0.0  ;;  %v66_v55 = vadd.f32 %v138_v2, %v46_v45  ;;  %v79_v56 = vmax.f32 %v63_v47, 0.0 }
   0xd   :  { %91 = vst.msk [vmem:[%s268_s3 + $0x20] sm:$0xff] %vm86_vm0, %v74_v37  ;;  %v67_v57 = vadd.f32 %v138_v2, %v47_v48  ;;  %v80_v58 = vmax.f32 %v64_v51, 0.0  ;;  %v68_v59 = vadd.f32 %v138_v2, %v48_v49  ;;  %v81_v60 = vmax.f32 %v65_v52, 0.0 }
   0xe   :  { %92 = vst.msk [vmem:[%s268_s3 + $0x28] sm:$0xff] %vm86_vm0, %v75_v38  ;;  %v69_v61 = vadd.f32 %v138_v2, %v49_v53  ;;  %v82_v62 = vmax.f32 %v66_v55, 0.0 }
   0xf   :  { %93 = vst.msk [vmem:[%s268_s3 + $0x30] sm:$0xff] %vm86_vm0, %v76_v42  ;;  %v83_v63 = vmax.f32 %v67_v57, 0.0  ;;  %v84_v0 = vmax.f32 %v68_v59, 0.0 }
  0x10   :  { %94 = vst.msk [vmem:[%s268_s3 + $0x38] sm:$0xff] %vm86_vm0, %v77_v50  ;;  %v85_v1 = vmax.f32 %v69_v61, 0.0 }
  0x11   :  { %95 = vst.msk [vmem:[%s268_s3 + $0x40] sm:$0xff] %vm86_vm0, %v78_v54 }
  0x12   :  { %96 = vst.msk [vmem:[%s268_s3 + $0x48] sm:$0xff] %vm86_vm0, %v79_v56 }
  0x13   :  { %97 = vst.msk [vmem:[%s268_s3 + $0x50] sm:$0xff] %vm86_vm0, %v80_v58 }
  0x14   :  { %98 = vst.msk [vmem:[%s268_s3 + $0x58] sm:$0xff] %vm86_vm0, %v81_v60 }
  0x15   :  { %99 = vst.msk [vmem:[%s268_s3 + $0x60] sm:$0xff] %vm86_vm0, %v82_v62 }
  0x16   :  { %100 = vst.msk [vmem:[%s268_s3 + $0x68] sm:$0xff] %vm86_vm0, %v83_v63 }
  0x17   :  { %101 = vst.msk [vmem:[%s268_s3 + $0x70] sm:$0xff] %vm86_vm0, %v84_v0 }
  0x18   :  { %102 = vst.msk [vmem:[%s268_s3 + $0x78] sm:$0xff] %vm86_vm0, %v85_v1 }

// kernel: encoder_block.3
= control target key start
LH: loop header
LB: loop body
LE: loop exit
PB: predicated region body
PF: predicated region fallthrough
CT: control target
= control target key end

     0   :  { %s1405_s12 = smov 0   ;;  %s1407_s13 = smov 0   ;;  %s1789_s0 = inlined_call_operand.vmem [shape: bf16[2,9,9,16], index: 0, kind: input, shape index: {}]   ;;  %s1790_s1 = inlined_call_operand.vmem [shape: bf16[48,8], index: 1, kind: input, shape index: {}]   ;;  %s1791_s2 = inlined_call_operand.vmem [shape: f32[2,8,8,8], index: 2, kind: output, shape index: {0}]   ;;  %s1792_s3 = inlined_call_operand.vmem [shape: f32[2,1,2,8], index: 3, kind: output, shape index: {1}]  }
   0x1   :  { %s1409_s14 = smov 0  }
   0x2 LB: > { %s26_s15 = sadd.s32 1, %s1373_s13  ;;  %p1236_p0 = scmp.ge.s32.totalorder %s1377_s14, 1  ;;  %s1377_s14 = sphi %s1409_s14, %s14_s14   ;;  %s1373_s13 = sphi %s1407_s13, %s1796_s13   ;;  %s1369_s12 = sphi %s1405_s12, %s1795_s12  }
   0x3   : > { %p28_p1 = scmp.ge.s32.totalorder %s26_s15, 2  ;;  %p156_p2 = scmp.lt.s32.totalorder %s1377_s14, 3 }
   0x5   : > { %s1798_s15 = smov (%p28_p1, %s26_s15), 0  ;;  %p157_p3 = pnand %p1236_p0, %p156_p2 }
   0x6   : > { %p191_p4 = scmp.lt.s32.totalorder (!%p157_p3), %s1369_s12, 1  ;;  %s1379_s20 = smov (!%p157_p3), 4  }
   0x7   : > { %160 = sbr.rel (%p157_p3) target bundleno = 447 (0x1bf), region = 28  ;;  %s1380_s21 = smov (!%p157_p3), 8  }
   0x8   : > { %s1381_s22 = smov (!%p157_p3), 12   ;;  %s1382_s23 = smov (!%p157_p3), 24  }
   0x9   : > { %s1383_s24 = smov (!%p157_p3), 32  }
   0xc   : > { %s1800_s12 = smov (!%p191_p4, %s1369_s12), 1  ;;  %vm268_vm0 = vsmask.f32 3328  ;;  %vm269_vm1 = vsmask.f32 7440  ;;  %vm226_vm3 = vcmask 27648  }
   0xd   : > { %s1324_s16 = smul.u32 72, %s1800_s12  ;;  %vm1446_vm2 = vmor %vm268_vm0, %vm269_vm1  ;;  %vm243_vm4 = vcmask 60448   ;;  %vm407_vm5 = vcmask 93248   ;;  %vm456_vm6 = vcmask 126048   ;;  %vm505_vm7 = vcmask 158848   ;;  %s1307_s4 = sshll.u32 %s1800_s12, 6 }
   0xe   : > { %vm666_vm8 = vcmask 191648   ;;  %vm719_vm9 = vcmask 224448   ;;  %vm768_vm10 = vcmask 257248   ;;  %vm929_vm11 = vcmask 290048   ;;  %s1742_s7 = scalar_lea.vmem %s1791_s2, %s1307_s4  ;;  %s1240_s8 = sshll.u32 %s1800_s12, 1 }
   0xf   : > { %s1429_s19 = scalar_lea.vmem %s1789_s0, %s1324_s16  ;;  %vm938_vm12 = vcmask 388384   ;;  %vm999_vm13 = vcmask 392192   ;;  %vm1041_vm14 = vcmask 64512   ;;  %vm1100_vm15 = vcmask 1040384   ;;  %s212_s11 = scalar_lea.vmem %s1792_s3, %s1240_s8 }
  0x10   : > { %v465_v0 = vld [vmem:[%s1429_s19] sm:$0xf]  ;;  %v253_v3 = vld [vmem:[%s1429_s19 + $0x4] sm:$0x1]  ;;  %v254_v7 = vld [vmem:[%s1429_s19 + $0x8] sm:$0xf] }
  0x11   : > { %v416_v1 = vld [vmem:[%s1429_s19] sm:$0xf]  ;;  %481 = vrot.lane.b32.xlu0 %v465_v0, %s1379_s20  ;;  %v281_v6 = vshll.u32 %v253_v3, 16  ;;  %v286_v11 = vshrl.u32 %v254_v7, 16  ;;  %v417_v13 = vld [vmem:[%s1429_s19 + $0x8] sm:$0xf] }
  0x12   : > { %432 = vrot.lane.b32.xlu1 %v416_v1, %s1379_s20  ;;  %v252_v2 = vld [vmem:[%s1429_s19] sm:$0xf]  ;;  %v255_v14 = vld [vmem:[%s1429_s19 + $0xc] sm:$0x1]  ;;  %v289_v15 = vshll.u32 %v254_v7, 16  ;;  %vm1102_vm0 = vcmask 58368  }
  0x13   : > { %v272_v4 = vshrl.u32 %v252_v2, 16  ;;  %v275_v5 = vshll.u32 %v252_v2, 16  ;;  %v420_v8 = vld [vmem:[%s1429_s19 + $0x20] sm:$0xf]  ;;  %v283_v18 = vrot.slane %v281_v6, 5  ;;  %v288_v19 = vrot.slane %v286_v11, 4 }
  0x14   : > { %440 = vrot.lane.b32.xlu2 %v420_v8, %s1379_s20  ;;  %v514_v12 = vld [vmem:[%s1429_s19] sm:$0xf]  ;;  %v291_v23 = vrot.slane %v289_v15, 5  ;;  %v261_v24 = vld [vmem:[%s1429_s19 + $0x24] sm:$0x1]  ;;  %v295_v26 = vshll.u32 %v255_v14, 16 }
  0x15   : > { %v274_v9 = vrot.slane %v272_v4, 4  ;;  %v277_v10 = vrot.slane %v275_v5, 5  ;;  %v531_v16 = vshrl.u32 %v514_v12, 16  ;;  %v534_v20 = vshll.u32 %v514_v12, 16  ;;  %v260_v21 = vld [vmem:[%s1429_s19 + $0x20] sm:$0xf] }
  0x16   : > { %v328_v27 = vshrl.u32 %v260_v21, 16  ;;  %v331_v28 = vshll.u32 %v260_v21, 16  ;;  %v292_v29 = vor.u32 %v291_v23, %v288_v19  ;;  %v337_v31 = vshll.u32 %v261_v24, 16  ;;  %v515_v33 = vld [vmem:[%s1429_s19 + $0x4] sm:$0x1] }
  0x17   : > { %v278_v17 = vor.u32 %v277_v10, %v274_v9  ;;  %v533_v30 = vrot.slane %v531_v16, 4  ;;  %v536_v34 = vrot.slane %v534_v20, 5  ;;  %v258_v37 = vld [vmem:[%s1429_s19 + $0x18] sm:$0xf]  ;;  %v297_v39 = vrot.slane %v295_v26, 5 }
  0x18   : > { %v330_v35 = vrot.slane %v328_v27, 4  ;;  %v333_v36 = vrot.slane %v331_v28, 5  ;;  %v293_v38 = vrot.slane %v292_v29, 4  ;;  %v339_v41 = vrot.slane %v337_v31, 5  ;;  %v256_v42 = vld [vmem:[%s1429_s19 + $0x10] sm:$0xf] }
  0x19   : > { %v279_v25 = vrot.slane %v278_v17, 4  ;;  %v540_v43 = vshll.u32 %v515_v33, 16  ;;  %v262_v44 = vld [vmem:[%s1429_s19 + $0x28] sm:$0xf]  ;;  %v263_v45 = vld [vmem:[%s1429_s19 + $0x2c] sm:$0x1]  ;;  %v537_v47 = vor.u32 %v536_v34, %v533_v30 }
  0x1a   : > { %434 = vrot.lane.b32.xlu1 %v417_v13, %s1379_s20  ;;  %v334_v40 = vor.u32 %v333_v36, %v330_v35  ;;  %v466_v46 = vld [vmem:[%s1429_s19 + $0x8] sm:$0xf]  ;;  %v314_v49 = vshrl.u32 %v258_v37, 16  ;;  %v317_v50 = vshll.u32 %v258_v37, 16  ;;  %v300_v51 = vshrl.u32 %v256_v42, 16 }
  0x1b   : > { %v284_v32 = vsel %vm1446_vm2, %v279_v25, %v283_v18  ;;  %v342_v52 = vshrl.u32 %v262_v44, 16  ;;  %v345_v53 = vshll.u32 %v262_v44, 16  ;;  %v298_v54 = vsel %vm1446_vm2, %v293_v38, %v297_v39  ;;  %v516_v58 = vld [vmem:[%s1429_s19 + $0x8] sm:$0xf]  ;;  %v259_v0 = vld [vmem:[%s1429_s19 + $0x1c] sm:$0x1] }
  0x1c   : > { %383 = vrot.lane.b32.xlu0 %v284_v32, %s1380_s21  ;;  %v335_v48 = vrot.slane %v334_v40, 4  ;;  %v303_v56 = vshll.u32 %v256_v42, 16  ;;  %v351_v57 = vshll.u32 %v263_v45, 16  ;;  %v542_v59 = vrot.slane %v540_v43, 5  ;;  %v517_v6 = vld [vmem:[%s1429_s19 + $0xc] sm:$0x1] }
  0x1d   : > { %v344_v60 = vrot.slane %v342_v52, 4  ;;  %v347_v61 = vrot.slane %v345_v53, 5  ;;  %v545_v62 = vshrl.u32 %v516_v58, 16  ;;  %v538_v63 = vrot.slane %v537_v47, 4  ;;  %v257_v12 = vld [vmem:[%s1429_s19 + $0x14] sm:$0x1] }
  0x1e   : > { %v340_v55 = vsel %vm1446_vm2, %v335_v48, %v339_v41  ;;  %v316_v1 = vrot.slane %v314_v49, 4  ;;  %v319_v2 = vrot.slane %v317_v50, 5  ;;  %v548_v3 = vshll.u32 %v516_v58, 16  ;;  %v421_v19 = vld [vmem:[%s1429_s19 + $0x28] sm:$0xf] }
  0x1f   : > { %391 = vrot.lane.b32.xlu2 %v340_v55, %s1380_s21  ;;  %v348_v4 = vor.u32 %v347_v61, %v344_v60  ;;  %v353_v5 = vrot.slane %v351_v57, 5  ;;  %v547_v7 = vrot.slane %v545_v62, 4  ;;  %v302_v8 = vrot.slane %v300_v51, 4  ;;  %v524_v32 = vld [vmem:[%s1429_s19 + $0x28] sm:$0xf] }
  0x20   : > { %v305_v9 = vrot.slane %v303_v56, 5  ;;  %v550_v10 = vrot.slane %v548_v3, 5  ;;  %v323_v11 = vshll.u32 %v259_v0, 16  ;;  %v543_v14 = vsel %vm1446_vm2, %v538_v63, %v542_v59  ;;  %v1241_v33 = vld [vmem:[%s1429_s19 + $0x8] sm:$0xf] }
  0x21   : > { %v349_v13 = vrot.slane %v348_v4, 4  ;;  %v320_v15 = vor.u32 %v319_v2, %v316_v1  ;;  %v554_v17 = vshll.u32 %v517_v6, 16  ;;  %v309_v21 = vshll.u32 %v257_v12, 16  ;;  %v469_v34 = vld [vmem:[%s1429_s19 + $0x20] sm:$0xf] }
  0x22   : > { %483 = vrot.lane.b32.xlu1 %v466_v46, %s1379_s20  ;;  %v551_v16 = vor.u32 %v550_v10, %v547_v7  ;;  %v306_v20 = vor.u32 %v305_v9, %v302_v8  ;;  %v325_v24 = vrot.slane %v323_v11, 5  ;;  %v470_v35 = vld [vmem:[%s1429_s19 + $0x28] sm:$0xf]  ;;  %v601_v36 = vshrl.u32 %v524_v32, 16  ;;  %v522_v38 = vld [vmem:[%s1429_s19 + $0x20] sm:$0xf] }
  0x23   : > { %v354_v18 = vsel %vm1446_vm2, %v349_v13, %v353_v5  ;;  %v321_v23 = vrot.slane %v320_v15, 4  ;;  %v556_v26 = vrot.slane %v554_v17, 5  ;;  %v311_v28 = vrot.slane %v309_v21, 5  ;;  %v266_v41 = vld [vmem:[%s1429_s19 + $0x38] sm:$0xf] }
  0x24   : > { %385 = vrot.lane.b32.xlu0 %v298_v54, %s1380_s21  ;;  %v552_v25 = vrot.slane %v551_v16, 4  ;;  %v307_v27 = vrot.slane %v306_v20, 4  ;;  %v604_v37 = vshll.u32 %v524_v32, 16  ;;  %v587_v39 = vshrl.u32 %v522_v38, 16  ;;  %v523_v42 = vld [vmem:[%s1429_s19 + $0x24] sm:$0x1] }
  0x25   : > { %v326_v29 = vsel %vm1446_vm2, %v321_v23, %v325_v24  ;;  %v590_v40 = vshll.u32 %v522_v38, 16  ;;  %v603_v45 = vrot.slane %v601_v36, 4  ;;  %v419_v47 = vld [vmem:[%s1429_s19 + $0x18] sm:$0xf]  ;;  %v525_v48 = vld [vmem:[%s1429_s19 + $0x2c] sm:$0x1] }
  0x26   : > { %v557_v30 = vsel %vm1446_vm2, %v552_v25, %v556_v26  ;;  %v312_v31 = vsel %vm1446_vm2, %v307_v27, %v311_v28  ;;  %v589_v43 = vrot.slane %v587_v39, 4  ;;  %v606_v46 = vrot.slane %v604_v37, 5  ;;  %v264_v49 = vld [vmem:[%s1429_s19 + $0x30] sm:$0xf]  ;;  %v267_v0 = vld [vmem:[%s1429_s19 + $0x3c] sm:$0x1] }
  0x27   : > { %393 = vrot.lane.b32.xlu2 %v354_v18, %s1380_s21  ;;  %v592_v44 = vrot.slane %v590_v40, 5  ;;  %v370_v50 = vshrl.u32 %v266_v41, 16  ;;  %v373_v51 = vshll.u32 %v266_v41, 16  ;;  %v1242_v52 = vld [vmem:[%s1429_s19 + $0x10] sm:$0xf]  ;;  %v596_v54 = vshll.u32 %v523_v42, 16 }
  0x28   : > { %v418_v55 = vld [vmem:[%s1429_s19 + $0x10] sm:$0xf]  ;;  %v607_v56 = vor.u32 %v606_v46, %v603_v45  ;;  %v610_v57 = vshll.u32 %v525_v48, 16  ;;  %v356_v58 = vshrl.u32 %v264_v49, 16  ;;  %v359_v59 = vshll.u32 %v264_v49, 16 }
  0x29   : > { %v593_v53 = vor.u32 %v592_v44, %v589_v43  ;;  %v372_v60 = vrot.slane %v370_v50, 4  ;;  %v375_v61 = vrot.slane %v373_v51, 5  ;;  %v598_v63 = vrot.slane %v596_v54, 5  ;;  %v265_v5 = vld [vmem:[%s1429_s19 + $0x34] sm:$0x1] }
  0x2a   : > { %642 = vrot.lane.b32.xlu1 %v543_v14, %s1381_s22  ;;  %v608_v1 = vrot.slane %v607_v56, 4  ;;  %v612_v2 = vrot.slane %v610_v57, 5  ;;  %v358_v3 = vrot.slane %v356_v58, 4  ;;  %v361_v4 = vrot.slane %v359_v59, 5  ;;  %v1249_v6 = vld [vmem:[%s1429_s19 + $0x8] sm:$0xf] }
  0x2b   : > { %v594_v62 = vrot.slane %v593_v53, 4  ;;  %v376_v7 = vor.u32 %v375_v61, %v372_v60  ;;  %v379_v8 = vshll.u32 %v267_v0, 16  ;;  %v365_v12 = vshll.u32 %v265_v5, 16  ;;  %v1259_v15 = vld [vmem:[%s1429_s19 + $0x10] sm:$0xf] }
  0x2c   : > { %442 = vrot.lane.b32.xlu0 %v421_v19, %s1379_s20  ;;  %v613_v10 = vsel %vm1446_vm2, %v608_v1, %v612_v2  ;;  %v362_v11 = vor.u32 %v361_v4, %v358_v3  ;;  %v1257_v18 = vld [vmem:[%s1429_s19 + $0x8] sm:$0xf]  ;;  %v808_v20 = vshrl.u32 %v1259_v15, 16  ;;  %v811_v21 = vshll.u32 %v1259_v15, 16  ;;  %v1250_v23 = vld [vmem:[%s1429_s19 + $0x10] sm:$0xf] }
  0x2d   : > { %v599_v9 = vsel %vm1446_vm2, %v594_v62, %v598_v63  ;;  %v377_v13 = vrot.slane %v376_v7, 4  ;;  %v381_v14 = vrot.slane %v379_v8, 5  ;;  %v367_v17 = vrot.slane %v365_v12, 5  ;;  %v467_v39 = vld [vmem:[%s1429_s19 + $0x10] sm:$0xf] }
  0x2e   : > { %v363_v16 = vrot.slane %v362_v11, 4  ;;  %v794_v25 = vshrl.u32 %v1257_v18, 16  ;;  %v797_v26 = vshll.u32 %v1257_v18, 16  ;;  %v810_v27 = vrot.slane %v808_v20, 4  ;;  %v468_v40 = vld [vmem:[%s1429_s19 + $0x18] sm:$0xf] }
  0x2f   : > { %644 = vrot.lane.b32.xlu2 %v557_v30, %s1381_s22  ;;  %v382_v19 = vsel %vm1446_vm2, %v377_v13, %v381_v14  ;;  %v813_v28 = vrot.slane %v811_v21, 5  ;;  %v518_v30 = vld [vmem:[%s1429_s19 + $0x10] sm:$0xf]  ;;  %v521_v60 = vld [vmem:[%s1429_s19 + $0x1c] sm:$0x1] }
  0x30   : > { %v368_v24 = vsel %vm1446_vm2, %v363_v16, %v367_v17  ;;  %v799_v32 = vrot.slane %v797_v26, 5  ;;  %v559_v37 = vshrl.u32 %v518_v30, 16  ;;  %v562_v38 = vshll.u32 %v518_v30, 16  ;;  %v1246_v53 = vld [vmem:[%s1429_s19 + $0x30] sm:$0xf] }
  0x31   : > { %v222_v63 = vld [vmem:[%s1429_s19 + $0x20] sm:$0xf]  ;;  %v422_v2 = vld [vmem:[%s1429_s19 + $0x30] sm:$0xf]  ;;  %v582_v4 = vshll.u32 %v521_v60, 16 }
  0x32   : > { %389 = vrot.lane.b32.xlu1 %v326_v29, %s1380_s21  ;;  %v1260_v29 = vld [vmem:[%s1429_s19 + $0x14] sm:$0x1]  ;;  %v561_v45 = vrot.slane %v559_v37, 4  ;;  %v564_v46 = vrot.slane %v562_v38, 5  ;;  %231 = vst.msk [vmem:[#allocation2 + $0x10] sm:$0xf] %vm226_vm3, %v222_v63 }
  0x33   : > { %v817_v36 = vshll.u32 %v1260_v29, 16  ;;  %v239_v0 = vld [vmem:[%s1429_s19 + $0x20] sm:$0xf]  ;;  %v423_v5 = vld [vmem:[%s1429_s19 + $0x38] sm:$0xf]  ;;  %v584_v8 = vrot.slane %v582_v4, 5 }
  0x34   : > { %387 = vrot.lane.b32.xlu0 %v312_v31, %s1380_s21  ;;  %v796_v31 = vrot.slane %v794_v25, 4  ;;  %v565_v51 = vor.u32 %v564_v46, %v561_v45  ;;  %248 = vst.msk [vmem:[#allocation2 + $0x10] sm:$0xf] %vm243_vm4, %v239_v0  ;;  %v235_v11 = vld [vmem:[%s1429_s19] sm:$0xf] }
  0x35   : > { %v819_v44 = vrot.slane %v817_v36, 5  ;;  %v1254_v13 = vld [vmem:[%s1429_s19 + $0x30] sm:$0xf]  ;;  %v1253_v18 = vld [vmem:[%s1429_s19 + $0x28] sm:$0xf] }
  0x36   : > { %v800_v41 = vor.u32 %v799_v32, %v796_v31  ;;  %v566_v58 = vrot.slane %v565_v51, 4  ;;  %v1268_v20 = vld [vmem:[%s1429_s19 + $0x34] sm:$0x1]  ;;  %v1266_v26 = vld [vmem:[%s1429_s19 + $0x2c] sm:$0x1] }
  0x37   : > { %489 = vrot.lane.b32.xlu2 %v469_v34, %s1379_s20  ;;  %v1258_v34 = vld [vmem:[%s1429_s19 + $0xc] sm:$0x1]  ;;  %v236_v29 = vld [vmem:[%s1429_s19 + $0x8] sm:$0xf]  ;;  %v873_v30 = vshll.u32 %v1268_v20, 16 }
  0x38   : > { %v803_v42 = vshll.u32 %v1258_v34, 16  ;;  %v801_v48 = vrot.slane %v800_v41, 4  ;;  %v1243_v31 = vld [vmem:[%s1429_s19 + $0x18] sm:$0xf]  ;;  %v859_v34 = vshll.u32 %v1266_v26, 16 }
  0x39   : > { %v472_v37 = vld [vmem:[%s1429_s19 + $0x38] sm:$0xf]  ;;  %v223_v46 = vld [vmem:[%s1429_s19 + $0x28] sm:$0xf]  ;;  %v241_v22 = vld [vmem:[%s1429_s19 + $0x30] sm:$0xf] }
  0x3a   : > { %695 = vrot.lane.b32.xlu1 %v1241_v33, %s1382_s23  ;;  %v1245_v33 = vld [vmem:[%s1429_s19 + $0x28] sm:$0xf]  ;;  %v805_v49 = vrot.slane %v803_v42, 5  ;;  %v861_v45 = vrot.slane %v859_v34, 5  ;;  %232 = vst.msk [vmem:[#allocation2 + $0x14] sm:$0xf] %vm226_vm3, %v223_v46 }
  0x3b   : > { %v1272_v46 = vld [vmem:[%s1429_s19 + $0x44] sm:$0x1] }
  0x3c   : > { %491 = vrot.lane.b32.xlu0 %v470_v35, %s1379_s20  ;;  %v814_v35 = vor.u32 %v813_v28, %v810_v27  ;;  %v806_v54 = vsel %vm1446_vm2, %v801_v48, %v805_v49  ;;  %v219_v27 = vld [vmem:[%s1429_s19 + $0x8] sm:$0xf]  ;;  %v528_v28 = vld [vmem:[%s1429_s19 + $0x38] sm:$0xf] }
  0x3d   : > { %228 = vst.msk [vmem:[#allocation2 + $0x4] sm:$0xf] %vm226_vm3, %v219_v27  ;;  %v629_v36 = vshrl.u32 %v528_v28, 16  ;;  %v632_v38 = vshll.u32 %v528_v28, 16  ;;  %v240_v49 = vld [vmem:[%s1429_s19 + $0x28] sm:$0xf] }
  0x3e   : > { %v815_v43 = vrot.slane %v814_v35, 4  ;;  %245 = vst.msk [vmem:[#allocation2 + $0x4] sm:$0xf] %vm243_vm4, %v236_v29  ;;  %v471_v35 = vld [vmem:[%s1429_s19 + $0x30] sm:$0xf] }
  0x3f   : > { %697 = vrot.lane.b32.xlu2 %v1242_v52, %s1382_s23  ;;  %v631_v48 = vrot.slane %v629_v36, 4  ;;  %v634_v51 = vrot.slane %v632_v38, 5  ;;  %249 = vst.msk [vmem:[#allocation2 + $0x14] sm:$0xf] %vm243_vm4, %v240_v49  ;;  %v1262_v27 = vld [vmem:[%s1429_s19 + $0x1c] sm:$0x1] }
  0x40   : > { %v820_v50 = vsel %vm1446_vm2, %v815_v43, %v819_v44  ;;  %v1264_v29 = vld [vmem:[%s1429_s19 + $0x24] sm:$0x1]  ;;  %v1247_v36 = vld [vmem:[%s1429_s19 + $0x38] sm:$0xf] }
  0x41   : > { %v635_v60 = vor.u32 %v634_v51, %v631_v48  ;;  %v845_v38 = vshll.u32 %v1264_v29, 16 }
  0x42   : > { %438 = vrot.lane.b32.xlu1 %v419_v47, %s1379_s20  ;;  %v519_v47 = vld [vmem:[%s1429_s19 + $0x14] sm:$0x1] }
  0x43   : > { %v568_v52 = vshll.u32 %v519_v47, 16  ;;  %v636_v4 = vrot.slane %v635_v60, 4  ;;  %v847_v48 = vrot.slane %v845_v38, 5 }
  0x44   : > { %436 = vrot.lane.b32.xlu0 %v418_v55, %s1379_s20  ;;  %v520_v55 = vld [vmem:[%s1429_s19 + $0x18] sm:$0xf] }
  0x45   : > { %v573_v56 = vshrl.u32 %v520_v55, 16  ;;  %v576_v57 = vshll.u32 %v520_v55, 16  ;;  %v570_v59 = vrot.slane %v568_v52, 5  ;;  %v527_v52 = vld [vmem:[%s1429_s19 + $0x34] sm:$0x1] }
  0x47   : > { %650 = vrot.lane.b32.xlu2 %v599_v9, %s1381_s22  ;;  %v575_v61 = vrot.slane %v573_v56, 4  ;;  %v578_v62 = vrot.slane %v576_v57, 5  ;;  %v571_v1 = vsel %vm1446_vm2, %v566_v58, %v570_v59  ;;  %v1265_v9 = vld [vmem:[%s1429_s19 + $0x28] sm:$0xf]  ;;  %v1244_v56 = vld [vmem:[%s1429_s19 + $0x20] sm:$0xf] }
  0x48   : > { %v850_v15 = vshrl.u32 %v1265_v9, 16  ;;  %v853_v16 = vshll.u32 %v1265_v9, 16  ;;  %v624_v58 = vshll.u32 %v527_v52, 16  ;;  %v237_v9 = vld [vmem:[%s1429_s19 + $0x10] sm:$0xf] }
  0x49   : > { %v579_v3 = vor.u32 %v578_v62, %v575_v61 }
  0x4a   : > { %744 = vrot.lane.b32.xlu1 %v1249_v6, %s1382_s23  ;;  %v1267_v6 = vld [vmem:[%s1429_s19 + $0x30] sm:$0xf]  ;;  %v855_v25 = vrot.slane %v853_v16, 5  ;;  %v626_v63 = vrot.slane %v624_v58, 5 }
  0x4b   : > { %v580_v7 = vrot.slane %v579_v3, 4  ;;  %v864_v12 = vshrl.u32 %v1267_v6, 16  ;;  %v867_v14 = vshll.u32 %v1267_v6, 16  ;;  %v238_v3 = vld [vmem:[%s1429_s19 + $0x18] sm:$0xf] }
  0x4c   : > { %652 = vrot.lane.b32.xlu0 %v613_v10, %s1381_s22  ;;  %v218_v10 = vld [vmem:[%s1429_s19] sm:$0xf] }
  0x4d   : > { %227 = vst.msk [vmem:[#allocation2] sm:$0xf] %vm226_vm3, %v218_v10  ;;  %v585_v17 = vsel %vm1446_vm2, %v580_v7, %v584_v8  ;;  %v866_v21 = vrot.slane %v864_v12, 4  ;;  %v220_v7 = vld [vmem:[%s1429_s19 + $0x10] sm:$0xf] }
  0x4e   : > { %244 = vst.msk [vmem:[#allocation2] sm:$0xf] %vm243_vm4, %v235_v11  ;;  %v1263_v8 = vld [vmem:[%s1429_s19 + $0x20] sm:$0xf]  ;;  %v1251_v10 = vld [vmem:[%s1429_s19 + $0x18] sm:$0xf] }
  0x4f   : > { %746 = vrot.lane.b32.xlu2 %v1250_v23, %s1382_s23  ;;  %v869_v23 = vrot.slane %v867_v14, 5  ;;  %229 = vst.msk [vmem:[#allocation2 + $0x8] sm:$0xf] %vm226_vm3, %v220_v7  ;;  %v839_v14 = vshll.u32 %v1263_v8, 16 }
  0x50   : > { %246 = vst.msk [vmem:[#allocation2 + $0x8] sm:$0xf] %vm243_vm4, %v237_v9  ;;  %v225_v9 = vld [vmem:[%s1429_s19 + $0x38] sm:$0xf] }
  0x51   : > { %v870_v32 = vor.u32 %v869_v23, %v866_v21  ;;  %v1248_v23 = vld [vmem:[%s1429_s19 + $0x40] sm:$0xf]  ;;  %234 = vst.msk [vmem:[#allocation2 + $0x1c] sm:$0xf] %vm226_vm3, %v225_v9 }
  0x52   : > { %397 = vrot.lane.b32.xlu1 %v382_v19, %s1380_s21 }
  0x53   : > { %v871_v43 = vrot.slane %v870_v32, 4 }
  0x54   : > { %395 = vrot.lane.b32.xlu0 %v368_v24, %s1380_s21  ;;  %v852_v24 = vrot.slane %v850_v15, 4  ;;  %v1261_v15 = vld [vmem:[%s1429_s19 + $0x18] sm:$0xf] }
  0x55   : > { %v822_v16 = vshrl.u32 %v1261_v15, 16 }
  0x57   : > { %485 = vrot.lane.b32.xlu2 %v467_v39, %s1379_s20  ;;  %v526_v39 = vld [vmem:[%s1429_s19 + $0x30] sm:$0xf]  ;;  %v824_v20 = vrot.slane %v822_v16, 4 }
  0x58   : > { %v615_v41 = vshrl.u32 %v526_v39, 16  ;;  %v618_v42 = vshll.u32 %v526_v39, 16 }
  0x5a   : > { %703 = vrot.lane.b32.xlu1 %v1245_v33, %s1382_s23  ;;  %v856_v33 = vor.u32 %v855_v25, %v852_v24  ;;  %v841_v25 = vrot.slane %v839_v14, 5 }
  0x5c   : > { %487 = vrot.lane.b32.xlu0 %v468_v40, %s1379_s20  ;;  %v875_v40 = vrot.slane %v873_v30, 5  ;;  %v857_v44 = vrot.slane %v856_v33, 4  ;;  %v1252_v33 = vld [vmem:[%s1429_s19 + $0x20] sm:$0xf] }
  0x5e   : > { %v876_v55 = vsel %vm1446_vm2, %v871_v43, %v875_v40  ;;  %v862_v59 = vsel %vm1446_vm2, %v857_v44, %v861_v45 }
  0x5f   : > { %705 = vrot.lane.b32.xlu2 %v1246_v53, %s1382_s23  ;;  %v620_v53 = vrot.slane %v618_v42, 5 }
  0x62   : > { %907 = vrot.lane.b32.xlu1 %v820_v50, %s1383_s24  ;;  %v617_v50 = vrot.slane %v615_v41, 4 }
  0x64   : > { %905 = vrot.lane.b32.xlu0 %v806_v54, %s1383_s24  ;;  %v529_v54 = vld [vmem:[%s1429_s19 + $0x3c] sm:$0x1]  ;;  %v621_v57 = vor.u32 %v620_v53, %v617_v50 }
  0x65   : > { %v638_v61 = vshll.u32 %v529_v54, 16  ;;  %v1270_v53 = vld [vmem:[%s1429_s19 + $0x3c] sm:$0x1]  ;;  %v1255_v54 = vld [vmem:[%s1429_s19 + $0x38] sm:$0xf] }
  0x66   : > { %v622_v62 = vrot.slane %v621_v57, 4  ;;  %v887_v60 = vshll.u32 %v1270_v53, 16 }
  0x67   : > { %444 = vrot.lane.b32.xlu2 %v422_v2, %s1379_s20  ;;  %v221_v2 = vld [vmem:[%s1429_s19 + $0x18] sm:$0xf] }
  0x68   : > { %230 = vst.msk [vmem:[#allocation2 + $0xc] sm:$0xf] %vm226_vm3, %v221_v2  ;;  %v627_v11 = vsel %vm1446_vm2, %v622_v62, %v626_v63 }
  0x69   : > { %247 = vst.msk [vmem:[#allocation2 + $0xc] sm:$0xf] %vm243_vm4, %v238_v3 }
  0x6a   : > { %646 = vrot.lane.b32.xlu1 %v571_v1, %s1381_s22 }
  0x6c   : > { %446 = vrot.lane.b32.xlu0 %v423_v5, %s1379_s20  ;;  %v640_v5 = vrot.slane %v638_v61, 5 }
  0x6e   : > { %v441_v19 = vpop.permute.xlu2 %440  ;;  %v641_v12 = vsel %vm1446_vm2, %v636_v4, %v640_v5  ;;  %v1256_v5 = vld [vmem:[%s1429_s19 + $0x40] sm:$0xf] }
  0x6f   : > { %648 = vrot.lane.b32.xlu2 %v585_v17, %s1381_s22  ;;  %v825_v17 = vshll.u32 %v1261_v15, 16 }
  0x71   : > { %v827_v21 = vrot.slane %v825_v17, 5 }
  0x72   : > { %754 = vrot.lane.b32.xlu1 %v1254_v13, %s1382_s23  ;;  %v836_v13 = vshrl.u32 %v1263_v8, 16 }
  0x73   : > { %v828_v34 = vor.u32 %v827_v21, %v824_v20 }
  0x74   : > { %752 = vrot.lane.b32.xlu0 %v1253_v18, %s1382_s23  ;;  %v1271_v18 = vld [vmem:[%s1429_s19 + $0x40] sm:$0xf]  ;;  %v838_v24 = vrot.slane %v836_v13, 4 }
  0x75   : > { %v892_v30 = vshrl.u32 %v1271_v18, 16  ;;  %v895_v32 = vshll.u32 %v1271_v18, 16  ;;  %v829_v43 = vrot.slane %v828_v34, 4 }
  0x77   : > { %493 = vrot.lane.b32.xlu2 %v471_v35, %s1379_s20  ;;  %v831_v35 = vshll.u32 %v1262_v27, 16  ;;  %v894_v41 = vrot.slane %v892_v30, 4  ;;  %v897_v42 = vrot.slane %v895_v32, 5 }
  0x79   : > { %v392_v47 = vpop.permute.xlu2 %391  ;;  %v833_v44 = vrot.slane %v831_v35, 5 }
  0x7a   : > { %699 = vrot.lane.b32.xlu1 %v1243_v31, %s1382_s23  ;;  %412 = vst.msk [vmem:[#allocation2 + $0x10] sm:$0xf] %vm407_vm5, %v392_v47  ;;  %v1269_v31 = vld [vmem:[%s1429_s19 + $0x38] sm:$0xf] }
  0x7b   : > { %461 = vst.msk [vmem:[#allocation2 + $0x10] sm:$0xf] %vm456_vm6, %v441_v19  ;;  %v878_v39 = vshrl.u32 %v1269_v31, 16  ;;  %v881_v40 = vshll.u32 %v1269_v31, 16  ;;  %v834_v57 = vsel %vm1446_vm2, %v829_v43, %v833_v44  ;;  %v1384_v31 = vmov 0   ;;  %v1312_v44 = vld [vmem:[%s1790_s1] sm:$0xff] }
  0x7c   : > { %495 = vrot.lane.b32.xlu0 %v472_v37, %s1379_s20  ;;  %v842_v37 = vor.u32 %v841_v25, %v838_v24 }
  0x7d   : > { %v880_v49 = vrot.slane %v878_v39, 4  ;;  %v883_v50 = vrot.slane %v881_v40, 5  ;;  %v1314_v39 = vld [vmem:[%s1790_s1 + $0x10] sm:$0xff]  ;;  %v1313_v40 = vld [vmem:[%s1790_s1 + $0x8] sm:$0xff] }
  0x7e   : > { %v843_v47 = vrot.slane %v842_v37, 4  ;;  %1017 = vmatpush.bf16.msra.mxu0 %v1314_v39  ;;  %1316 = vmatpush.bf16.msra.mxu2 %v1314_v39 }
  0x7f   : > { %701 = vrot.lane.b32.xlu2 %v1244_v56, %s1382_s23  ;;  %v901_v56 = vshll.u32 %v1272_v46, 16  ;;  %1315 = vmatpush.bf16.msra.mxu1 %v1314_v39 }
  0x80   : > { %v848_v58 = vsel %vm1446_vm2, %v843_v47, %v847_v48  ;;  %1317 = vmatpush.bf16.msra.mxu3 %v1314_v39 }
  0x81   : > { %v394_v6 = vpop.permute.xlu2 %393  ;;  %v903_v62 = vrot.slane %v901_v56, 5 }
  0x82   : > { %915 = vrot.lane.b32.xlu1 %v876_v55, %s1383_s24  ;;  %413 = vst.msk [vmem:[#allocation2 + $0x14] sm:$0xf] %vm407_vm5, %v394_v6  ;;  %v898_v55 = vor.u32 %v897_v42, %v894_v41  ;;  %1018 = vmatpush.bf16.msra.mxu0 %v1313_v40 }
  0x83   : > { %v482_v0 = vpop.permute.xlu0 %481  ;;  %1319 = vmatpush.bf16.msra.mxu2 %v1313_v40  ;;  %1318 = vmatpush.bf16.msra.mxu1 %v1313_v40 }
  0x84   : > { %913 = vrot.lane.b32.xlu0 %v862_v59, %s1383_s24  ;;  %v433_v1 = vpop.permute.xlu1 %432  ;;  %v884_v59 = vor.u32 %v883_v50, %v880_v49  ;;  %v899_v61 = vrot.slane %v898_v55, 4  ;;  %1320 = vmatpush.bf16.msra.mxu3 %v1313_v40 }
  0x86   : > { %v904_v4 = vsel %vm1446_vm2, %v899_v61, %v903_v62  ;;  %1019 = vmatpush.bf16.msra.mxu0 %v1312_v44 }
  0x87   : > { %654 = vrot.lane.b32.xlu2 %v627_v11, %s1381_s22  ;;  %v242_v11 = vld [vmem:[%s1429_s19 + $0x38] sm:$0xf]  ;;  %1322 = vmatpush.bf16.msra.mxu2 %v1312_v44 }
  0x88   : > { %251 = vst.msk [vmem:[#allocation2 + $0x1c] sm:$0xf] %vm243_vm4, %v242_v11  ;;  %1321 = vmatpush.bf16.msra.mxu1 %v1312_v44  ;;  %1323 = vmatpush.bf16.msra.mxu3 %v1312_v44 }
  0x89   : > { %v645_v26 = vpop.permute.xlu2 %644 }
  0x8a   : > { %748 = vrot.lane.b32.xlu1 %v1251_v10, %s1382_s23 }
  0x8c   : > { %656 = vrot.lane.b32.xlu0 %v641_v12, %s1381_s22  ;;  %v435_v19 = vpop.permute.xlu1 %434  ;;  %v224_v12 = vld [vmem:[%s1429_s19 + $0x30] sm:$0xf] }
  0x8d   : > { %233 = vst.msk [vmem:[#allocation2 + $0x18] sm:$0xf] %vm226_vm3, %v224_v12 }
  0x8e   : > { %v384_v28 = vpop.permute.xlu0 %383  ;;  %250 = vst.msk [vmem:[#allocation2 + $0x18] sm:$0xf] %vm243_vm4, %v241_v22 }
  0x8f   : > { %408 = vst.msk [vmem:[#allocation2] sm:$0xf] %vm407_vm5, %v384_v28  ;;  %750 = vrot.lane.b32.xlu2 %v1252_v33, %s1382_s23 }
  0x90   : > { %457 = vst.msk [vmem:[#allocation2] sm:$0xf] %vm456_vm6, %v433_v1  ;;  %v889_v1 = vrot.slane %v887_v60, 5 }
  0x91   : > { %506 = vst.msk [vmem:[#allocation2] sm:$0xf] %vm505_vm7, %v482_v0  ;;  %v490_v51 = vpop.permute.xlu2 %489  ;;  %v885_v0 = vrot.slane %v884_v59, 4 }
  0x92   : > { %709 = vrot.lane.b32.xlu1 %v1248_v23, %s1382_s23  ;;  %510 = vst.msk [vmem:[#allocation2 + $0x10] sm:$0xf] %vm505_vm7, %v490_v51 }
  0x93   : > { %v890_v6 = vsel %vm1446_vm2, %v885_v0, %v889_v1 }
  0x94   : > { %707 = vrot.lane.b32.xlu0 %v1247_v36, %s1382_s23  ;;  %v484_v45 = vpop.permute.xlu1 %483 }
  0x96   : > { %v386_v52 = vpop.permute.xlu0 %385 }
  0x97   : > { %409 = vst.msk [vmem:[#allocation2 + $0x4] sm:$0xf] %vm407_vm5, %v386_v52  ;;  %909 = vrot.lane.b32.xlu2 %v834_v57, %s1383_s24 }
  0x98   : > { %458 = vst.msk [vmem:[#allocation2 + $0x4] sm:$0xf] %vm456_vm6, %v435_v19 }
  0x99   : > { %507 = vst.msk [vmem:[#allocation2 + $0x4] sm:$0xf] %vm505_vm7, %v484_v45  ;;  %v698_v2 = vpop.permute.xlu2 %697 }
  0x9a   : > { %756 = vrot.lane.b32.xlu1 %v1255_v54, %s1382_s23  ;;  %668 = vst.msk [vmem:[#allocation2 + $0x4] sm:$0xf] %vm666_vm8, %v645_v26 }
  0x9b   : > { %721 = vst.msk [vmem:[#allocation2 + $0x4] sm:$0xf] %vm719_vm9, %v698_v2 }
  0x9c   : > { %911 = vrot.lane.b32.xlu0 %v848_v58, %s1383_s24  ;;  %v643_v63 = vpop.permute.xlu1 %642 }
  0x9d   : > { %667 = vst.msk [vmem:[#allocation2] sm:$0xf] %vm666_vm8, %v643_v63 }
  0x9e   : > { %v443_v3 = vpop.permute.xlu0 %442 }
  0x9f   : > { %462 = vst.msk [vmem:[#allocation2 + $0x14] sm:$0xf] %vm456_vm6, %v443_v3  ;;  %758 = vrot.lane.b32.xlu2 %v1256_v5, %s1382_s23 }
  0xa1   : > { %v651_v8 = vpop.permute.xlu2 %650 }
  0xa2   : > { %919 = vrot.lane.b32.xlu1 %v904_v4, %s1383_s24  ;;  %671 = vst.msk [vmem:[#allocation2 + $0x10] sm:$0xf] %vm666_vm8, %v651_v8 }
  0xa4   : > { %917 = vrot.lane.b32.xlu0 %v890_v6, %s1383_s24  ;;  %v390_v7 = vpop.permute.xlu1 %389 }
  0xa5   : > { %411 = vst.msk [vmem:[#allocation2 + $0xc] sm:$0xf] %vm407_vm5, %v390_v7 }
  0xa6   : > { %v388_v10 = vpop.permute.xlu0 %387 }
  0xa7   : > { %410 = vst.msk [vmem:[#allocation2 + $0x8] sm:$0xf] %vm407_vm5, %v388_v10 }
  0xa9   : > { %v747_v14 = vpop.permute.xlu2 %746 }
  0xaa   : > { %770 = vst.msk [vmem:[#allocation2 + $0x4] sm:$0xf] %vm768_vm10, %v747_v14 }
  0xac   : > { %v696_v13 = vpop.permute.xlu1 %695 }
  0xad   : > { %720 = vst.msk [vmem:[#allocation2] sm:$0xf] %vm719_vm9, %v696_v13 }
  0xae   : > { %v492_v15 = vpop.permute.xlu0 %491 }
  0xaf   : > { %511 = vst.msk [vmem:[#allocation2 + $0x14] sm:$0xf] %vm505_vm7, %v492_v15 }
  0xb1   : > { %v486_v17 = vpop.permute.xlu2 %485 }
  0xb4   : > { %v439_v16 = vpop.permute.xlu1 %438 }
  0xb5   : > { %460 = vst.msk [vmem:[#allocation2 + $0xc] sm:$0xf] %vm456_vm6, %v439_v16 }
  0xb6   : > { %v437_v18 = vpop.permute.xlu0 %436 }
  0xb7   : > { %459 = vst.msk [vmem:[#allocation2 + $0x8] sm:$0xf] %vm456_vm6, %v437_v18 }
  0xb8   : > { %508 = vst.msk [vmem:[#allocation2 + $0x8] sm:$0xf] %vm505_vm7, %v486_v17 }
  0xb9   : > { %v706_v20 = vpop.permute.xlu2 %705 }
  0xbc   : > { %v745_v19 = vpop.permute.xlu1 %744 }
  0xbd   : > { %769 = vst.msk [vmem:[#allocation2] sm:$0xf] %vm768_vm10, %v745_v19 }
  0xbe   : > { %v653_v21 = vpop.permute.xlu0 %652 }
  0xbf   : > { %672 = vst.msk [vmem:[#allocation2 + $0x14] sm:$0xf] %vm666_vm8, %v653_v21 }
  0xc0   : > { %725 = vst.msk [vmem:[#allocation2 + $0x14] sm:$0xf] %vm719_vm9, %v706_v20 }
  0xc1   : > { %v445_v24 = vpop.permute.xlu2 %444 }
  0xc4   : > { %v398_v23 = vpop.permute.xlu1 %397 }
  0xc5   : > { %415 = vst.msk [vmem:[#allocation2 + $0x1c] sm:$0xf] %vm407_vm5, %v398_v23 }
  0xc6   : > { %v396_v25 = vpop.permute.xlu0 %395 }
  0xc7   : > { %414 = vst.msk [vmem:[#allocation2 + $0x18] sm:$0xf] %vm407_vm5, %v396_v25 }
  0xc8   : > { %463 = vst.msk [vmem:[#allocation2 + $0x18] sm:$0xf] %vm456_vm6, %v445_v24 }
  0xc9   : > { %v649_v27 = vpop.permute.xlu2 %648 }
  0xcc   : > { %v704_v26 = vpop.permute.xlu1 %703 }
  0xcd   : > { %724 = vst.msk [vmem:[#allocation2 + $0x10] sm:$0xf] %vm719_vm9, %v704_v26 }
  0xce   : > { %v488_v28 = vpop.permute.xlu0 %487 }
  0xcf   : > { %509 = vst.msk [vmem:[#allocation2 + $0xc] sm:$0xf] %vm505_vm7, %v488_v28 }
  0xd0   : > { %670 = vst.msk [vmem:[#allocation2 + $0xc] sm:$0xf] %vm666_vm8, %v649_v27 }
  0xd1   : > { %v494_v30 = vpop.permute.xlu2 %493 }
  0xd2   : > { %512 = vst.msk [vmem:[#allocation2 + $0x18] sm:$0xf] %vm505_vm7, %v494_v30 }
  0xd4   : > { %v908_v29 = vpop.permute.xlu1 %907 }
  0xd5   : > { %931 = vst.msk [vmem:[#allocation2 + $0x4] sm:$0xf] %vm929_vm11, %v908_v29 }
  0xd6   : > { %940 = vst.msk [vmem:[#allocation2 + $0x4] sm:$0xf] %vm938_vm12, %v1384_v31  ;;  %v906_v32 = vpop.permute.xlu0 %905 }
  0xd7   : > { %930 = vst.msk [vmem:[#allocation2] sm:$0xf] %vm929_vm11, %v906_v32 }
  0xd8   : > { %939 = vst.msk [vmem:[#allocation2] sm:$0xf] %vm938_vm12, %v1384_v31 }
  0xd9   : > { %v702_v34 = vpop.permute.xlu2 %701 }
  0xda   : > { %723 = vst.msk [vmem:[#allocation2 + $0xc] sm:$0xf] %vm719_vm9, %v702_v34 }
  0xdc   : > { %v647_v33 = vpop.permute.xlu1 %646 }
  0xdd   : > { %669 = vst.msk [vmem:[#allocation2 + $0x8] sm:$0xf] %vm666_vm8, %v647_v33 }
  0xde   : > { %v447_v35 = vpop.permute.xlu0 %446 }
  0xdf   : > { %464 = vst.msk [vmem:[#allocation2 + $0x1c] sm:$0xf] %vm456_vm6, %v447_v35  ;;  %v1308_v45 = vld [vmem:[#allocation2] sm:$0xff] }
  0xe0   : > { %1301 = vmatmul.msk.bf16.vlgmr.msra.gmra.mxu0 %vm999_vm13, %v1308_v45 }
  0xe1   : > { %v655_v37 = vpop.permute.xlu2 %654 }
  0xe2   : > { %673 = vst.msk [vmem:[#allocation2 + $0x18] sm:$0xf] %vm666_vm8, %v655_v37 }
  0xe4   : > { %v755_v36 = vpop.permute.xlu1 %754 }
  0xe5   : > { %774 = vst.msk [vmem:[#allocation2 + $0x14] sm:$0xf] %vm768_vm10, %v755_v36 }
  0xe6   : > { %v753_v38 = vpop.permute.xlu0 %752 }
  0xe7   : > { %773 = vst.msk [vmem:[#allocation2 + $0x10] sm:$0xf] %vm768_vm10, %v753_v38 }
  0xe9   : > { %v751_v42 = vpop.permute.xlu2 %750 }
  0xea   : > { %772 = vst.msk [vmem:[#allocation2 + $0xc] sm:$0xf] %vm768_vm10, %v751_v42 }
  0xec   : > { %v700_v41 = vpop.permute.xlu1 %699 }
  0xed   : > { %722 = vst.msk [vmem:[#allocation2 + $0x8] sm:$0xf] %vm719_vm9, %v700_v41 }
  0xee   : > { %v496_v43 = vpop.permute.xlu0 %495 }
  0xef   : > { %513 = vst.msk [vmem:[#allocation2 + $0x1c] sm:$0xf] %vm505_vm7, %v496_v43 }
  0xf1   : > { %v910_v48 = vpop.permute.xlu2 %909 }
  0xf4   : > { %v916_v46 = vpop.permute.xlu1 %915 }
  0xf5   : > { %935 = vst.msk [vmem:[#allocation2 + $0x14] sm:$0xf] %vm929_vm11, %v916_v46 }
  0xf6   : > { %944 = vst.msk [vmem:[#allocation2 + $0x14] sm:$0xf] %vm938_vm12, %v1384_v31  ;;  %v914_v47 = vpop.permute.xlu0 %913 }
  0xf7   : > { %934 = vst.msk [vmem:[#allocation2 + $0x10] sm:$0xf] %vm929_vm11, %v914_v47 }
  0xf8   : > { %943 = vst.msk [vmem:[#allocation2 + $0x10] sm:$0xf] %vm938_vm12, %v1384_v31 }
  0xf9   : > { %v759_v52 = vpop.permute.xlu2 %758 }
  0xfc   : > { %v749_v49 = vpop.permute.xlu1 %748 }
  0xfd   : > { %771 = vst.msk [vmem:[#allocation2 + $0x8] sm:$0xf] %vm768_vm10, %v749_v49 }
  0xfe   : > { %v657_v50 = vpop.permute.xlu0 %656  ;;  %932 = vst.msk [vmem:[#allocation2 + $0x8] sm:$0xf] %vm929_vm11, %v910_v48 }
  0xff   : > { %674 = vst.msk [vmem:[#allocation2 + $0x1c] sm:$0xf] %vm666_vm8, %v657_v50  ;;  %v1310_v51 = vld [vmem:[#allocation2 + $0x10] sm:$0xff] }
 0x100   : > { %941 = vst.msk [vmem:[#allocation2 + $0x8] sm:$0xf] %vm938_vm12, %v1384_v31  ;;  %1303 = vmatmul.msk.bf16.vlgmr.msra.gmra.mxu2 %vm999_vm13, %v1310_v51 }
 0x104   : > { %v710_v53 = vpop.permute.xlu1 %709 }
 0x105   : > { %727 = vst.msk [vmem:[#allocation2 + $0x1c] sm:$0xf] %vm719_vm9, %v710_v53 }
 0x106   : > { %v708_v54 = vpop.permute.xlu0 %707  ;;  %776 = vst.msk [vmem:[#allocation2 + $0x1c] sm:$0xf] %vm768_vm10, %v759_v52 }
 0x107   : > { %726 = vst.msk [vmem:[#allocation2 + $0x18] sm:$0xf] %vm719_vm9, %v708_v54 }
 0x10c   : > { %v757_v55 = vpop.permute.xlu1 %756 }
 0x10d   : > { %775 = vst.msk [vmem:[#allocation2 + $0x18] sm:$0xf] %vm768_vm10, %v757_v55 }
 0x10e   : > { %v912_v56 = vpop.permute.xlu0 %911 }
 0x10f   : > { %933 = vst.msk [vmem:[#allocation2 + $0xc] sm:$0xf] %vm929_vm11, %v912_v56 }
 0x110   : > { %942 = vst.msk [vmem:[#allocation2 + $0xc] sm:$0xf] %vm938_vm12, %v1384_v31 }
 0x114   : > { %v920_v57 = vpop.permute.xlu1 %919 }
 0x115   : > { %937 = vst.msk [vmem:[#allocation2 + $0x1c] sm:$0xf] %vm929_vm11, %v920_v57 }
 0x116   : > { %946 = vst.msk [vmem:[#allocation2 + $0x1c] sm:$0xf] %vm938_vm12, %v1384_v31  ;;  %v918_v58 = vpop.permute.xlu0 %917 }
 0x117   : > { %936 = vst.msk [vmem:[#allocation2 + $0x18] sm:$0xf] %vm929_vm11, %v918_v58  ;;  %v1309_v59 = vld [vmem:[#allocation2 + $0x8] sm:$0xff] }
 0x118   : > { %945 = vst.msk [vmem:[#allocation2 + $0x18] sm:$0xf] %vm938_vm12, %v1384_v31  ;;  %1302 = vmatmul.msk.bf16.vlgmr.msra.gmra.mxu1 %vm999_vm13, %v1309_v59 }
 0x11f   : > { %v1311_v60 = vld [vmem:[#allocation2 + $0x18] sm:$0xff] }
 0x120   : > { %1304 = vmatmul.msk.bf16.vlgmr.msra.gmra.mxu3 %vm999_vm13, %v1311_v60 }
 0x15d   : > { %v1021_v61 = vpop.f32.mrf.mxu0 }
 0x15e   : > { %1042 = vst.msk [vmem:[%s1742_s7] sm:$0xff] %vm1041_vm14, %v1021_v61  ;;  %v1071_v1 = vmul.f32 %v1021_v61, %v1021_v61  ;;  %v1050_v4 = vsel %vm1041_vm14, %v1021_v61, 0.0 }
 0x160   : > { %v1079_v6 = vsel %vm1041_vm14, %v1071_v1, 0.0 }
 0x165   : > { %v1023_v62 = vpop.f32.mrf.mxu0 }
 0x166   : > { %1043 = vst.msk [vmem:[%s1742_s7 + $0x8] sm:$0xff] %vm1041_vm14, %v1023_v62  ;;  %v1072_v2 = vmul.f32 %v1023_v62, %v1023_v62  ;;  %v1051_v5 = vsel %vm1041_vm14, %v1023_v62, 0.0 }
 0x167   : > { %v1052_v9 = vadd.f32 %v1051_v5, %v1050_v4 }
 0x168   : > { %v1080_v8 = vsel %vm1041_vm14, %v1072_v2, 0.0 }
 0x169   : > { %v1081_v11 = vadd.f32 %v1080_v8, %v1079_v6 }
 0x183   : > { %v1031_v63 = vpop.f32.mrf.mxu2 }
 0x184   : > { %1046 = vst.msk [vmem:[%s1742_s7 + $0x20] sm:$0xff] %vm1041_vm14, %v1031_v63  ;;  %v1075_v14 = vmul.f32 %v1031_v63, %v1031_v63  ;;  %v1057_v19 = vsel %vm1041_vm14, %v1031_v63, 0.0 }
 0x186   : > { %v1086_v23 = vsel %vm1041_vm14, %v1075_v14, 0.0 }
 0x18b   : > { %v1033_v0 = vpop.f32.mrf.mxu2 }
 0x18c   : > { %1047 = vst.msk [vmem:[%s1742_s7 + $0x28] sm:$0xff] %vm1041_vm14, %v1033_v0  ;;  %v1076_v26 = vmul.f32 %v1033_v0, %v1033_v0  ;;  %v1059_v28 = vsel %vm1041_vm14, %v1033_v0, 0.0 }
 0x18e   : > { %v1088_v31 = vsel %vm1041_vm14, %v1076_v26, 0.0 }
 0x195   : > { %v1026_v3 = vpop.f32.mrf.mxu1 }
 0x196   : > { %1044 = vst.msk [vmem:[%s1742_s7 + $0x10] sm:$0xff] %vm1041_vm14, %v1026_v3  ;;  %v1073_v7 = vmul.f32 %v1026_v3, %v1026_v3  ;;  %v1053_v10 = vsel %vm1041_vm14, %v1026_v3, 0.0 }
 0x197   : > { %v1054_v13 = vadd.f32 %v1053_v10, %v1052_v9 }
 0x198   : > { %v1082_v12 = vsel %vm1041_vm14, %v1073_v7, 0.0 }
 0x199   : > { %v1083_v18 = vadd.f32 %v1082_v12, %v1081_v11 }
 0x19d   : > { %v1028_v22 = vpop.f32.mrf.mxu1 }
 0x19e   : > { %1045 = vst.msk [vmem:[%s1742_s7 + $0x18] sm:$0xff] %vm1041_vm14, %v1028_v22  ;;  %v1055_v15 = vsel %vm1041_vm14, %v1028_v22, 0.0  ;;  %v1074_v16 = vmul.f32 %v1028_v22, %v1028_v22 }
 0x19f   : > { %v1056_v17 = vadd.f32 %v1055_v15, %v1054_v13 }
 0x1a0   : > { %v1084_v20 = vsel %vm1041_vm14, %v1074_v16, 0.0 }
 0x1a1   : > { %v1085_v21 = vadd.f32 %v1084_v20, %v1083_v18  ;;  %v1058_v24 = vadd.f32 %v1057_v19, %v1056_v17 }
 0x1a3   : > { %v1036_v25 = vpop.f32.mrf.mxu3  ;;  %v1087_v27 = vadd.f32 %v1086_v23, %v1085_v21  ;;  %v1060_v30 = vadd.f32 %v1059_v28, %v1058_v24 }
 0x1a4   : > { %1048 = vst.msk [vmem:[%s1742_s7 + $0x30] sm:$0xff] %vm1041_vm14, %v1036_v25  ;;  %v1077_v29 = vmul.f32 %v1036_v25, %v1036_v25  ;;  %v1061_v32 = vsel %vm1041_vm14, %v1036_v25, 0.0 }
 0x1a5   : > { %v1089_v33 = vadd.f32 %v1088_v31, %v1087_v27  ;;  %v1062_v35 = vadd.f32 %v1061_v32, %v1060_v30 }
 0x1a6   : > { %v1090_v34 = vsel %vm1041_vm14, %v1077_v29, 0.0 }
 0x1a7   : > { %v1091_v39 = vadd.f32 %v1090_v34, %v1089_v33 }
 0x1ab   : > { %v1038_v36 = vpop.f32.mrf.mxu3 }
 0x1ac   : > { %1049 = vst.msk [vmem:[%s1742_s7 + $0x38] sm:$0xff] %vm1041_vm14, %v1038_v36  ;;  %v1063_v37 = vsel %vm1041_vm14, %v1038_v36, 0.0  ;;  %v1078_v38 = vmul.f32 %v1038_v36, %v1038_v36 }
 0x1ad   : > { %v1064_v40 = vadd.f32 %v1063_v37, %v1062_v35 }
 0x1ae   : > { %v1092_v41 = vsel %vm1041_vm14, %v1078_v38, 0.0 }
 0x1af   : > { %v1065_v42 = vrot.slane %v1064_v40, 4  ;;  %v1093_v43 = vadd.f32 %v1092_v41, %v1091_v39 }
 0x1b1   : > { %v1066_v44 = vadd.f32 %v1065_v42, %v1064_v40  ;;  %v1094_v45 = vrot.slane %v1093_v43, 4 }
 0x1b3   : > { %v1067_v46 = vrot.slane %v1066_v44, 2  ;;  %v1095_v47 = vadd.f32 %v1094_v45, %v1093_v43 }
 0x1b5   : > { %v1068_v48 = vadd.f32 %v1067_v46, %v1066_v44  ;;  %v1096_v49 = vrot.slane %v1095_v47, 2 }
 0x1b7   : > { %v1069_v50 = vrot.slane %v1068_v48, 1  ;;  %v1097_v51 = vadd.f32 %v1096_v49, %v1095_v47 }
 0x1b9   : > { %v1098_v52 = vrot.slane %v1097_v51, 1  ;;  %v1070_v53 = vadd.f32 %v1069_v50, %v1068_v48 }
 0x1bb   : > { %v1099_v54 = vadd.f32 %v1098_v52, %v1097_v51 }
 0x1bd   : > { %v1101_v55 = vsel %vm1100_vm15, %v1070_v53, %v1099_v54 }
 0x1be   : > { %1103 = vst.msk [vmem:[%s212_s11] sm:$0x3] %vm1102_vm0, %v1101_v55 }
 0x1bf PF: > { %s14_s14 = sadd.s32 1, %s1377_s14   ;;  %s1795_s12 = smov %s1373_s13 }
 0x1c0   : > { %p11_p5 = scmp.ge.s32.totalorder %s14_s14, 4   ;;  %s1796_s13 = smov %s1798_s15 }
 0x1c2   :  { %13 = sbr.rel (!%p11_p5) target bundleno = 2 (0x2), region = 72 }

// kernel: encoder_block.4
= control target key start
LH: loop header
LB: loop body
LE: loop exit
PB: predicated region body
PF: predicated region fallthrough
CT: control target
= control target key end

     0   :  { %s1978_s18 = smov 0   ;;  %s1980_s19 = smov 0   ;;  %s2474_s0 = inlined_call_operand.vmem [shape: f32[2,8,8,8], index: 0, kind: input, shape index: {}]   ;;  %s2475_s1 = inlined_call_operand.vmem [shape: f32[1,8], index: 1, kind: input, shape index: {}]   ;;  %s2476_s2 = inlined_call_operand.vmem [shape: f32[1,8], index: 2, kind: input, shape index: {}]   ;;  %s2477_s3 = inlined_call_operand.vmem [shape: bf16[80,8], index: 3, kind: input, shape index: {}]   ;;  %s2478_s4 = inlined_call_operand.vmem [shape: f32[2,8,8,8], index: 4, kind: output, shape index: {0}]   ;;  %s2479_s5 = inlined_call_operand.vmem [shape: f32[2,1,2,8], index: 5, kind: output, shape index: {1}]  }
   0x1   :  { %s1982_s20 = smov 0  }
   0x2 LB: > { %s28_s21 = sadd.s32 1, %s1933_s19  ;;  %p1702_p0 = scmp.ge.s32.totalorder %s1937_s20, 1  ;;  %s1937_s20 = sphi %s1982_s20, %s16_s20   ;;  %s1933_s19 = sphi %s1980_s19, %s2489_s19   ;;  %s1929_s18 = sphi %s1978_s18, %s2488_s18  }
   0x3   : > { %p30_p1 = scmp.ge.s32.totalorder %s28_s21, 2  ;;  %p206_p2 = scmp.lt.s32.totalorder %s1937_s20, 3 }
   0x5   : > { %s2491_s21 = smov (%p30_p1, %s28_s21), 0  ;;  %p207_p3 = pnand %p1702_p0, %p206_p2 }
   0x6   : > { %p245_p4 = scmp.lt.s32.totalorder (!%p207_p3), %s1929_s18, 1  ;;  %s1940_s30 = smov (!%p207_p3), 16  }
   0x7   : > { %210 = sbr.rel (%p207_p3) target bundleno = 485 (0x1e5), region = 36  ;;  %s1941_s6 = smov (!%p207_p3), 8  }
   0x8   : > { %s1942_s7 = smov (!%p207_p3), 24   ;;  %s1943_s8 = smov (!%p207_p3), 32  }
   0x9   : > { %s1944_s9 = smov (!%p207_p3), 40   ;;  %s1945_s10 = smov (!%p207_p3), 48  }
   0xa   : > { %s1946_s11 = smov (!%p207_p3), 56   ;;  %s1947_s12 = smov (!%p207_p3), 64  }
   0xc   : > { %vm272_vm0 = vcmask 60416   ;;  %vm274_vm1 = vcmask 57344   ;;  %v1939_v0 = vmov 0   ;;  %s2493_s18 = smov (!%p245_p4, %s1929_s18), 1  ;;  %vm514_vm2 = vsmask.f32 3328 }
   0xd   : > { %273 = vst.msk [vmem:[#allocation2] sm:$0xf] %vm272_vm0, %v1939_v0  ;;  %vm515_vm3 = vsmask.f32 7440  ;;  %vm694_vm4 = vcmask 1042432   ;;  %s1854_s22 = sshll.u32 %s2493_s18, 6 }
   0xe   : > { %275 = vst.msk [vmem:[#allocation2 + $0x4] sm:$0x1] %vm274_vm1, %v1939_v0  ;;  %vm695_vm5 = vcmask 1046532   ;;  %v2016_v1 = vld [vmem:[%s2475_s1] ss:$0 sm:$0xff]  ;;  %s2025_s27 = scalar_lea.vmem %s2474_s0, %s1854_s22  ;;  %vm2057_vm7 = vmor %vm514_vm2, %vm515_vm3  ;;  %vm653_vm12 = vcmask 126016  }
   0xf   : > { %276 = vst.msk [vmem:[#allocation2 + $0x8] sm:$0xf] %vm272_vm0, %v1939_v0  ;;  %v2030_v4 = vld [vmem:[%s2476_s2] ss:$0 sm:$0xff]  ;;  %vm2037_vm6 = vmor %vm694_vm4, %vm695_vm5  ;;  %v295_v22 = vld [vmem:[%s2025_s27 + $0x8] sm:$0xff]  ;;  %vm753_vm13 = vcmask 191616  }
  0x10   : > { %277 = vst.msk [vmem:[#allocation2 + $0xc] sm:$0x1] %vm274_vm1, %v1939_v0  ;;  %v294_v15 = vld [vmem:[%s2025_s27] sm:$0xff]  ;;  %v297_v23 = vld [vmem:[%s2025_s27 + $0x18] sm:$0xff]  ;;  %v307_v26 = vmul.f32 %v2016_v1, %v295_v22  ;;  %v296_v30 = vld [vmem:[%s2025_s27 + $0x10] sm:$0xff]  ;;  %vm806_vm14 = vcmask 257216  }
  0x11   : > { %278 = vst.msk [vmem:[#allocation2 + $0x10] sm:$0xf] %vm272_vm0, %v1939_v0  ;;  %v306_v16 = vmul.f32 %v2016_v1, %v294_v15  ;;  %v298_v17 = vld [vmem:[%s2025_s27 + $0x20] sm:$0xff]  ;;  %v309_v27 = vmul.f32 %v2016_v1, %v297_v23  ;;  %v308_v34 = vmul.f32 %v2016_v1, %v296_v30  ;;  %v299_v35 = vld [vmem:[%s2025_s27 + $0x28] sm:$0xff]  ;;  %vm424_vm8 = vsmask.f32 7938 }
  0x12   : > { %279 = vst.msk [vmem:[#allocation2 + $0x14] sm:$0x1] %vm274_vm1, %v1939_v0  ;;  %v310_v21 = vmul.f32 %v2016_v1, %v298_v17  ;;  %v319_v32 = vadd.f32 %v2030_v4, %v307_v26  ;;  %v311_v38 = vmul.f32 %v2016_v1, %v299_v35  ;;  %vm430_vm9 = vsmask.f32 256  ;;  %vm2093_vm10 = vmand %vm272_vm0, %vm424_vm8 }
  0x13   : > { %280 = vst.msk [vmem:[#allocation2 + $0x18] sm:$0xf] %vm272_vm0, %v1939_v0  ;;  %v318_v25 = vadd.f32 %v2030_v4, %v306_v16  ;;  %v321_v33 = vadd.f32 %v2030_v4, %v309_v27  ;;  %v320_v42 = vadd.f32 %v2030_v4, %v308_v34  ;;  %vm2101_vm11 = vmand %vm274_vm1, %vm430_vm9  ;;  %vm967_vm15 = vcmask 322816  }
  0x14   : > { %v498_v2 = vld [vmem:[#allocation2] sm:$0xf]  ;;  %281 = vst.msk [vmem:[#allocation2 + $0x1c] sm:$0x1] %vm274_vm1, %v1939_v0  ;;  %v322_v29 = vadd.f32 %v2030_v4, %v310_v21  ;;  %v327_v40 = vmax.f32 %v319_v32, 0.0  ;;  %v323_v44 = vadd.f32 %v2030_v4, %v311_v38  ;;  %vm1117_vm2 = vcmask 454016  }
  0x15   : > { %v662_v3 = vld [vmem:[#allocation2] sm:$0xe]  ;;  %v499_v5 = vld [vmem:[#allocation2 + $0x4] sm:$0x1]  ;;  %v518_v6 = vshrl.u32 %v498_v2, 16  ;;  %v521_v7 = vshll.u32 %v498_v2, 16 }
  0x16   : > { %282 = vst.msk [vmem:[#allocation2 + $0x20] sm:$0xf] %vm272_vm0, %v1939_v0  ;;  %v527_v8 = vshll.u32 %v499_v5, 16  ;;  %v663_v9 = vld [vmem:[#allocation2 + $0x4] sm:$0x1]  ;;  %v1708_v11 = vrot.slane %v662_v3, 9  ;;  %v335_v47 = vpack.c.bf16 %v327_v40, %v327_v40 }
  0x17   : > { %283 = vst.msk [vmem:[#allocation2 + $0x24] sm:$0x1] %vm274_vm1, %v1939_v0  ;;  %v520_v12 = vrot.slane %v518_v6, 4  ;;  %v523_v13 = vrot.slane %v521_v7, 5  ;;  %v699_v14 = vrot.slane %v663_v9, 5  ;;  %v326_v31 = vmax.f32 %v318_v25, 0.0 }
  0x18   : > { %284 = vst.msk [vmem:[#allocation2 + $0x28] sm:$0xf] %vm272_vm0, %v1939_v0  ;;  %v529_v19 = vrot.slane %v527_v8, 5  ;;  %v330_v37 = vmax.f32 %v322_v29, 0.0  ;;  %v329_v41 = vmax.f32 %v321_v33, 0.0  ;;  %v328_v51 = vmax.f32 %v320_v42, 0.0 }
  0x19   : > { %285 = vst.msk [vmem:[#allocation2 + $0x2c] sm:$0x1] %vm274_vm1, %v1939_v0  ;;  %v524_v18 = vor.u32 %v523_v13, %v520_v12  ;;  %v700_v20 = vsel %vm2037_vm6, %v1708_v11, %v699_v14  ;;  %v334_v39 = vpack.c.bf16 %v326_v31, %v326_v31  ;;  %v331_v52 = vmax.f32 %v323_v44, 0.0  ;;  %v426_v58 = vld [vmem:[#allocation2 + $0x8] sm:$0xf]  ;;  %v300_v33 = vld [vmem:[%s2025_s27 + $0x30] sm:$0xff] }
  0x1a   : > { %286 = vst.msk [vmem:[#allocation2 + $0x30] sm:$0xf] %vm272_vm0, %v1939_v0  ;;  %729 = vrot.lane.b32.xlu1 %v700_v20, %s1940_s30  ;;  %v338_v43 = vpack.c.bf16 %v330_v37, %v330_v37  ;;  %v337_v48 = vpack.c.bf16 %v329_v41, %v329_v41  ;;  %v351_v54 = vshrl.u32 %v335_v47, 16  ;;  %v354_v55 = vshll.u32 %v335_v47, 16  ;;  %v435_v11 = vld [vmem:[#allocation2 + $0x10] sm:$0xf] }
  0x1b   : > { %287 = vst.msk [vmem:[#allocation2 + $0x34] sm:$0x1] %vm274_vm1, %v1939_v0  ;;  %v525_v28 = vrot.slane %v524_v18, 4  ;;  %v343_v45 = vshrl.u32 %v334_v39, 16  ;;  %v346_v46 = vshll.u32 %v334_v39, 16  ;;  %v336_v61 = vpack.c.bf16 %v328_v51, %v328_v51 }
  0x1c   : > { %288 = vst.msk [vmem:[#allocation2 + $0x38] sm:$0xf] %vm272_vm0, %v1939_v0  ;;  %v375_v49 = vshrl.u32 %v338_v43, 16  ;;  %v378_v50 = vshll.u32 %v338_v43, 16  ;;  %v367_v56 = vshrl.u32 %v337_v48, 16  ;;  %v370_v60 = vshll.u32 %v337_v48, 16 }
  0x1d   : > { %289 = vst.msk [vmem:[#allocation2 + $0x3c] sm:$0x1] %vm274_vm1, %v1939_v0  ;;  %v530_v36 = vsel %vm2057_vm7, %v525_v28, %v529_v19  ;;  %v345_v53 = vrot.slane %v343_v45, 7  ;;  %v2097_v2 = vrot.slane %v351_v54, 7  ;;  %v447_v12 = vld [vmem:[#allocation2 + $0x20] sm:$0xf]  ;;  %v339_v13 = vpack.c.bf16 %v331_v52, %v331_v52 }
  0x1e   : > { %290 = vst.msk [vmem:[#allocation2 + $0x40] sm:$0xf] %vm272_vm0, %v1939_v0  ;;  %629 = vrot.lane.b32.xlu0 %v530_v36, %s1941_s6  ;;  %v377_v59 = vrot.slane %v375_v49, 7  ;;  %v369_v6 = vrot.slane %v367_v56, 7  ;;  %v450_v17 = vld [vmem:[#allocation2 + $0x24] sm:$0x1]  ;;  %v312_v38 = vmul.f32 %v2016_v1, %v300_v33 }
  0x1f   : > { %291 = vst.msk [vmem:[#allocation2 + $0x44] sm:$0x1] %vm274_vm1, %v1939_v0  ;;  %v348_v62 = vor.u32 %v346_v46, %v345_v53  ;;  %v453_v63 = vld [vmem:[#allocation2 + $0x28] sm:$0xf]  ;;  %v349_v7 = vrot.slane %v345_v53, 4  ;;  %v356_v15 = vor.u32 %v354_v55, %v2097_v2  ;;  %v359_v18 = vshrl.u32 %v336_v61, 16 }
  0x20   : > { %292 = vst.msk [vmem:[#allocation2 + $0x48] sm:$0xf] %vm272_vm0, %v1939_v0  ;;  %v456_v5 = vld [vmem:[#allocation2 + $0x2c] sm:$0x1]  ;;  %v380_v8 = vor.u32 %v378_v50, %v377_v59  ;;  %v381_v9 = vrot.slane %v377_v59, 4  ;;  %v372_v16 = vor.u32 %v370_v60, %v369_v6  ;;  %v373_v21 = vrot.slane %v369_v6, 4 }
  0x21   : > { %293 = vst.msk [vmem:[#allocation2 + $0x4c] sm:$0x1] %vm274_vm1, %v1939_v0  ;;  %v427_v14 = vsel %vm2093_vm10, %v348_v62, %v426_v58  ;;  %v432_v22 = vld [vmem:[#allocation2 + $0xc] sm:$0x1]  ;;  %v436_v23 = vsel %vm2093_vm10, %v356_v15, %v435_v11  ;;  %v383_v27 = vshrl.u32 %v339_v13, 16  ;;  %v361_v29 = vrot.slane %v359_v18, 7 }
  0x22   : > { %428 = vst [vmem:[#allocation2 + $0x8] sm:$0xf] %v427_v14  ;;  %v454_v19 = vsel %vm2093_vm10, %v380_v8, %v453_v63  ;;  %v457_v20 = vsel %vm2101_vm11, %v381_v9, %v456_v5  ;;  %v448_v25 = vsel %vm2093_vm10, %v372_v16, %v447_v12  ;;  %v451_v26 = vsel %vm2101_vm11, %v373_v21, %v450_v17  ;;  %v438_v35 = vld [vmem:[#allocation2 + $0x14] sm:$0x1]  ;;  %v2124_v37 = vld [vmem:[#allocation2 + $0x18] sm:$0xf] }
  0x23   : > { %455 = vst [vmem:[#allocation2 + $0x28] sm:$0xf] %v454_v19  ;;  %v433_v28 = vsel %vm2101_vm11, %v349_v7, %v432_v22  ;;  %v362_v30 = vshll.u32 %v336_v61, 16  ;;  %v2120_v31 = vrot.slane %v383_v27, 7  ;;  %v386_v32 = vshll.u32 %v339_v13, 16 }
  0x24   : > { %437 = vst [vmem:[#allocation2 + $0x10] sm:$0xf] %v436_v23  ;;  %v357_v34 = vrot.slane %v2097_v2, 4  ;;  %v365_v36 = vrot.slane %v361_v29, 4  ;;  %v444_v43 = vld [vmem:[#allocation2 + $0x1c] sm:$0x1]  ;;  %v2132_v50 = vadd.f32 %v2030_v4, %v312_v38 }
  0x25   : > { %458 = vst [vmem:[#allocation2 + $0x2c] sm:$0x1] %v457_v20  ;;  %v364_v42 = vor.u32 %v362_v30, %v361_v29  ;;  %v2127_v44 = vld [vmem:[#allocation2 + $0x30] sm:$0xf]  ;;  %v388_v49 = vor.u32 %v386_v32, %v2120_v31  ;;  %vm1064_vm1 = vcmask 388416   ;;  %vm1375_vm3 = vcmask 585216  }
  0x26   : > { %449 = vst [vmem:[#allocation2 + $0x20] sm:$0xf] %v448_v25  ;;  %v332_v60 = vmax.f32 %v2132_v50, 0.0  ;;  %v439_v5 = vsel %vm2101_vm11, %v357_v34, %v438_v35  ;;  %v445_v12 = vsel %vm2101_vm11, %v365_v36, %v444_v43  ;;  %vm1384_vm4 = vcmask 650816  }
  0x27   : > { %452 = vst [vmem:[#allocation2 + $0x24] sm:$0x1] %v451_v26  ;;  %v442_v6 = vsel %vm2093_vm10, %v364_v42, %v2124_v37  ;;  %v460_v13 = vsel %vm2093_vm10, %v388_v49, %v2127_v44  ;;  %vm1461_vm5 = vcmask 654336   ;;  %vm1564_vm8 = vcmask 58368  }
  0x28   : > { %434 = vst [vmem:[#allocation2 + $0xc] sm:$0x1] %v433_v28  ;;  %v340_v50 = vpack.c.bf16 %v332_v60, %v332_v60  ;;  %v389_v60 = vrot.slane %v2120_v31, 4 }
  0x29   : > { %v1716_v39 = vld [vmem:[#allocation2 + $0x8] sm:$0xf]  ;;  %440 = vst [vmem:[#allocation2 + $0x14] sm:$0x1] %v439_v5 }
  0x2a   : > { %v664_v40 = vld [vmem:[#allocation2 + $0x8] sm:$0xe]  ;;  %782 = vrot.lane.b32.xlu0 %v1716_v39, %s1942_s7  ;;  %443 = vst [vmem:[#allocation2 + $0x18] sm:$0xf] %v442_v6 }
  0x2b   : > { %v500_v41 = vld [vmem:[#allocation2 + $0x8] sm:$0xf]  ;;  %v1709_v47 = vrot.slane %v664_v40, 9  ;;  %v1717_v51 = vld [vmem:[#allocation2 + $0x10] sm:$0xf] }
  0x2c   : > { %v1720_v45 = vld [vmem:[#allocation2 + $0x28] sm:$0xf]  ;;  %v532_v48 = vshrl.u32 %v500_v41, 16  ;;  %v535_v53 = vshll.u32 %v500_v41, 16  ;;  %784 = vrot.lane.b32.xlu1 %v1717_v51, %s1942_s7  ;;  %v673_v55 = vld [vmem:[#allocation2 + $0x2c] sm:$0x1] }
  0x2d   : > { %v672_v46 = vld [vmem:[#allocation2 + $0x28] sm:$0xe]  ;;  %790 = vrot.lane.b32.xlu2 %v1720_v45, %s1942_s7  ;;  %v719_v61 = vrot.slane %v673_v55, 5  ;;  %v670_v62 = vld [vmem:[#allocation2 + $0x20] sm:$0xe] }
  0x2e   : > { %v1713_v52 = vrot.slane %v672_v46, 9  ;;  %v1724_v54 = vld [vmem:[#allocation2 + $0x8] sm:$0xf]  ;;  %v534_v56 = vrot.slane %v532_v48, 4  ;;  %v537_v63 = vrot.slane %v535_v53, 5  ;;  %v1712_v8 = vrot.slane %v670_v62, 9 }
  0x2f   : > { %v832_v58 = vshrl.u32 %v1724_v54, 16  ;;  %v835_v59 = vshll.u32 %v1724_v54, 16  ;;  %v506_v2 = vld [vmem:[#allocation2 + $0x20] sm:$0xf]  ;;  %v671_v7 = vld [vmem:[#allocation2 + $0x24] sm:$0x1] }
  0x30   : > { %v507_v9 = vld [vmem:[#allocation2 + $0x24] sm:$0x1]  ;;  %v574_v11 = vshrl.u32 %v506_v2, 16  ;;  %v720_v14 = vsel %vm2037_vm6, %v1713_v52, %v719_v61  ;;  %v715_v15 = vrot.slane %v671_v7, 5  ;;  %v665_v16 = vld [vmem:[#allocation2 + $0xc] sm:$0x1]  ;;  %v538_v18 = vor.u32 %v537_v63, %v534_v56 }
  0x31   : > { %v501_v17 = vld [vmem:[#allocation2 + $0xc] sm:$0x1]  ;;  %v577_v19 = vshll.u32 %v506_v2, 16  ;;  %v703_v20 = vrot.slane %v665_v16, 5  ;;  %v583_v23 = vshll.u32 %v507_v9, 16  ;;  %v834_v29 = vrot.slane %v832_v58, 4 }
  0x32   : > { %v541_v21 = vshll.u32 %v501_v17, 16  ;;  %v576_v22 = vrot.slane %v574_v11, 4  ;;  %v1725_v25 = vld [vmem:[#allocation2 + $0xc] sm:$0x1]  ;;  %v716_v26 = vsel %vm2037_vm6, %v1712_v8, %v715_v15  ;;  %v539_v27 = vrot.slane %v538_v18, 4  ;;  %739 = vrot.lane.b32.xlu0 %v720_v14, %s1940_s30 }
  0x33   : > { %v579_v28 = vrot.slane %v577_v19, 5  ;;  %v704_v30 = vsel %vm2037_vm6, %v1709_v47, %v703_v20  ;;  %v585_v33 = vrot.slane %v583_v23, 5  ;;  %v837_v34 = vrot.slane %v835_v59, 5  ;;  %v502_v35 = vld [vmem:[#allocation2 + $0x10] sm:$0xf] }
  0x34   : > { %v543_v32 = vrot.slane %v541_v21, 5  ;;  %v841_v37 = vshll.u32 %v1725_v25, 16  ;;  %v546_v38 = vshrl.u32 %v502_v35, 16  ;;  %v549_v39 = vshll.u32 %v502_v35, 16  ;;  %731 = vrot.lane.b32.xlu1 %v704_v30, %s1940_s30  ;;  %446 = vst [vmem:[#allocation2 + $0x1c] sm:$0x1] %v445_v12 }
  0x35   : > { %737 = vrot.lane.b32.xlu2 %v716_v26, %s1940_s30  ;;  %v580_v36 = vor.u32 %v579_v28, %v576_v22  ;;  %v838_v40 = vor.u32 %v837_v34, %v834_v29  ;;  %v508_v41 = vld [vmem:[#allocation2 + $0x28] sm:$0xf]  ;;  %v509_v42 = vld [vmem:[#allocation2 + $0x2c] sm:$0x1]  ;;  %461 = vst [vmem:[#allocation2 + $0x30] sm:$0xf] %v460_v13 }
  0x36   : > { %v843_v44 = vrot.slane %v841_v37, 5  ;;  %v548_v45 = vrot.slane %v546_v38, 4  ;;  %v551_v46 = vrot.slane %v549_v39, 5  ;;  %v588_v48 = vshrl.u32 %v508_v41, 16  ;;  %v503_v54 = vld [vmem:[#allocation2 + $0x14] sm:$0x1] }
  0x37   : > { %v581_v43 = vrot.slane %v580_v36, 4  ;;  %v839_v47 = vrot.slane %v838_v40, 4  ;;  %v591_v49 = vshll.u32 %v508_v41, 16  ;;  %v544_v51 = vsel %vm2057_vm7, %v539_v27, %v543_v32  ;;  %v504_v62 = vld [vmem:[#allocation2 + $0x18] sm:$0xf] }
  0x38   : > { %v552_v52 = vor.u32 %v551_v46, %v548_v45  ;;  %v590_v55 = vrot.slane %v588_v48, 4  ;;  %v597_v58 = vshll.u32 %v509_v42, 16  ;;  %v555_v61 = vshll.u32 %v503_v54, 16  ;;  %v462_v16 = vld [vmem:[#allocation2 + $0x34] sm:$0x1] }
  0x39   : > { %v586_v53 = vsel %vm2057_vm7, %v581_v43, %v585_v33  ;;  %v593_v56 = vrot.slane %v591_v49, 5  ;;  %v844_v59 = vsel %vm2057_vm7, %v839_v47, %v843_v44  ;;  %v391_v2 = vshrl.u32 %v340_v50, 16  ;;  %v1726_v17 = vld [vmem:[#allocation2 + $0x10] sm:$0xf]  ;;  %v1727_v21 = vld [vmem:[#allocation2 + $0x14] sm:$0x1] }
  0x3a   : > { %631 = vrot.lane.b32.xlu0 %v544_v51, %s1941_s6  ;;  %v553_v5 = vrot.slane %v552_v52, 4  ;;  %v557_v6 = vrot.slane %v555_v61, 5  ;;  %v560_v8 = vshrl.u32 %v504_v62, 16  ;;  %v563_v9 = vshll.u32 %v504_v62, 16  ;;  %v1740_v30 = vld [vmem:[#allocation2 + $0x8] sm:$0xe] }
  0x3b   : > { %v594_v63 = vor.u32 %v593_v56, %v590_v55  ;;  %v505_v7 = vld [vmem:[#allocation2 + $0x1c] sm:$0x1]  ;;  %v599_v13 = vrot.slane %v597_v58, 5  ;;  %v463_v31 = vsel %vm2101_vm11, %v389_v60, %v462_v16  ;;  %v393_v22 = vrot.slane %v391_v2, 7  ;;  %v1741_v32 = vld [vmem:[#allocation2 + $0xc] sm:$0x1] }
  0x3c   : > { %943 = vrot.lane.b32.xlu1 %v844_v59, %s1943_s8  ;;  %v569_v11 = vshll.u32 %v505_v7, 16  ;;  %v562_v14 = vrot.slane %v560_v8, 4  ;;  %v565_v15 = vrot.slane %v563_v9, 5  ;;  %v558_v18 = vsel %vm2057_vm7, %v553_v5, %v557_v6  ;;  %464 = vst [vmem:[#allocation2 + $0x34] sm:$0x1] %v463_v31 }
  0x3d   : > { %637 = vrot.lane.b32.xlu2 %v586_v53, %s1941_s6  ;;  %v595_v12 = vrot.slane %v594_v63, 4  ;;  %v846_v25 = vshrl.u32 %v1726_v17, 16  ;;  %v849_v26 = vshll.u32 %v1726_v17, 16  ;;  %v855_v27 = vshll.u32 %v1727_v21, 16  ;;  %v465_v36 = vld [vmem:[#allocation2 + $0x38] sm:$0xf] }
  0x3e   : > { %v566_v19 = vor.u32 %v565_v15, %v562_v14  ;;  %v571_v20 = vrot.slane %v569_v11, 5  ;;  %v394_v29 = vshll.u32 %v340_v50, 16  ;;  %v1734_v37 = vld [vmem:[#allocation2 + $0x30] sm:$0xf]  ;;  %v468_v41 = vld [vmem:[#allocation2 + $0x3c] sm:$0x1] }
  0x3f   : > { %v600_v23 = vsel %vm2057_vm7, %v595_v12, %v599_v13  ;;  %v848_v33 = vrot.slane %v846_v25, 4  ;;  %v851_v34 = vrot.slane %v849_v26, 5  ;;  %v857_v39 = vrot.slane %v855_v27, 5  ;;  %v666_v44 = vld [vmem:[#allocation2 + $0x10] sm:$0xe] }
  0x40   : > { %v567_v28 = vrot.slane %v566_v19, 4  ;;  %v396_v40 = vor.u32 %v394_v29, %v393_v22  ;;  %v1756_v42 = vrot.slane %v1740_v30, 9  ;;  %v1010_v43 = vrot.slane %v1741_v32, 5  ;;  %v1721_v46 = vld [vmem:[#allocation2 + $0x30] sm:$0xf] }
  0x41   : > { %v852_v38 = vor.u32 %v851_v34, %v848_v33  ;;  %v397_v45 = vrot.slane %v393_v22, 4  ;;  %v667_v47 = vld [vmem:[#allocation2 + $0x14] sm:$0x1]  ;;  %v902_v50 = vshrl.u32 %v1734_v37, 16  ;;  %v905_v51 = vshll.u32 %v1734_v37, 16 }
  0x42   : > { %633 = vrot.lane.b32.xlu0 %v558_v18, %s1941_s6  ;;  %v572_v35 = vsel %vm2057_vm7, %v567_v28, %v571_v20  ;;  %v466_v49 = vsel %vm2093_vm10, %v396_v40, %v465_v36  ;;  %v1732_v53 = vld [vmem:[#allocation2 + $0x28] sm:$0xf]  ;;  %v1011_v58 = vsel %vm2037_vm6, %v1756_v42, %v1010_v43  ;;  %v1742_v59 = vld [vmem:[#allocation2 + $0x10] sm:$0xe]  ;;  %v1743_v61 = vld [vmem:[#allocation2 + $0x14] sm:$0x1] }
  0x43   : > { %v853_v48 = vrot.slane %v852_v38, 4  ;;  %467 = vst [vmem:[#allocation2 + $0x38] sm:$0xf] %v466_v49  ;;  %v469_v52 = vsel %vm2101_vm11, %v397_v45, %v468_v41  ;;  %v888_v55 = vshrl.u32 %v1732_v53, 16  ;;  %v891_v56 = vshll.u32 %v1732_v53, 16 }
  0x44   : > { %635 = vrot.lane.b32.xlu1 %v572_v35, %s1941_s6  ;;  %470 = vst [vmem:[#allocation2 + $0x3c] sm:$0x1] %v469_v52  ;;  %v1710_v62 = vrot.slane %v666_v44, 9  ;;  %v707_v63 = vrot.slane %v667_v47, 5  ;;  %v668_v60 = vld [vmem:[#allocation2 + $0x18] sm:$0xe] }
  0x45   : > { %639 = vrot.lane.b32.xlu2 %v600_v23, %s1941_s6  ;;  %v858_v54 = vsel %vm2057_vm7, %v853_v48, %v857_v39  ;;  %v669_v2 = vld [vmem:[#allocation2 + $0x1c] sm:$0x1]  ;;  %v904_v5 = vrot.slane %v902_v50, 4  ;;  %v907_v6 = vrot.slane %v905_v51, 5  ;;  %v510_v7 = vld [vmem:[#allocation2 + $0x30] sm:$0xf] }
  0x46   : > { %v1735_v8 = vld [vmem:[#allocation2 + $0x34] sm:$0x1]  ;;  %v1757_v9 = vrot.slane %v1742_v59, 9  ;;  %v1014_v11 = vrot.slane %v1743_v61, 5  ;;  %v890_v12 = vrot.slane %v888_v55, 4  ;;  %v893_v13 = vrot.slane %v891_v56, 5 }
  0x47   : > { %v1711_v14 = vrot.slane %v668_v60, 9  ;;  %v711_v15 = vrot.slane %v669_v2, 5  ;;  %v1733_v16 = vld [vmem:[#allocation2 + $0x2c] sm:$0x1]  ;;  %v708_v31 = vsel %vm2037_vm6, %v1710_v62, %v707_v63  ;;  %v908_v18 = vor.u32 %v907_v6, %v904_v5  ;;  %v511_v34 = vld [vmem:[#allocation2 + $0x34] sm:$0x1] }
  0x48   : > { %v911_v19 = vshll.u32 %v1735_v8, 16  ;;  %v602_v20 = vshrl.u32 %v510_v7, 16  ;;  %v605_v21 = vshll.u32 %v510_v7, 16  ;;  %v1015_v22 = vsel %vm2037_vm6, %v1757_v9, %v1014_v11  ;;  %v1764_v44 = vld [vmem:[#allocation2 + $0x10] sm:$0xf] }
  0x49   : > { %v894_v23 = vor.u32 %v893_v13, %v890_v12  ;;  %v897_v25 = vshll.u32 %v1733_v16, 16  ;;  %v712_v26 = vsel %vm2037_vm6, %v1711_v14, %v711_v15  ;;  %v909_v29 = vrot.slane %v908_v18, 4  ;;  %v1772_v49 = vld [vmem:[#allocation2 + $0x10] sm:$0xf]  ;;  %v1774_v52 = vld [vmem:[#allocation2 + $0x18] sm:$0xf] }
  0x4a   : > { %792 = vrot.lane.b32.xlu0 %v1721_v46, %s1942_s7  ;;  %v512_v17 = vld [vmem:[#allocation2 + $0x38] sm:$0xf]  ;;  %v913_v30 = vrot.slane %v911_v19, 5  ;;  %v604_v32 = vrot.slane %v602_v20, 4  ;;  %v607_v33 = vrot.slane %v605_v21, 5  ;;  %v611_v42 = vshll.u32 %v511_v34, 16 }
  0x4b   : > { %v616_v27 = vshrl.u32 %v512_v17, 16  ;;  %v619_v28 = vshll.u32 %v512_v17, 16  ;;  %v895_v35 = vrot.slane %v894_v23, 4  ;;  %v899_v36 = vrot.slane %v897_v25, 5  ;;  %v513_v39 = vld [vmem:[#allocation2 + $0x3c] sm:$0x1] }
  0x4c   : > { %1040 = vrot.lane.b32.xlu1 %v1011_v58, %s1944_s9  ;;  %v914_v40 = vsel %vm2057_vm7, %v909_v29, %v913_v30  ;;  %v608_v41 = vor.u32 %v607_v33, %v604_v32  ;;  %v625_v46 = vshll.u32 %v513_v39, 16  ;;  %v613_v48 = vrot.slane %v611_v42, 5  ;;  %v1765_v56 = vld [vmem:[#allocation2 + $0x18] sm:$0xf]  ;;  %v1748_v62 = vld [vmem:[#allocation2 + $0x28] sm:$0xe] }
  0x4d   : > { %945 = vrot.lane.b32.xlu2 %v858_v54, %s1943_s8  ;;  %v618_v37 = vrot.slane %v616_v27, 4  ;;  %v621_v38 = vrot.slane %v619_v28, 5  ;;  %v900_v43 = vsel %vm2057_vm7, %v895_v35, %v899_v36  ;;  %v1143_v54 = vshrl.u32 %v1772_v49, 16  ;;  %v1749_v63 = vld [vmem:[#allocation2 + $0x2c] sm:$0x1]  ;;  %v301_v42 = vld [vmem:[%s2025_s27 + $0x38] sm:$0xff] }
  0x4e   : > { %v609_v47 = vrot.slane %v608_v41, 4  ;;  %v627_v51 = vrot.slane %v625_v46, 5  ;;  %v1146_v55 = vshll.u32 %v1772_v49, 16  ;;  %v1157_v59 = vshrl.u32 %v1774_v52, 16  ;;  %v1773_v5 = vld [vmem:[#allocation2 + $0x14] sm:$0x1] }
  0x4f   : > { %v622_v45 = vor.u32 %v621_v38, %v618_v37  ;;  %v1160_v61 = vshll.u32 %v1774_v52, 16  ;;  %v1145_v60 = vrot.slane %v1143_v54, 4  ;;  %v1760_v6 = vrot.slane %v1748_v62, 9  ;;  %v1775_v8 = vld [vmem:[#allocation2 + $0x1c] sm:$0x1] }
  0x50   : > { %v614_v53 = vsel %vm2057_vm7, %v609_v47, %v613_v48  ;;  %v1148_v2 = vrot.slane %v1146_v55, 5  ;;  %v1026_v7 = vrot.slane %v1749_v63, 5  ;;  %v1159_v9 = vrot.slane %v1157_v59, 4  ;;  %v1728_v12 = vld [vmem:[#allocation2 + $0x18] sm:$0xf] }
  0x51   : > { %v623_v50 = vrot.slane %v622_v45, 4  ;;  %v1162_v11 = vrot.slane %v1160_v61, 5  ;;  %v1719_v13 = vld [vmem:[#allocation2 + $0x20] sm:$0xf]  ;;  %v1152_v15 = vshll.u32 %v1773_v5, 16  ;;  %v1166_v16 = vshll.u32 %v1775_v8, 16 }
  0x52   : > { %733 = vrot.lane.b32.xlu0 %v708_v31, %s1940_s30  ;;  %v1149_v14 = vor.u32 %v1148_v2, %v1145_v60  ;;  %v1718_v31 = vld [vmem:[#allocation2 + $0x18] sm:$0xf]  ;;  %v1027_v17 = vsel %vm2037_vm6, %v1760_v6, %v1026_v7  ;;  %v860_v19 = vshrl.u32 %v1728_v12, 16  ;;  %v863_v20 = vshll.u32 %v1728_v12, 16  ;;  %v1750_v21 = vld [vmem:[#allocation2 + $0x30] sm:$0xe] }
  0x53   : > { %v628_v58 = vsel %vm2057_vm7, %v623_v50, %v627_v51  ;;  %v1163_v18 = vor.u32 %v1162_v11, %v1159_v9  ;;  %v1154_v25 = vrot.slane %v1152_v15, 5  ;;  %v1168_v29 = vrot.slane %v1166_v16, 5  ;;  %v1729_v33 = vld [vmem:[#allocation2 + $0x1c] sm:$0x1]  ;;  %v1730_v34 = vld [vmem:[#allocation2 + $0x20] sm:$0xf] }
  0x54   : > { %735 = vrot.lane.b32.xlu1 %v712_v26, %s1940_s30  ;;  %v1150_v23 = vrot.slane %v1149_v14, 4  ;;  %v1761_v26 = vrot.slane %v1750_v21, 9  ;;  %v862_v30 = vrot.slane %v860_v19, 4  ;;  %v865_v32 = vrot.slane %v863_v20, 5  ;;  %v676_v36 = vld [vmem:[#allocation2 + $0x38] sm:$0xe] }
  0x55   : > { %1042 = vrot.lane.b32.xlu2 %v1015_v22, %s1944_s9  ;;  %v1751_v22 = vld [vmem:[#allocation2 + $0x34] sm:$0x1]  ;;  %v1164_v28 = vrot.slane %v1163_v18, 4  ;;  %v677_v37 = vld [vmem:[#allocation2 + $0x3c] sm:$0x1]  ;;  %v877_v41 = vshll.u32 %v1730_v34, 16  ;;  %v313_v48 = vmul.f32 %v2016_v1, %v301_v42 }
  0x56   : > { %v1030_v27 = vrot.slane %v1751_v22, 5  ;;  %v1155_v35 = vsel %vm2057_vm7, %v1150_v23, %v1154_v25  ;;  %v674_v39 = vld [vmem:[#allocation2 + $0x30] sm:$0xe]  ;;  %v869_v45 = vshll.u32 %v1729_v33, 16  ;;  %v675_v46 = vld [vmem:[#allocation2 + $0x34] sm:$0x1] }
  0x57   : > { %v481_v47 = vld [vmem:[#allocation2] sm:$0xf]  ;;  %v1715_v49 = vrot.slane %v676_v36, 9  ;;  %v727_v50 = vrot.slane %v677_v37, 5  ;;  %v1714_v51 = vrot.slane %v674_v39, 9  ;;  %v723_v52 = vrot.slane %v675_v46, 5 }
  0x58   : > { %v1031_v38 = vsel %vm2037_vm6, %v1761_v26, %v1030_v27  ;;  %490 = vst.msk [vmem:[#allocation3] sm:$0xf] %vm272_vm0, %v481_v47  ;;  %v879_v54 = vrot.slane %v877_v41, 5  ;;  %v325_v55 = vadd.f32 %v2030_v4, %v313_v48  ;;  %v1731_v59 = vld [vmem:[#allocation2 + $0x24] sm:$0x1] }
  0x59   : > { %v485_v61 = vld [vmem:[#allocation2 + $0x20] sm:$0xf]  ;;  %v728_v62 = vsel %vm2037_vm6, %v1715_v49, %v727_v50  ;;  %v724_v63 = vsel %vm2037_vm6, %v1714_v51, %v723_v52  ;;  %v883_v2 = vshll.u32 %v1731_v59, 16  ;;  %v1768_v14 = vld [vmem:[#allocation2 + $0x30] sm:$0xf] }
  0x5a   : > { %953 = vrot.lane.b32.xlu0 %v914_v40, %s1943_s8  ;;  %v874_v40 = vshrl.u32 %v1730_v34, 16  ;;  %494 = vst.msk [vmem:[#allocation3 + $0x10] sm:$0xf] %vm272_vm0, %v485_v61  ;;  %v333_v1 = vmax.f32 %v325_v55, 0.0  ;;  %v1769_v15 = vld [vmem:[#allocation2 + $0x38] sm:$0xf] }
  0x5b   : > { %v885_v9 = vrot.slane %v883_v2, 5  ;;  %v1790_v16 = vld [vmem:[#allocation2 + $0x18] sm:$0xe]  ;;  %v1788_v19 = vld [vmem:[#allocation2 + $0x10] sm:$0xe] }
  0x5c   : > { %1093 = vrot.lane.b32.xlu1 %v1764_v44, %s1945_s10  ;;  %v866_v44 = vor.u32 %v865_v32, %v862_v30  ;;  %v341_v5 = vpack.c.bf16 %v333_v1, %v333_v1  ;;  %v1789_v20 = vld [vmem:[#allocation2 + $0x14] sm:$0x1]  ;;  %v486_v21 = vld [vmem:[#allocation2 + $0x28] sm:$0xf]  ;;  %v1805_v22 = vrot.slane %v1790_v16, 9  ;;  %v1804_v26 = vrot.slane %v1788_v19, 9 }
  0x5d   : > { %951 = vrot.lane.b32.xlu2 %v900_v43, %s1943_s8  ;;  %v1169_v43 = vsel %vm2057_vm7, %v1164_v28, %v1168_v29  ;;  %495 = vst.msk [vmem:[#allocation3 + $0x14] sm:$0xf] %vm272_vm0, %v486_v21  ;;  %v1782_v25 = vld [vmem:[#allocation2 + $0x38] sm:$0xf]  ;;  %v1321_v27 = vrot.slane %v1789_v20, 5 }
  0x5e   : > { %v399_v4 = vshrl.u32 %v341_v5, 16  ;;  %v402_v7 = vshll.u32 %v341_v5, 16  ;;  %v1736_v57 = vld [vmem:[#allocation2 + $0x38] sm:$0xf]  ;;  %v1780_v30 = vld [vmem:[#allocation2 + $0x30] sm:$0xf] }
  0x5f   : > { %v1722_v33 = vld [vmem:[#allocation2 + $0x38] sm:$0xf]  ;;  %v1213_v36 = vshrl.u32 %v1782_v25, 16  ;;  %v1216_v37 = vshll.u32 %v1782_v25, 16  ;;  %v1322_v39 = vsel %vm2037_vm6, %v1804_v26, %v1321_v27  ;;  %v1202_v41 = vshll.u32 %v1780_v30, 16 }
  0x60   : > { %v401_v11 = vrot.slane %v399_v4, 7  ;;  %v1744_v34 = vld [vmem:[#allocation2 + $0x18] sm:$0xe]  ;;  %v1747_v42 = vld [vmem:[#allocation2 + $0x24] sm:$0x1] }
  0x61   : > { %v1758_v46 = vrot.slane %v1744_v34, 9  ;;  %v1783_v49 = vld [vmem:[#allocation2 + $0x3c] sm:$0x1]  ;;  %v1215_v52 = vrot.slane %v1213_v36, 4  ;;  %v1204_v59 = vrot.slane %v1202_v41, 5 }
  0x62   : > { %641 = vrot.lane.b32.xlu0 %v614_v53, %s1941_s6  ;;  %v876_v53 = vrot.slane %v874_v40, 4  ;;  %v404_v12 = vor.u32 %v402_v7, %v401_v11  ;;  %v405_v29 = vrot.slane %v401_v11, 4  ;;  %v1199_v40 = vshrl.u32 %v1780_v30, 16  ;;  %v484_v26 = vld [vmem:[#allocation2 + $0x18] sm:$0xf] }
  0x63   : > { %v1222_v5 = vshll.u32 %v1783_v49, 16  ;;  %493 = vst.msk [vmem:[#allocation3 + $0xc] sm:$0xf] %vm272_vm0, %v484_v26  ;;  %v1776_v34 = vld [vmem:[#allocation2 + $0x20] sm:$0xf] }
  0x64   : > { %643 = vrot.lane.b32.xlu1 %v628_v58, %s1941_s6  ;;  %v871_v58 = vrot.slane %v869_v45, 5  ;;  %v880_v60 = vor.u32 %v879_v54, %v876_v53  ;;  %v474_v45 = vld [vmem:[#allocation2 + $0x44] sm:$0x1]  ;;  %v1218_v53 = vrot.slane %v1216_v37, 5  ;;  %v482_v54 = vld [vmem:[#allocation2 + $0x8] sm:$0xf] }
  0x65   : > { %1095 = vrot.lane.b32.xlu2 %v1765_v56, %s1945_s10  ;;  %v867_v56 = vrot.slane %v866_v44, 4  ;;  %v919_v44 = vshll.u32 %v1736_v57, 16  ;;  %v475_v50 = vsel %vm2101_vm11, %v405_v29, %v474_v45  ;;  %491 = vst.msk [vmem:[#allocation3 + $0x4] sm:$0xf] %vm272_vm0, %v482_v54  ;;  %v1174_v41 = vshll.u32 %v1776_v34, 16 }
  0x66   : > { %v881_v8 = vrot.slane %v880_v60, 4  ;;  %476 = vst [vmem:[#allocation2 + $0x44] sm:$0x1] %v475_v50  ;;  %v1219_v2 = vor.u32 %v1218_v53, %v1215_v52  ;;  %v1797_v49 = vld [vmem:[#allocation2 + $0x34] sm:$0x1] }
  0x67   : > { %v872_v6 = vsel %vm2057_vm7, %v867_v56, %v871_v58  ;;  %v1022_v56 = vrot.slane %v1747_v42, 5  ;;  %v1201_v58 = vrot.slane %v1199_v40, 4  ;;  %v921_v1 = vrot.slane %v919_v44, 5  ;;  %v1767_v42 = vld [vmem:[#allocation2 + $0x28] sm:$0xf] }
  0x68   : > { %v1220_v16 = vrot.slane %v1219_v2, 4  ;;  %v1171_v40 = vshrl.u32 %v1776_v34, 16  ;;  %v1799_v44 = vld [vmem:[#allocation2 + $0x3c] sm:$0x1]  ;;  %v1752_v50 = vld [vmem:[#allocation2 + $0x38] sm:$0xe] }
  0x69   : > { %v1205_v7 = vor.u32 %v1204_v59, %v1201_v58  ;;  %v1341_v53 = vrot.slane %v1799_v44, 5  ;;  %v1777_v58 = vld [vmem:[#allocation2 + $0x24] sm:$0x1] }
  0x6a   : > { %788 = vrot.lane.b32.xlu0 %v1719_v13, %s1942_s7  ;;  %v471_v13 = vld [vmem:[#allocation2 + $0x40] sm:$0xf]  ;;  %v1173_v54 = vrot.slane %v1171_v40, 4  ;;  %v1793_v34 = vld [vmem:[#allocation2 + $0x24] sm:$0x1] }
  0x6b   : > { %v472_v18 = vsel %vm2093_vm10, %v404_v12, %v471_v13  ;;  %v1329_v40 = vrot.slane %v1793_v34, 5 }
  0x6c   : > { %1048 = vrot.lane.b32.xlu1 %v1027_v17, %s1944_s9  ;;  %v886_v17 = vsel %vm2057_vm7, %v881_v8, %v885_v9  ;;  %473 = vst [vmem:[#allocation2 + $0x40] sm:$0xf] %v472_v18 }
  0x6d   : > { %786 = vrot.lane.b32.xlu2 %v1718_v31, %s1942_s7  ;;  %v1791_v31 = vld [vmem:[#allocation2 + $0x1c] sm:$0x1]  ;;  %v1739_v25 = vld [vmem:[#allocation2 + $0x44] sm:$0x1] }
  0x6e   : > { %v1325_v23 = vrot.slane %v1791_v31, 5  ;;  %v1224_v31 = vrot.slane %v1222_v5, 5  ;;  %v939_v30 = vshll.u32 %v1739_v25, 16  ;;  %v1779_v5 = vld [vmem:[#allocation2 + $0x2c] sm:$0x1] }
  0x6f   : > { %v1786_v25 = vld [vmem:[#allocation2 + $0x48] sm:$0xf] }
  0x70   : > { %v1326_v32 = vsel %vm2037_vm6, %v1805_v22, %v1325_v23  ;;  %v1225_v27 = vsel %vm2057_vm7, %v1220_v16, %v1224_v31 }
  0x72   : > { %1254 = vrot.lane.b32.xlu0 %v1155_v35, %s1946_s11  ;;  %v1745_v35 = vld [vmem:[#allocation2 + $0x1c] sm:$0x1] }
  0x73   : > { %v1018_v47 = vrot.slane %v1745_v35, 5  ;;  %v1723_v4 = vld [vmem:[#allocation2 + $0x40] sm:$0xf] }
  0x74   : > { %1256 = vrot.lane.b32.xlu1 %v1169_v43, %s1946_s11  ;;  %v916_v43 = vshrl.u32 %v1736_v57, 16 }
  0x75   : > { %1050 = vrot.lane.b32.xlu2 %v1031_v38, %s1944_s9  ;;  %v1746_v38 = vld [vmem:[#allocation2 + $0x20] sm:$0xe]  ;;  %v1019_v60 = vsel %vm2037_vm6, %v1758_v46, %v1018_v47 }
  0x76   : > { %v1759_v55 = vrot.slane %v1746_v38, 9  ;;  %v918_v3 = vrot.slane %v916_v43, 4  ;;  %v1778_v38 = vld [vmem:[#allocation2 + $0x28] sm:$0xf]  ;;  %v1798_v43 = vld [vmem:[#allocation2 + $0x38] sm:$0xe] }
  0x77   : > { %v1185_v46 = vshrl.u32 %v1778_v38, 16  ;;  %v1188_v47 = vshll.u32 %v1778_v38, 16  ;;  %v1809_v52 = vrot.slane %v1798_v43, 9 }
  0x78   : > { %v1023_v12 = vsel %vm2037_vm6, %v1759_v55, %v1022_v56  ;;  %v922_v13 = vor.u32 %v921_v1, %v918_v3  ;;  %v1176_v55 = vrot.slane %v1174_v41, 5  ;;  %v1762_v3 = vrot.slane %v1752_v50, 9  ;;  %v1785_v41 = vld [vmem:[#allocation2 + $0x44] sm:$0x1] }
  0x79   : > { %v1236_v50 = vshll.u32 %v1785_v41, 16  ;;  %v1864_v41 = vld [vmem:[%s2477_s3 + $0x20] sm:$0xff] }
  0x7a   : > { %743 = vrot.lane.b32.xlu0 %v728_v62, %s1940_s30  ;;  %v1781_v62 = vld [vmem:[#allocation2 + $0x34] sm:$0x1]  ;;  %v923_v22 = vrot.slane %v922_v13, 4  ;;  %v1754_v13 = vld [vmem:[#allocation2 + $0x40] sm:$0xe]  ;;  %1477 = vmatpush.bf16.msra.mxu0 %v1864_v41 }
  0x7b   : > { %v1208_v8 = vshll.u32 %v1781_v62, 16  ;;  %v1187_v62 = vrot.slane %v1185_v46, 4  ;;  %1866 = vmatpush.bf16.msra.mxu2 %v1864_v41  ;;  %1865 = vmatpush.bf16.msra.mxu1 %v1864_v41 }
  0x7c   : > { %947 = vrot.lane.b32.xlu1 %v872_v6, %s1943_s8  ;;  %v1738_v6 = vld [vmem:[#allocation2 + $0x40] sm:$0xf]  ;;  %1867 = vmatpush.bf16.msra.mxu3 %v1864_v41 }
  0x7d   : > { %741 = vrot.lane.b32.xlu2 %v724_v63, %s1940_s30  ;;  %v1737_v63 = vld [vmem:[#allocation2 + $0x3c] sm:$0x1]  ;;  %v930_v9 = vshrl.u32 %v1738_v6, 16  ;;  %v933_v11 = vshll.u32 %v1738_v6, 16  ;;  %v1210_v18 = vrot.slane %v1208_v8, 5  ;;  %v1342_v6 = vsel %vm2037_vm6, %v1809_v52, %v1341_v53  ;;  %s2427_s30 = scalar_lea.vmem %s2478_s4, %s1854_s22  ;;  %s1707_s22 = sshll.u32 %s2493_s18, 1 }
  0x7f   : > { %v932_v19 = vrot.slane %v930_v9, 4  ;;  %v935_v20 = vrot.slane %v933_v11, 5 }
  0x81   : > { %v936_v29 = vor.u32 %v935_v20, %v932_v19 }
  0x82   : > { %1101 = vrot.lane.b32.xlu0 %v1768_v14, %s1945_s10  ;;  %v925_v14 = vshll.u32 %v1737_v63, 16  ;;  %v1190_v63 = vrot.slane %v1188_v47, 5  ;;  %v1787_v47 = vld [vmem:[#allocation2 + $0x4c] sm:$0x1] }
  0x83   : > { %v937_v35 = vrot.slane %v936_v29, 4  ;;  %v1792_v29 = vld [vmem:[#allocation2 + $0x20] sm:$0xe] }
  0x84   : > { %1103 = vrot.lane.b32.xlu1 %v1769_v15, %s1945_s10  ;;  %v483_v15 = vld [vmem:[#allocation2 + $0x10] sm:$0xf]  ;;  %v927_v23 = vrot.slane %v925_v14, 5  ;;  %v1191_v11 = vor.u32 %v1190_v63, %v1187_v62  ;;  %v1755_v14 = vld [vmem:[#allocation2 + $0x44] sm:$0x1] }
  0x85   : > { %949 = vrot.lane.b32.xlu2 %v886_v17, %s1943_s8  ;;  %492 = vst.msk [vmem:[#allocation3 + $0x8] sm:$0xf] %vm272_vm0, %v483_v15  ;;  %v1206_v17 = vrot.slane %v1205_v7, 4  ;;  %v1180_v7 = vshll.u32 %v1777_v58, 16  ;;  %v1038_v19 = vrot.slane %v1755_v14, 5 }
  0x86   : > { %v1192_v20 = vrot.slane %v1191_v11, 4  ;;  %v1801_v11 = vld [vmem:[#allocation2 + $0x44] sm:$0x1] }
  0x87   : > { %v2247_v28 = vpop.permute.xlu2 %790  ;;  %v1211_v57 = vsel %vm2057_vm7, %v1206_v17, %v1210_v18  ;;  %v1182_v16 = vrot.slane %v1180_v7, 5  ;;  %v1784_v17 = vld [vmem:[#allocation2 + $0x40] sm:$0xf]  ;;  %v1763_v18 = vrot.slane %v1754_v13, 9 }
  0x8a   : > { %1353 = vrot.lane.b32.xlu0 %v1326_v32, %s1947_s12  ;;  %v928_v32 = vsel %vm2057_vm7, %v923_v22, %v927_v23 }
  0x8c   : > { %v730_v48 = vpop.permute.xlu1 %729  ;;  %794 = vrot.lane.b32.xlu1 %v1722_v33, %s1942_s7 }
  0x8d   : > { %1351 = vrot.lane.b32.xlu2 %v1322_v39, %s1947_s12  ;;  %v1766_v39 = vld [vmem:[#allocation2 + $0x20] sm:$0xf] }
  0x8f   : > { %v738_v61 = vpop.permute.xlu2 %737 }
  0x90   : > { %v630_v51 = vpop.permute.xlu0 %629 }
  0x91   : > { %654 = vst.msk [vmem:[#allocation3] sm:$0xf] %vm653_vm12, %v630_v51  ;;  %v1753_v51 = vld [vmem:[#allocation2 + $0x3c] sm:$0x1] }
  0x92   : > { %754 = vst.msk [vmem:[#allocation3] sm:$0xf] %vm753_vm13, %v730_v48  ;;  %1044 = vrot.lane.b32.xlu0 %v1019_v60, %s1944_s9  ;;  %v1796_v48 = vld [vmem:[#allocation2 + $0x30] sm:$0xe]  ;;  %v1034_v1 = vrot.slane %v1753_v51, 5 }
  0x93   : > { %v1808_v59 = vrot.slane %v1796_v48, 9  ;;  %v1771_v48 = vld [vmem:[#allocation2 + $0x48] sm:$0xf]  ;;  %v1770_v51 = vld [vmem:[#allocation2 + $0x40] sm:$0xf] }
  0x94   : > { %1046 = vrot.lane.b32.xlu1 %v1023_v12, %s1944_s9  ;;  %v1035_v9 = vsel %vm2037_vm6, %v1762_v3, %v1034_v1  ;;  %v1194_v12 = vshll.u32 %v1779_v5, 16 }
  0x95   : > { %796 = vrot.lane.b32.xlu2 %v1723_v4, %s1942_s7  ;;  %v1177_v4 = vor.u32 %v1176_v55, %v1173_v54  ;;  %v1250_v54 = vshll.u32 %v1787_v47, 16  ;;  %v1794_v55 = vld [vmem:[#allocation2 + $0x28] sm:$0xe] }
  0x96   : > { %v1807_v3 = vrot.slane %v1794_v55, 9 }
  0x97   : > { %v638_v21 = vpop.permute.xlu2 %637  ;;  %v1178_v15 = vrot.slane %v1177_v4, 4  ;;  %v1252_v63 = vrot.slane %v1250_v54, 5  ;;  %v1803_v4 = vld [vmem:[#allocation2 + $0x4c] sm:$0x1] }
  0x98   : > { %658 = vst.msk [vmem:[#allocation3 + $0x10] sm:$0xf] %vm653_vm12, %v638_v21  ;;  %v1196_v21 = vrot.slane %v1194_v12, 5  ;;  %v1349_v13 = vrot.slane %v1803_v4, 5 }
  0x99   : > { %758 = vst.msk [vmem:[#allocation3 + $0x10] sm:$0xf] %vm753_vm13, %v738_v61  ;;  %v1337_v61 = vrot.slane %v1797_v49, 5  ;;  %v1183_v26 = vsel %vm2057_vm7, %v1178_v15, %v1182_v16  ;;  %v1345_v16 = vrot.slane %v1801_v11, 5 }
  0x9a   : > { %811 = vst.msk [vmem:[#allocation3 + $0x10] sm:$0xf] %vm806_vm14, %v2247_v28  ;;  %1264 = vrot.lane.b32.xlu0 %v1225_v27, %s1946_s11  ;;  %v941_v28 = vrot.slane %v939_v30, 5  ;;  %v1227_v27 = vshrl.u32 %v1784_v17, 16  ;;  %v1039_v30 = vsel %vm2037_vm6, %v1763_v18, %v1038_v19 }
  0x9b   : > { %v1338_v8 = vsel %vm2037_vm6, %v1808_v59, %v1337_v61  ;;  %v1238_v59 = vrot.slane %v1236_v50, 5 }
  0x9c   : > { %v783_v33 = vpop.permute.xlu0 %782  ;;  %955 = vrot.lane.b32.xlu1 %v928_v32, %s1943_s8  ;;  %v942_v45 = vsel %vm2057_vm7, %v937_v35, %v941_v28  ;;  %v487_v32 = vld [vmem:[#allocation2 + $0x30] sm:$0xf]  ;;  %v1241_v35 = vshrl.u32 %v1786_v25, 16  ;;  %v1244_v28 = vshll.u32 %v1786_v25, 16 }
  0x9d   : > { %1262 = vrot.lane.b32.xlu2 %v1211_v57, %s1946_s11  ;;  %807 = vst.msk [vmem:[#allocation3] sm:$0xf] %vm806_vm14, %v783_v33  ;;  %v1230_v57 = vshll.u32 %v1784_v17, 16  ;;  %v1197_v33 = vsel %vm2057_vm7, %v1192_v20, %v1196_v21 }
  0x9e   : > { %v785_v37 = vpop.permute.xlu1 %784  ;;  %496 = vst.msk [vmem:[#allocation3 + $0x18] sm:$0xf] %vm272_vm0, %v487_v32  ;;  %v1246_v43 = vrot.slane %v1244_v28, 5 }
  0x9f   : > { %v640_v36 = vpop.permute.xlu2 %639 }
  0xa0   : > { %659 = vst.msk [vmem:[#allocation3 + $0x14] sm:$0xf] %vm653_vm12, %v640_v36  ;;  %v1229_v36 = vrot.slane %v1227_v27, 4 }
  0xa2   : > { %1097 = vrot.lane.b32.xlu0 %v1766_v39, %s1945_s10  ;;  %v1806_v39 = vrot.slane %v1792_v29, 9 }
  0xa4   : > { %v740_v56 = vpop.permute.xlu0 %739  ;;  %1099 = vrot.lane.b32.xlu1 %v1767_v42, %s1945_s10  ;;  %v1243_v42 = vrot.slane %v1241_v35, 4  ;;  %v1330_v52 = vsel %vm2037_vm6, %v1806_v39, %v1329_v40 }
  0xa5   : > { %957 = vrot.lane.b32.xlu2 %v942_v45, %s1943_s8  ;;  %759 = vst.msk [vmem:[#allocation3 + $0x14] sm:$0xf] %vm753_vm13, %v740_v56  ;;  %v488_v45 = vld [vmem:[#allocation2 + $0x38] sm:$0xf]  ;;  %v1795_v56 = vld [vmem:[#allocation2 + $0x2c] sm:$0x1]  ;;  %s266_s8 = scalar_lea.vmem %s2479_s5, %s1707_s22 }
  0xa6   : > { %v732_v2 = vpop.permute.xlu1 %731  ;;  %497 = vst.msk [vmem:[#allocation3 + $0x1c] sm:$0xf] %vm272_vm0, %v488_v45  ;;  %v1247_v53 = vor.u32 %v1246_v43, %v1243_v42  ;;  %v1333_v1 = vrot.slane %v1795_v56, 5  ;;  %vm1278_vm0 = vcmask 519616  }
  0xa7   : > { %v946_v60 = vpop.permute.xlu2 %945 }
  0xa8   : > { %v1248_v62 = vrot.slane %v1247_v53, 4  ;;  %v1334_v7 = vsel %vm2037_vm6, %v1807_v3, %v1333_v1 }
  0xaa   : > { %1361 = vrot.lane.b32.xlu0 %v1342_v6, %s1947_s12  ;;  %v1802_v6 = vld [vmem:[#allocation2 + $0x48] sm:$0xe] }
  0xab   : > { %v1811_v12 = vrot.slane %v1802_v6, 9 }
  0xac   : > { %v632_v31 = vpop.permute.xlu0 %631  ;;  %1052 = vrot.lane.b32.xlu1 %v1035_v9, %s1944_s9  ;;  %v1800_v9 = vld [vmem:[#allocation2 + $0x40] sm:$0xe] }
  0xad   : > { %1359 = vrot.lane.b32.xlu2 %v1338_v8, %s1947_s12  ;;  %655 = vst.msk [vmem:[#allocation3 + $0x4] sm:$0xf] %vm653_vm12, %v632_v31  ;;  %v1253_v8 = vsel %vm2057_vm7, %v1248_v62, %v1252_v63  ;;  %v1810_v15 = vrot.slane %v1800_v9, 9  ;;  %v1350_v24 = vsel %vm2037_vm6, %v1811_v12, %v1349_v13 }
  0xae   : > { %755 = vst.msk [vmem:[#allocation3 + $0x4] sm:$0xf] %vm753_vm13, %v732_v2  ;;  %v944_v23 = vpop.permute.xlu1 %943 }
  0xaf   : > { %v1043_v22 = vpop.permute.xlu2 %1042  ;;  %808 = vst.msk [vmem:[#allocation3 + $0x4] sm:$0xf] %vm806_vm14, %v785_v37  ;;  %v1232_v37 = vrot.slane %v1230_v57, 5  ;;  %v1346_v18 = vsel %vm2037_vm6, %v1810_v15, %v1345_v16  ;;  %vm1503_vm6 = vcmask 64512  }
  0xb0   : > { %968 = vst.msk [vmem:[#allocation3] sm:$0xf] %vm967_vm15, %v944_v23 }
  0xb1   : > { %969 = vst.msk [vmem:[#allocation3 + $0x4] sm:$0xf] %vm967_vm15, %v946_v60  ;;  %v1233_v49 = vor.u32 %v1232_v37, %v1229_v36 }
  0xb2   : > { %1258 = vrot.lane.b32.xlu0 %v1183_v26, %s1946_s11  ;;  %1066 = vst.msk [vmem:[#allocation3 + $0x4] sm:$0xf] %vm1064_vm1, %v1043_v22 }
  0xb3   : > { %v1234_v58 = vrot.slane %v1233_v49, 4  ;;  %v1861_v49 = vld [vmem:[%s2477_s3 + $0x8] sm:$0xff] }
  0xb4   : > { %v634_v38 = vpop.permute.xlu0 %633  ;;  %1260 = vrot.lane.b32.xlu1 %v1197_v33, %s1946_s11 }
  0xb5   : > { %1054 = vrot.lane.b32.xlu2 %v1039_v30, %s1944_s9  ;;  %656 = vst.msk [vmem:[#allocation3 + $0x8] sm:$0xf] %vm653_vm12, %v634_v38  ;;  %v1239_v5 = vsel %vm2057_vm7, %v1234_v58, %v1238_v59  ;;  %vm1562_vm7 = vcmask 1040384  }
  0xb6   : > { %v636_v46 = vpop.permute.xlu1 %635 }
  0xb7   : > { %v952_v44 = vpop.permute.xlu2 %951  ;;  %657 = vst.msk [vmem:[#allocation3 + $0xc] sm:$0xf] %vm653_vm12, %v636_v46  ;;  %v1862_v46 = vld [vmem:[%s2477_s3 + $0x10] sm:$0xff] }
  0xb8   : > { %972 = vst.msk [vmem:[#allocation3 + $0x10] sm:$0xf] %vm967_vm15, %v952_v44  ;;  %v1863_v44 = vld [vmem:[%s2477_s3 + $0x18] sm:$0xff] }
  0xb9   : > { %1478 = vmatpush.bf16.msra.mxu0 %v1863_v44  ;;  %1869 = vmatpush.bf16.msra.mxu2 %v1863_v44 }
  0xba   : > { %1107 = vrot.lane.b32.xlu0 %v1771_v48, %s1945_s10  ;;  %1868 = vmatpush.bf16.msra.mxu1 %v1863_v44 }
  0xbb   : > { %1870 = vmatpush.bf16.msra.mxu3 %v1863_v44 }
  0xbc   : > { %v793_v61 = vpop.permute.xlu0 %792  ;;  %1355 = vrot.lane.b32.xlu1 %v1330_v52, %s1947_s12 }
  0xbd   : > { %1105 = vrot.lane.b32.xlu2 %v1770_v51, %s1945_s10  ;;  %812 = vst.msk [vmem:[#allocation3 + $0x14] sm:$0xf] %vm806_vm14, %v793_v61  ;;  %1479 = vmatpush.bf16.msra.mxu0 %v1862_v46  ;;  %v1860_v51 = vld [vmem:[%s2477_s3] sm:$0xff] }
  0xbe   : > { %v1041_v2 = vpop.permute.xlu1 %1040  ;;  %1872 = vmatpush.bf16.msra.mxu2 %v1862_v46  ;;  %1871 = vmatpush.bf16.msra.mxu1 %v1862_v46 }
  0xbf   : > { %v1096_v60 = vpop.permute.xlu2 %1095  ;;  %1065 = vst.msk [vmem:[#allocation3] sm:$0xf] %vm1064_vm1, %v1041_v2  ;;  %1873 = vmatpush.bf16.msra.mxu3 %v1862_v46 }
  0xc0   : > { %1119 = vst.msk [vmem:[#allocation3 + $0x4] sm:$0xf] %vm1117_vm2, %v1096_v60 }
  0xc1   : > { %1480 = vmatpush.bf16.msra.mxu0 %v1861_v49 }
  0xc2   : > { %1266 = vrot.lane.b32.xlu0 %v1239_v5, %s1946_s11  ;;  %1875 = vmatpush.bf16.msra.mxu2 %v1861_v49 }
  0xc3   : > { %1874 = vmatpush.bf16.msra.mxu1 %v1861_v49  ;;  %1876 = vmatpush.bf16.msra.mxu3 %v1861_v49 }
  0xc4   : > { %v734_v14 = vpop.permute.xlu0 %733  ;;  %1268 = vrot.lane.b32.xlu1 %v1253_v8, %s1946_s11 }
  0xc5   : > { %1357 = vrot.lane.b32.xlu2 %v1334_v7, %s1947_s12  ;;  %756 = vst.msk [vmem:[#allocation3 + $0x8] sm:$0xf] %vm753_vm13, %v734_v14  ;;  %1481 = vmatpush.bf16.msra.mxu0 %v1860_v51 }
  0xc6   : > { %v736_v17 = vpop.permute.xlu1 %735  ;;  %1878 = vmatpush.bf16.msra.mxu2 %v1860_v51 }
  0xc7   : > { %v787_v31 = vpop.permute.xlu2 %786  ;;  %757 = vst.msk [vmem:[#allocation3 + $0xc] sm:$0xf] %vm753_vm13, %v736_v17  ;;  %1877 = vmatpush.bf16.msra.mxu1 %v1860_v51  ;;  %1879 = vmatpush.bf16.msra.mxu3 %v1860_v51 }
  0xc8   : > { %809 = vst.msk [vmem:[#allocation3 + $0x8] sm:$0xf] %vm806_vm14, %v787_v31 }
  0xca   : > { %1365 = vrot.lane.b32.xlu0 %v1350_v24, %s1947_s12 }
  0xcc   : > { %v954_v19 = vpop.permute.xlu0 %953 }
  0xcd   : > { %1363 = vrot.lane.b32.xlu2 %v1346_v18, %s1947_s12  ;;  %973 = vst.msk [vmem:[#allocation3 + $0x14] sm:$0xf] %vm967_vm15, %v954_v19 }
  0xce   : > { %v1094_v21 = vpop.permute.xlu1 %1093 }
  0xcf   : > { %v1051_v20 = vpop.permute.xlu2 %1050  ;;  %1118 = vst.msk [vmem:[#allocation3] sm:$0xf] %vm1117_vm2, %v1094_v21 }
  0xd0   : > { %1070 = vst.msk [vmem:[#allocation3 + $0x14] sm:$0xf] %vm1064_vm1, %v1051_v20 }
  0xd4   : > { %v642_v22 = vpop.permute.xlu0 %641 }
  0xd5   : > { %660 = vst.msk [vmem:[#allocation3 + $0x18] sm:$0xf] %vm653_vm12, %v642_v22 }
  0xd6   : > { %v644_v25 = vpop.permute.xlu1 %643 }
  0xd7   : > { %v742_v23 = vpop.permute.xlu2 %741  ;;  %661 = vst.msk [vmem:[#allocation3 + $0x1c] sm:$0xf] %vm653_vm12, %v644_v25 }
  0xd8   : > { %760 = vst.msk [vmem:[#allocation3 + $0x18] sm:$0xf] %vm753_vm13, %v742_v23 }
  0xdc   : > { %v789_v10 = vpop.permute.xlu0 %788 }
  0xdd   : > { %810 = vst.msk [vmem:[#allocation3 + $0xc] sm:$0xf] %vm806_vm14, %v789_v10 }
  0xde   : > { %v1049_v27 = vpop.permute.xlu1 %1048 }
  0xdf   : > { %v950_v26 = vpop.permute.xlu2 %949  ;;  %1069 = vst.msk [vmem:[#allocation3 + $0x10] sm:$0xf] %vm1064_vm1, %v1049_v27 }
  0xe0   : > { %971 = vst.msk [vmem:[#allocation3 + $0xc] sm:$0xf] %vm967_vm15, %v950_v26 }
  0xe4   : > { %v1255_v57 = vpop.permute.xlu0 %1254 }
  0xe5   : > { %1279 = vst.msk [vmem:[#allocation3] sm:$0xf] %vm1278_vm0, %v1255_v57 }
  0xe6   : > { %v1257_v30 = vpop.permute.xlu1 %1256 }
  0xe7   : > { %v1352_v29 = vpop.permute.xlu2 %1351  ;;  %1280 = vst.msk [vmem:[#allocation3 + $0x4] sm:$0xf] %vm1278_vm0, %v1257_v30 }
  0xe8   : > { %1376 = vst.msk [vmem:[#allocation3] sm:$0xf] %vm1375_vm3, %v1352_v29 }
  0xe9   : > { %1385 = vst.msk [vmem:[#allocation3] sm:$0xf] %vm1384_vm4, %v1939_v0 }
  0xec   : > { %v744_v32 = vpop.permute.xlu0 %743 }
  0xed   : > { %761 = vst.msk [vmem:[#allocation3 + $0x1c] sm:$0xf] %vm753_vm13, %v744_v32 }
  0xee   : > { %v948_v34 = vpop.permute.xlu1 %947 }
  0xef   : > { %v797_v33 = vpop.permute.xlu2 %796  ;;  %970 = vst.msk [vmem:[#allocation3 + $0x8] sm:$0xf] %vm967_vm15, %v948_v34 }
  0xf0   : > { %814 = vst.msk [vmem:[#allocation3 + $0x1c] sm:$0xf] %vm806_vm14, %v797_v33 }
  0xf4   : > { %v1102_v35 = vpop.permute.xlu0 %1101 }
  0xf5   : > { %1122 = vst.msk [vmem:[#allocation3 + $0x10] sm:$0xf] %vm1117_vm2, %v1102_v35 }
  0xf6   : > { %v1104_v36 = vpop.permute.xlu1 %1103 }
  0xf7   : > { %v1263_v28 = vpop.permute.xlu2 %1262  ;;  %1123 = vst.msk [vmem:[#allocation3 + $0x14] sm:$0xf] %vm1117_vm2, %v1104_v36 }
  0xf8   : > { %1283 = vst.msk [vmem:[#allocation3 + $0x10] sm:$0xf] %vm1278_vm0, %v1263_v28 }
  0xfc   : > { %v1354_v37 = vpop.permute.xlu0 %1353 }
  0xfd   : > { %1377 = vst.msk [vmem:[#allocation3 + $0x4] sm:$0xf] %vm1375_vm3, %v1354_v37 }
  0xfe   : > { %1386 = vst.msk [vmem:[#allocation3 + $0x4] sm:$0xf] %vm1384_vm4, %v1939_v0  ;;  %v795_v39 = vpop.permute.xlu1 %794 }
  0xff   : > { %v958_v38 = vpop.permute.xlu2 %957  ;;  %813 = vst.msk [vmem:[#allocation3 + $0x18] sm:$0xf] %vm806_vm14, %v795_v39 }
 0x100   : > { %975 = vst.msk [vmem:[#allocation3 + $0x1c] sm:$0xf] %vm967_vm15, %v958_v38 }
 0x104   : > { %v1045_v40 = vpop.permute.xlu0 %1044 }
 0x105   : > { %1067 = vst.msk [vmem:[#allocation3 + $0x8] sm:$0xf] %vm1064_vm1, %v1045_v40  ;;  %v1856_v52 = vld [vmem:[#allocation3] sm:$0xff] }
 0x106   : > { %v1047_v43 = vpop.permute.xlu1 %1046  ;;  %1848 = vmatmul.msk.bf16.vlgmr.msra.gmra.mxu0 %vm1461_vm5, %v1856_v52 }
 0x107   : > { %v1360_v42 = vpop.permute.xlu2 %1359  ;;  %1068 = vst.msk [vmem:[#allocation3 + $0xc] sm:$0xf] %vm1064_vm1, %v1047_v43 }
 0x108   : > { %1380 = vst.msk [vmem:[#allocation3 + $0x10] sm:$0xf] %vm1375_vm3, %v1360_v42 }
 0x109   : > { %1389 = vst.msk [vmem:[#allocation3 + $0x10] sm:$0xf] %vm1384_vm4, %v1939_v0 }
 0x10c   : > { %v1265_v45 = vpop.permute.xlu0 %1264 }
 0x10d   : > { %1284 = vst.msk [vmem:[#allocation3 + $0x14] sm:$0xf] %vm1278_vm0, %v1265_v45 }
 0x10e   : > { %v956_v48 = vpop.permute.xlu1 %955 }
 0x10f   : > { %v1055_v47 = vpop.permute.xlu2 %1054  ;;  %974 = vst.msk [vmem:[#allocation3 + $0x18] sm:$0xf] %vm967_vm15, %v956_v48 }
 0x110   : > { %1072 = vst.msk [vmem:[#allocation3 + $0x1c] sm:$0xf] %vm1064_vm1, %v1055_v47 }
 0x114   : > { %v1098_v50 = vpop.permute.xlu0 %1097 }
 0x115   : > { %1120 = vst.msk [vmem:[#allocation3 + $0x8] sm:$0xf] %vm1117_vm2, %v1098_v50 }
 0x116   : > { %v1100_v53 = vpop.permute.xlu1 %1099 }
 0x117   : > { %1121 = vst.msk [vmem:[#allocation3 + $0xc] sm:$0xf] %vm1117_vm2, %v1100_v53  ;;  %v1106_v54 = vpop.permute.xlu2 %1105 }
 0x11c   : > { %v1362_v55 = vpop.permute.xlu0 %1361 }
 0x11d   : > { %1381 = vst.msk [vmem:[#allocation3 + $0x14] sm:$0xf] %vm1375_vm3, %v1362_v55 }
 0x11e   : > { %1390 = vst.msk [vmem:[#allocation3 + $0x14] sm:$0xf] %vm1384_vm4, %v1939_v0  ;;  %v1053_v56 = vpop.permute.xlu1 %1052 }
 0x11f   : > { %1071 = vst.msk [vmem:[#allocation3 + $0x18] sm:$0xf] %vm1064_vm1, %v1053_v56  ;;  %v1358_v59 = vpop.permute.xlu2 %1357 }
 0x120   : > { %1124 = vst.msk [vmem:[#allocation3 + $0x18] sm:$0xf] %vm1117_vm2, %v1106_v54 }
 0x124   : > { %v1259_v58 = vpop.permute.xlu0 %1258 }
 0x125   : > { %1281 = vst.msk [vmem:[#allocation3 + $0x8] sm:$0xf] %vm1278_vm0, %v1259_v58  ;;  %v1858_v61 = vld [vmem:[#allocation3 + $0x10] sm:$0xff] }
 0x126   : > { %v1261_v3 = vpop.permute.xlu1 %1260  ;;  %1850 = vmatmul.msk.bf16.vlgmr.msra.gmra.mxu2 %vm1461_vm5, %v1858_v61 }
 0x127   : > { %1282 = vst.msk [vmem:[#allocation3 + $0xc] sm:$0xf] %vm1278_vm0, %v1261_v3  ;;  %v1364_v63 = vpop.permute.xlu2 %1363 }
 0x128   : > { %1379 = vst.msk [vmem:[#allocation3 + $0xc] sm:$0xf] %vm1375_vm3, %v1358_v59 }
 0x129   : > { %1388 = vst.msk [vmem:[#allocation3 + $0xc] sm:$0xf] %vm1384_vm4, %v1939_v0 }
 0x12c   : > { %v1108_v1 = vpop.permute.xlu0 %1107 }
 0x12d   : > { %1125 = vst.msk [vmem:[#allocation3 + $0x1c] sm:$0xf] %vm1117_vm2, %v1108_v1 }
 0x12e   : > { %v1356_v62 = vpop.permute.xlu1 %1355 }
 0x12f   : > { %1378 = vst.msk [vmem:[#allocation3 + $0x8] sm:$0xf] %vm1375_vm3, %v1356_v62 }
 0x130   : > { %1387 = vst.msk [vmem:[#allocation3 + $0x8] sm:$0xf] %vm1384_vm4, %v1939_v0 }
 0x134   : > { %v1267_v60 = vpop.permute.xlu0 %1266 }
 0x135   : > { %1285 = vst.msk [vmem:[#allocation3 + $0x18] sm:$0xf] %vm1278_vm0, %v1267_v60 }
 0x136   : > { %v1269_v2 = vpop.permute.xlu1 %1268  ;;  %1382 = vst.msk [vmem:[#allocation3 + $0x18] sm:$0xf] %vm1375_vm3, %v1364_v63 }
 0x137   : > { %1286 = vst.msk [vmem:[#allocation3 + $0x1c] sm:$0xf] %vm1278_vm0, %v1269_v2  ;;  %v1857_v5 = vld [vmem:[#allocation3 + $0x8] sm:$0xff] }
 0x138   : > { %1391 = vst.msk [vmem:[#allocation3 + $0x18] sm:$0xf] %vm1384_vm4, %v1939_v0  ;;  %1849 = vmatmul.msk.bf16.vlgmr.msra.gmra.mxu1 %vm1461_vm5, %v1857_v5 }
 0x13c   : > { %v1366_v6 = vpop.permute.xlu0 %1365 }
 0x13d   : > { %1383 = vst.msk [vmem:[#allocation3 + $0x1c] sm:$0xf] %vm1375_vm3, %v1366_v6 }
 0x13e   : > { %1392 = vst.msk [vmem:[#allocation3 + $0x1c] sm:$0xf] %vm1384_vm4, %v1939_v0 }
 0x145   : > { %v1859_v4 = vld [vmem:[#allocation3 + $0x18] sm:$0xff] }
 0x146   : > { %1851 = vmatmul.msk.bf16.vlgmr.msra.gmra.mxu3 %vm1461_vm5, %v1859_v4 }
 0x183   : > { %v1483_v7 = vpop.f32.mrf.mxu0 }
 0x184   : > { %1504 = vst.msk [vmem:[%s2427_s30] sm:$0xff] %vm1503_vm6, %v1483_v7  ;;  %v1533_v12 = vmul.f32 %v1483_v7, %v1483_v7  ;;  %v1512_v14 = vsel %vm1503_vm6, %v1483_v7, 0.0 }
 0x186   : > { %v1541_v31 = vsel %vm1503_vm6, %v1533_v12, 0.0 }
 0x18b   : > { %v1485_v8 = vpop.f32.mrf.mxu0 }
 0x18c   : > { %1505 = vst.msk [vmem:[%s2427_s30 + $0x8] sm:$0xff] %vm1503_vm6, %v1485_v8  ;;  %v1534_v13 = vmul.f32 %v1485_v8, %v1485_v8  ;;  %v1513_v15 = vsel %vm1503_vm6, %v1485_v8, 0.0 }
 0x18d   : > { %v1514_v18 = vadd.f32 %v1513_v15, %v1512_v14 }
 0x18e   : > { %v1542_v24 = vsel %vm1503_vm6, %v1534_v13, 0.0 }
 0x18f   : > { %v1543_v20 = vadd.f32 %v1542_v24, %v1541_v31 }
 0x1a9   : > { %v1493_v0 = vpop.f32.mrf.mxu2 }
 0x1aa   : > { %1508 = vst.msk [vmem:[%s2427_s30 + $0x20] sm:$0xff] %vm1503_vm6, %v1493_v0  ;;  %v1537_v26 = vmul.f32 %v1493_v0, %v1493_v0  ;;  %v1519_v29 = vsel %vm1503_vm6, %v1493_v0, 0.0 }
 0x1ac   : > { %v1548_v33 = vsel %vm1503_vm6, %v1537_v26, 0.0 }
 0x1b1   : > { %v1495_v9 = vpop.f32.mrf.mxu2 }
 0x1b2   : > { %1509 = vst.msk [vmem:[%s2427_s30 + $0x28] sm:$0xff] %vm1503_vm6, %v1495_v9  ;;  %v1538_v34 = vmul.f32 %v1495_v9, %v1495_v9  ;;  %v1521_v28 = vsel %vm1503_vm6, %v1495_v9, 0.0 }
 0x1b4   : > { %v1550_v38 = vsel %vm1503_vm6, %v1538_v34, 0.0 }
 0x1b5   : > { %v1488_v11 = vpop.f32.mrf.mxu1 }
 0x1b6   : > { %1506 = vst.msk [vmem:[%s2427_s30 + $0x10] sm:$0xff] %vm1503_vm6, %v1488_v11  ;;  %v1535_v17 = vmul.f32 %v1488_v11, %v1488_v11  ;;  %v1515_v19 = vsel %vm1503_vm6, %v1488_v11, 0.0 }
 0x1b7   : > { %v1516_v23 = vadd.f32 %v1515_v19, %v1514_v18 }
 0x1b8   : > { %v1544_v21 = vsel %vm1503_vm6, %v1535_v17, 0.0 }
 0x1b9   : > { %v1545_v10 = vadd.f32 %v1544_v21, %v1543_v20 }
 0x1bd   : > { %v1490_v16 = vpop.f32.mrf.mxu1 }
 0x1be   : > { %1507 = vst.msk [vmem:[%s2427_s30 + $0x18] sm:$0xff] %vm1503_vm6, %v1490_v16  ;;  %v1536_v22 = vmul.f32 %v1490_v16, %v1490_v16  ;;  %v1517_v25 = vsel %vm1503_vm6, %v1490_v16, 0.0 }
 0x1bf   : > { %v1518_v57 = vadd.f32 %v1517_v25, %v1516_v23 }
 0x1c0   : > { %v1546_v27 = vsel %vm1503_vm6, %v1536_v22, 0.0 }
 0x1c1   : > { %v1547_v30 = vadd.f32 %v1546_v27, %v1545_v10  ;;  %v1520_v35 = vadd.f32 %v1519_v29, %v1518_v57 }
 0x1c3   : > { %v1549_v37 = vadd.f32 %v1548_v33, %v1547_v30  ;;  %v1522_v40 = vadd.f32 %v1521_v28, %v1520_v35 }
 0x1c5   : > { %v1551_v42 = vadd.f32 %v1550_v38, %v1549_v37 }
 0x1c9   : > { %v1498_v32 = vpop.f32.mrf.mxu3 }
 0x1ca   : > { %1510 = vst.msk [vmem:[%s2427_s30 + $0x30] sm:$0xff] %vm1503_vm6, %v1498_v32  ;;  %v1539_v36 = vmul.f32 %v1498_v32, %v1498_v32  ;;  %v1523_v39 = vsel %vm1503_vm6, %v1498_v32, 0.0 }
 0x1cb   : > { %v1524_v43 = vadd.f32 %v1523_v39, %v1522_v40 }
 0x1cc   : > { %v1552_v41 = vsel %vm1503_vm6, %v1539_v36, 0.0 }
 0x1cd   : > { %v1553_v47 = vadd.f32 %v1552_v41, %v1551_v42 }
 0x1d1   : > { %v1500_v44 = vpop.f32.mrf.mxu3 }
 0x1d2   : > { %1511 = vst.msk [vmem:[%s2427_s30 + $0x38] sm:$0xff] %vm1503_vm6, %v1500_v44  ;;  %v1525_v45 = vsel %vm1503_vm6, %v1500_v44, 0.0  ;;  %v1540_v46 = vmul.f32 %v1500_v44, %v1500_v44 }
 0x1d3   : > { %v1526_v48 = vadd.f32 %v1525_v45, %v1524_v43 }
 0x1d4   : > { %v1554_v49 = vsel %vm1503_vm6, %v1540_v46, 0.0 }
 0x1d5   : > { %v1527_v50 = vrot.slane %v1526_v48, 4  ;;  %v1555_v51 = vadd.f32 %v1554_v49, %v1553_v47 }
 0x1d7   : > { %v1528_v52 = vadd.f32 %v1527_v50, %v1526_v48  ;;  %v1556_v53 = vrot.slane %v1555_v51, 4 }
 0x1d9   : > { %v1529_v54 = vrot.slane %v1528_v52, 2  ;;  %v1557_v55 = vadd.f32 %v1556_v53, %v1555_v51 }
 0x1db   : > { %v1530_v56 = vadd.f32 %v1529_v54, %v1528_v52  ;;  %v1558_v58 = vrot.slane %v1557_v55, 2 }
 0x1dd   : > { %v1531_v59 = vrot.slane %v1530_v56, 1  ;;  %v1559_v61 = vadd.f32 %v1558_v58, %v1557_v55 }
 0x1df   : > { %v1560_v3 = vrot.slane %v1559_v61, 1  ;;  %v1532_v1 = vadd.f32 %v1531_v59, %v1530_v56 }
 0x1e1   : > { %v1561_v62 = vadd.f32 %v1560_v3, %v1559_v61 }
 0x1e3   : > { %v1563_v63 = vsel %vm1562_vm7, %v1532_v1, %v1561_v62 }
 0x1e4   : > { %1565 = vst.msk [vmem:[%s266_s8] sm:$0x3] %vm1564_vm8, %v1563_v63 }
 0x1e5 PF: > { %s16_s20 = sadd.s32 1, %s1937_s20   ;;  %s2488_s18 = smov %s1933_s19 }
 0x1e6   : > { %p13_p5 = scmp.ge.s32.totalorder %s16_s20, 4   ;;  %s2489_s19 = smov %s2491_s21 }
 0x1e8   :  { %15 = sbr.rel (!%p13_p5) target bundleno = 2 (0x2), region = 86 }

</bundles_post_ra>
